<compile_context>
chip_gen: v7x
topology: tpu7x:2x2x1
jax: 0.10.0
libtpu: 0.0.40
codegen_flags: <defaults>
</compile_context>

<pallas_src>
import functools

import jax
import jax.numpy as jnp
from jax.experimental import pallas as pl
from jax.experimental.pallas import tpu as pltpu

BN_EPS = 1e-5


def _round_up(x, m):
    return (x + m - 1) // m * m


def _vmem_limit_bytes():
    """Chip-aware scoped-VMEM budget, clamped per-TensorCore-safe (v7x: 64 MiB/TC)."""
    try:
        cap = pltpu.get_tpu_info().vmem_capacity_bytes
    except Exception:
        return 32 * 1024 * 1024
    return int(min(cap * 3 // 4, 48 * 1024 * 1024))


_VMEM_LIMIT = _vmem_limit_bytes()


def _compiler_params():
    return pltpu.CompilerParams(
        dimension_semantics=("parallel",),
        vmem_limit_bytes=_VMEM_LIMIT,
    )


def _row_tile(p_real, bytes_per_row, fixed_bytes=0):
    """Row tile (multiple of 8, <=512): double-buffered tiles within the VMEM budget,
    preferring >=2 tiles so a ("parallel",) grid can shard across 2 TCs (v7x)."""
    budget = max(_VMEM_LIMIT // 6 - fixed_bytes, 512 * 1024)
    tp = 512
    while tp > 8 and 2 * tp * bytes_per_row > budget:
        tp //= 2
    p8 = _round_up(max(p_real, 8), 8)
    tp = min(tp, p8)
    if tp == p8 and tp >= 16:        # single-tile grid -> split for the 2nd core
        tp = _round_up(tp // 2, 8)
    return tp


# ----------------------------- Pallas kernels ------------------------------ #

def _matmul_stats_kernel(p_ref, w_ref, z_ref, st_ref):
    """bf16 matmul (f32 accumulate) + per-tile partial BN statistics.

    p_ref : (TP, Kpad)  bf16 patch tile
    w_ref : (Kpad, Cpad) bf16 weights (constant across the grid)
    z_ref : (TP, Cpad)  bf16 pre-BN conv output tile (f32 compute, bf16 store)
    st_ref: (8, Cpad)   f32; row0 = sum_z, row1 = sum_z^2 (rows 2-7 unused).
    Padded patch rows are zero, so they contribute nothing to the stats.
    """
    z = jnp.dot(p_ref[...], w_ref[...], preferred_element_type=jnp.float32)
    z_ref[...] = z.astype(z_ref.dtype)
    st_ref[0:1, :] = jnp.sum(z, axis=0, keepdims=True)
    st_ref[1:2, :] = jnp.sum(z * z, axis=0, keepdims=True)


def _bn_act_kernel(z_ref, sc_ref, sh_ref, o_ref, *, relu):
    """Fused BN affine (+ReLU) epilogue; f32 compute, bf16 in/out."""
    y = z_ref[...].astype(jnp.float32) * sc_ref[...] + sh_ref[...]
    if relu:
        y = jnp.maximum(y, 0.0)
    o_ref[...] = y.astype(o_ref.dtype)


def _bn_act_res_kernel(z_ref, sc_ref, sh_ref, r_ref, o_ref, *, relu):
    """Fused BN affine + residual add (+ReLU) epilogue; f32 compute, bf16 in/out."""
    y = (z_ref[...].astype(jnp.float32) * sc_ref[...] + sh_ref[...]
         + r_ref[...].astype(jnp.float32))
    if relu:
        y = jnp.maximum(y, 0.0)
    o_ref[...] = y.astype(o_ref.dtype)


def _maxpool_kernel(*refs):
    """Max-reduce across pooling taps; refs = (tap_0..tap_{T-1}, out). bf16 storage."""
    o_ref = refs[-1]
    m = refs[0][...].astype(jnp.float32)
    for r in refs[1:-1]:
        m = jnp.maximum(m, r[...].astype(jnp.float32))
    o_ref[...] = m.astype(o_ref.dtype)


# ------------------------------ JAX glue ----------------------------------- #

def _im2col(x, ksize, stride, pad, pad_value=0.0):
    """x: NHWC (bf16).  Pure data movement (slice/reshape), no FLOPs."""
    n, h, w, c = x.shape
    xp = jnp.pad(x, ((0, 0), (pad, pad), (pad, pad), (0, 0)),
                 constant_values=pad_value)
    ho = (h + 2 * pad - ksize) // stride + 1
    wo = (w + 2 * pad - ksize) // stride + 1
    cols = []
    for kh in range(ksize):
        for kw in range(ksize):
            sl = xp[:, kh: kh + (ho - 1) * stride + 1: stride,
                       kw: kw + (wo - 1) * stride + 1: stride, :]
            cols.append(sl.reshape(n * ho * wo, c))
    return cols, (n, ho, wo)


def conv_bn_act(x, p, *, ksize, stride, pad, relu, residual=None):
    """Conv2d(bias=False) + BatchNorm2d(batch stats) + optional residual + ReLU.

    x        : (N, H, W, Cin_carried) bf16, channels already lane-padded (or raw 3ch stem input).
    p["wf"]  : (Kpad, Cpad) bf16 pre-flattened weights (from prepare_params).
    Returns  : (N, Ho, Wo, Cpad) bf16 (channels stay lane-padded; trailing channels are zero).
    """
    n, h, w_dim, cin = x.shape
    wf = p["wf"]
    kpad, cpad = wf.shape
    cout = p["gamma"].shape[0]

    if ksize == 1:
        # 1x1 conv: no im2col, just a strided spatial slice.
        xs = x[:, ::stride, ::stride, :]
        n, ho, wo, _ = xs.shape
        patches = xs.reshape(n * ho * wo, cin)
    else:
        # TODO(synk): replace materialized im2col with halo-window direct conv.
        cols, (n, ho, wo) = _im2col(x, ksize, stride, pad)
        patches = jnp.concatenate(cols, axis=1)        # (P, KH*KW*Cin) bf16

    k = patches.shape[1]
    assert _round_up(k, 128) == kpad, (k, kpad)
    p_real = n * ho * wo

    tp = _row_tile(p_real, kpad * 2 + 3 * cpad * 2, fixed_bytes=2 * kpad * cpad * 2)
    p_pad = _round_up(p_real, tp)
    num_tiles = p_pad // tp

    patches = jnp.pad(patches, ((0, p_pad - p_real), (0, kpad - k)))

    cparams = _compiler_params()

    # ---- pass 1: tiled matmul + per-tile partial BN stats -------------------
    z, stats = pl.pallas_call(
        _matmul_stats_kernel,
        out_shape=(jax.ShapeDtypeStruct((p_pad, cpad), jnp.bfloat16),
                   jax.ShapeDtypeStruct((num_tiles * 8, cpad), jnp.float32)),
        grid=(num_tiles,),
        in_specs=[pl.BlockSpec((tp, kpad), lambda i: (i, 0)),
                  pl.BlockSpec((kpad, cpad), lambda i: (0, 0))],   # weights: constant
        out_specs=(pl.BlockSpec((tp, cpad), lambda i: (i, 0)),
                   pl.BlockSpec((8, cpad), lambda i: (i, 0))),
        compiler_params=cparams,
    )(patches, wf)

    # ---- finalize global training-mode batch statistics (tiny, per channel) -
    st = stats.reshape(num_tiles, 8, cpad)
    mean = jnp.sum(st[:, 0, :], axis=0) / p_real
    var = jnp.maximum(jnp.sum(st[:, 1, :], axis=0) / p_real - mean * mean, 0.0)
    gamma = jnp.pad(p["gamma"], (0, cpad - cout), constant_values=1.0)
    beta = jnp.pad(p["beta"], (0, cpad - cout))
    scale = gamma * jax.lax.rsqrt(var + BN_EPS)
    shift = beta - mean * scale
    scale = scale[None, :].astype(jnp.float32)          # (1, Cpad)
    shift = shift[None, :].astype(jnp.float32)          # (1, Cpad)

    # ---- pass 2: tiled fused affine (+ residual) (+ ReLU) epilogue ----------
    # Output aliases the z input (same shape/dtype, z is dead afterwards).
    if residual is not None:
        r = residual.reshape(p_real, cpad)               # already bf16, Cpad-wide
        r = jnp.pad(r, ((0, p_pad - p_real), (0, 0)))
        out = pl.pallas_call(
            functools.partial(_bn_act_res_kernel, relu=relu),
            out_shape=jax.ShapeDtypeStruct((p_pad, cpad), jnp.bfloat16),
            grid=(num_tiles,),
            in_specs=[pl.BlockSpec((tp, cpad), lambda i: (i, 0)),
                      pl.BlockSpec((1, cpad), lambda i: (0, 0)),
                      pl.BlockSpec((1, cpad), lambda i: (0, 0)),
                      pl.BlockSpec((tp, cpad), lambda i: (i, 0))],
            out_specs=pl.BlockSpec((tp, cpad), lambda i: (i, 0)),
            input_output_aliases={0: 0},
            compiler_params=cparams,
        )(z, scale, shift, r)
    else:
        out = pl.pallas_call(
            functools.partial(_bn_act_kernel, relu=relu),
            out_shape=jax.ShapeDtypeStruct((p_pad, cpad), jnp.bfloat16),
            grid=(num_tiles,),
            in_specs=[pl.BlockSpec((tp, cpad), lambda i: (i, 0)),
                      pl.BlockSpec((1, cpad), lambda i: (0, 0)),
                      pl.BlockSpec((1, cpad), lambda i: (0, 0))],
            out_specs=pl.BlockSpec((tp, cpad), lambda i: (i, 0)),
            input_output_aliases={0: 0},
            compiler_params=cparams,
        )(z, scale, shift)

    return out[:p_real].reshape(n, ho, wo, cpad)


def maxpool(x, ksize, stride, pad):
    """MaxPool2d(ksize, stride, pad) on the lane-padded bf16 activation."""
    n, h, w, c = x.shape                                  # c already lane-padded
    cols, (n, ho, wo) = _im2col(x, ksize, stride, pad, pad_value=-jnp.inf)
    p_real = n * ho * wo

    tp = _row_tile(p_real, (len(cols) + 1) * c * 2)
    p_pad = _round_up(p_real, tp)
    taps = [jnp.pad(cl, ((0, p_pad - p_real), (0, 0))) for cl in cols]

    out = pl.pallas_call(
        _maxpool_kernel,
        out_shape=jax.ShapeDtypeStruct((p_pad, c), jnp.bfloat16),
        grid=(p_pad // tp,),
        in_specs=[pl.BlockSpec((tp, c), lambda i: (i, 0)) for _ in taps],
        out_specs=pl.BlockSpec((tp, c), lambda i: (i, 0)),
        compiler_params=_compiler_params(),
    )(*taps)
    return out[:p_real].reshape(n, ho, wo, c)


def basic_block(x, p, stride):
    """torchvision BasicBlock: conv3x3->bn->relu->conv3x3->bn (+identity) ->relu."""
    if "downsample" in p:
        identity = conv_bn_act(x, p["downsample"], ksize=1, stride=stride,
                               pad=0, relu=False)
    else:
        identity = x
    out = conv_bn_act(x, p["conv1"], ksize=3, stride=stride, pad=1, relu=True)
    out = conv_bn_act(out, p["conv2"], ksize=3, stride=1, pad=1, relu=True,
                      residual=identity)
    return out


def resnet_backbone_forward(x_nchw, params, expose_layers=(1, 2, 3, 4)):
    """Mirrors ResnetBackbone.forward: returns [layer4, layer3, layer2, layer1]."""
    x = jnp.transpose(x_nchw, (0, 2, 3, 1)).astype(jnp.bfloat16)   # NCHW -> NHWC
    x = conv_bn_act(x, params["stem"], ksize=7, stride=2, pad=3, relu=True)
    x = maxpool(x, 3, 2, 1)
    exposed = []
    for i in (1, 2, 3, 4):
        if max(expose_layers) < i:
            break
        for bi, bp in enumerate(params[f"layer{i}"]):
            stride = 2 if (i > 1 and bi == 0) else 1
            x = basic_block(x, bp, stride)
        if i in expose_layers:
            cout = params[f"layer{i}"][-1]["conv2"]["gamma"].shape[0]
            exposed.insert(0, jnp.transpose(x[..., :cout], (0, 3, 1, 2))
                           .astype(jnp.float32))                   # back to NCHW
    return exposed


# ----------------------- params & one-time preprocessing -------------------- #

def _conv_bn_params(key, cin, cout, ksize):
    kw, kg, kb = jax.random.split(key, 3)
    return {
        "w": 0.1 * jax.random.normal(kw, (cout, cin, ksize, ksize), jnp.float32),
        "gamma": 1.0 + 0.1 * jax.random.normal(kg, (cout,), jnp.float32),
        "beta": 0.1 * jax.random.normal(kb, (cout,), jnp.float32),
        # NOTE: running_mean/var omitted — training-mode BN ignores them.
    }


def init_params(key, in_ch=3, widths=(8, 16, 32, 64), blocks=(1, 1, 1, 1)):
    # Small synthetic BasicBlock ResNet (ResNet-18 topology, narrow + 1 block/stage).
    keys = iter(jax.random.split(key, 64))
    params = {"stem": _conv_bn_params(next(keys), in_ch, widths[0], 7)}
    cin = widths[0]
    for li, (w, nb) in enumerate(zip(widths, blocks), start=1):
        layer = []
        for bi in range(nb):
            stride = 2 if (li > 1 and bi == 0) else 1
            block = {
                "conv1": _conv_bn_params(next(keys), cin, w, 3),
                "conv2": _conv_bn_params(next(keys), w, w, 3),
            }
            if stride != 1 or cin != w:
                block["downsample"] = _conv_bn_params(next(keys), cin, w, 1)
            layer.append(block)
            cin = w
        params[f"layer{li}"] = layer
    return params


def _prep_conv(p, cin_carried, ksize):
    """One-time weight prep: pad cin to the carried width, flatten, pad to
    (Kpad, Cpad) lane-dense, cast to bf16. gamma/beta kept at real width."""
    cout, cin_real = p["w"].shape[0], p["w"].shape[1]
    w = jnp.transpose(p["w"], (2, 3, 1, 0))                   # (kh, kw, cin, cout)
    w = jnp.pad(w, ((0, 0), (0, 0), (0, cin_carried - cin_real), (0, 0)))
    k = ksize * ksize * cin_carried
    kpad = _round_up(k, 128)
    cpad = _round_up(cout, 128)
    wf = jnp.pad(w.reshape(k, cout), ((0, kpad - k), (0, cpad - cout))
                 ).astype(jnp.bfloat16)
    return {"wf": wf, "gamma": p["gamma"], "beta": p["beta"]}


def prepare_params(params, in_ch=3):
    """Hoisted, once-per-model weight preprocessing (outside the jitted forward)."""
    proc = {"stem": _prep_conv(params["stem"], in_ch, 7)}
    carried = _round_up(params["stem"]["w"].shape[0], 128)
    for li in (1, 2, 3, 4):
        layer = []
        for bp in params[f"layer{li}"]:
            w = bp["conv1"]["w"].shape[0]
            blk = {"conv1": _prep_conv(bp["conv1"], carried, 3)}
            if "downsample" in bp:
                blk["downsample"] = _prep_conv(bp["downsample"], carried, 1)
            wpad = _round_up(w, 128)
            blk["conv2"] = _prep_conv(bp["conv2"], wpad, 3)
            layer.append(blk)
            carried = wpad
        proc[f"layer{li}"] = layer
    return proc


if __name__ == "__main__":
    key = jax.random.PRNGKey(0)
    kp, kx = jax.random.split(key)
    raw_params = init_params(kp)
    params = prepare_params(raw_params, in_ch=3)               # one-time weight prep
    x = jax.random.normal(kx, (2, 3, 32, 32), jnp.float32)     # NCHW, like PyTorch

    fwd = jax.jit(resnet_backbone_forward, static_argnums=(2,))
    outs = fwd(x, params, (1, 2, 3, 4))
    outs = jax.block_until_ready(outs)

    expected = [(2, 64, 1, 1), (2, 32, 2, 2), (2, 16, 4, 4), (2, 8, 8, 8)]
    assert [tuple(o.shape) for o in outs] == expected, [o.shape for o in outs]
    assert all(bool(jnp.all(jnp.isfinite(o))) for o in outs)
    print("KERNEL_OK")
</pallas_src>

<mosaic_0001>
module attributes {stable_mosaic.version = 11 : i64} {
  func.func @_matmul_stats_kernel(%arg0: i32, %arg1: memref<256x256xbf16, #tpu.memory_space<vmem>>, %arg2: memref<256x128xbf16, #tpu.memory_space<vmem>>, %arg3: memref<256x128xbf16, #tpu.memory_space<vmem>>, %arg4: memref<8x128xf32, #tpu.memory_space<vmem>>) attributes {dimension_semantics = [#tpu.dimension_semantics<parallel>], iteration_bounds = array<i64: 2>, scalar_prefetch = 0 : i64, scratch_operands = 0 : i64, tpu.core_type = #tpu.core_type<tc>, window_params = [{transform_indices = @transform_0, window_bounds = array<i64: 256, 256>}, {pipeline_mode = #tpu.pipeline_mode<synchronous>, transform_indices = @transform_1, window_bounds = array<i64: 256, 128>}, {transform_indices = @transform_2, window_bounds = array<i64: 256, 128>}, {transform_indices = @transform_3, window_bounds = array<i64: 8, 128>}]} {
    %c0 = arith.constant 0 : index
    %c0_0 = arith.constant 0 : index
    %0 = vector.load %arg1[%c0, %c0_0] : memref<256x256xbf16, #tpu.memory_space<vmem>>, vector<256x256xbf16>
    %c0_1 = arith.constant 0 : index
    %c0_2 = arith.constant 0 : index
    %1 = vector.load %arg2[%c0_1, %c0_2] : memref<256x128xbf16, #tpu.memory_space<vmem>>, vector<256x128xbf16>
    %cst = arith.constant dense<0.000000e+00> : vector<256x128xf32>
    %2 = tpu.matmul %0, %1, %cst {dimension_numbers = #tpu.dot_dimension_numbers<[1], [0], [0], [1], [0, 0, 1, 1], [], []>} : vector<256x256xbf16>, vector<256x128xbf16>, vector<256x128xf32> -> vector<256x128xf32>
    %3 = arith.truncf %2 : vector<256x128xf32> to vector<256x128xbf16>
    %c0_3 = arith.constant 0 : index
    %c0_4 = arith.constant 0 : index
    %4 = vector.load %arg3[%c0_3, %c0_4] : memref<256x128xbf16, #tpu.memory_space<vmem>>, vector<256x128xbf16>
    tpu.vector_store %arg3[%c0_3, %c0_4], %3 {strides = array<i32>} : memref<256x128xbf16, #tpu.memory_space<vmem>>, vector<256x128xbf16>,
    %cst_5 = arith.constant dense<0.000000e+00> : vector<128xf32>
    %5 = vector.multi_reduction <add>, %2, %cst_5 [0] : vector<256x128xf32> to vector<128xf32>
    %6 = vector.shape_cast %5 : vector<128xf32> to vector<1x128xf32>
    %c0_6 = arith.constant 0 : index
    %c0_7 = arith.constant 0 : index
    %7 = vector.load %arg4[%c0_6, %c0_7] : memref<8x128xf32, #tpu.memory_space<vmem>>, vector<1x128xf32>
    tpu.vector_store %arg4[%c0_6, %c0_7], %6 {strides = array<i32>} : memref<8x128xf32, #tpu.memory_space<vmem>>, vector<1x128xf32>,
    %8 = arith.mulf %2, %2 : vector<256x128xf32>
    %cst_8 = arith.constant dense<0.000000e+00> : vector<128xf32>
    %9 = vector.multi_reduction <add>, %8, %cst_8 [0] : vector<256x128xf32> to vector<128xf32>
    %10 = vector.shape_cast %9 : vector<128xf32> to vector<1x128xf32>
    %c1 = arith.constant 1 : index
    %c0_9 = arith.constant 0 : index
    %11 = vector.load %arg4[%c1, %c0_9] : memref<8x128xf32, #tpu.memory_space<vmem>>, vector<1x128xf32>
    tpu.vector_store %arg4[%c1, %c0_9], %10 {strides = array<i32>} : memref<8x128xf32, #tpu.memory_space<vmem>>, vector<1x128xf32>,
    return
  }
  func.func @transform_0(%arg0: i32) -> (i32, i32) {
    %c0_i32 = arith.constant 0 : i32
    %c0_i32_0 = arith.constant 0 : i32
    return %arg0, %c0_i32 : i32, i32
  }
  func.func @transform_1(%arg0: i32) -> (i32, i32) {
    %c0_i32 = arith.constant 0 : i32
    %c0_i32_0 = arith.constant 0 : i32
    %c0_i32_1 = arith.constant 0 : i32
    return %c0_i32, %c0_i32_0 : i32, i32
  }
  func.func @transform_2(%arg0: i32) -> (i32, i32) {
    %c0_i32 = arith.constant 0 : i32
    %c0_i32_0 = arith.constant 0 : i32
    return %arg0, %c0_i32 : i32, i32
  }
  func.func @transform_3(%arg0: i32) -> (i32, i32) {
    %c0_i32 = arith.constant 0 : i32
    %c0_i32_0 = arith.constant 0 : i32
    return %arg0, %c0_i32 : i32, i32
  }
}

module attributes {stable_mosaic.version = 11 : i64} {
  func.func @_bn_act_kernel(%arg0: i32, %arg1: memref<256x128xbf16, #tpu.memory_space<vmem>>, %arg2: memref<1x128xf32, #tpu.memory_space<vmem>>, %arg3: memref<1x128xf32, #tpu.memory_space<vmem>>, %arg4: memref<256x128xbf16, #tpu.memory_space<vmem>>) attributes {dimension_semantics = [#tpu.dimension_semantics<parallel>], iteration_bounds = array<i64: 2>, scalar_prefetch = 0 : i64, scratch_operands = 0 : i64, tpu.core_type = #tpu.core_type<tc>, window_params = [{transform_indices = @transform_0, window_bounds = array<i64: 256, 128>}, {pipeline_mode = #tpu.pipeline_mode<synchronous>, transform_indices = @transform_1, window_bounds = array<i64: 1, 128>}, {pipeline_mode = #tpu.pipeline_mode<synchronous>, transform_indices = @transform_2, window_bounds = array<i64: 1, 128>}, {transform_indices = @transform_3, window_bounds = array<i64: 256, 128>}]} {
    %c0 = arith.constant 0 : index
    %c0_0 = arith.constant 0 : index
    %0 = vector.load %arg1[%c0, %c0_0] : memref<256x128xbf16, #tpu.memory_space<vmem>>, vector<256x128xbf16>
    %1 = arith.extf %0 : vector<256x128xbf16> to vector<256x128xf32>
    %c0_1 = arith.constant 0 : index
    %c0_2 = arith.constant 0 : index
    %2 = vector.load %arg2[%c0_1, %c0_2] : memref<1x128xf32, #tpu.memory_space<vmem>>, vector<1x128xf32>
    %3 = vector.broadcast %2 : vector<1x128xf32> to vector<256x128xf32>
    %4 = arith.mulf %1, %3 : vector<256x128xf32>
    %c0_3 = arith.constant 0 : index
    %c0_4 = arith.constant 0 : index
    %5 = vector.load %arg3[%c0_3, %c0_4] : memref<1x128xf32, #tpu.memory_space<vmem>>, vector<1x128xf32>
    %6 = vector.broadcast %5 : vector<1x128xf32> to vector<256x128xf32>
    %7 = arith.addf %4, %6 : vector<256x128xf32>
    %cst = arith.constant 0.000000e+00 : f32
    %8 = vector.broadcast %cst : f32 to vector<256x128xf32>
    %9 = arith.maximumf %7, %8 : vector<256x128xf32>
    %10 = arith.truncf %9 : vector<256x128xf32> to vector<256x128xbf16>
    %c0_5 = arith.constant 0 : index
    %c0_6 = arith.constant 0 : index
    %11 = vector.load %arg4[%c0_5, %c0_6] : memref<256x128xbf16, #tpu.memory_space<vmem>>, vector<256x128xbf16>
    tpu.vector_store %arg4[%c0_5, %c0_6], %10 {strides = array<i32>} : memref<256x128xbf16, #tpu.memory_space<vmem>>, vector<256x128xbf16>,
    return
  }
  func.func @transform_0(%arg0: i32) -> (i32, i32) {
    %c0_i32 = arith.constant 0 : i32
    %c0_i32_0 = arith.constant 0 : i32
    return %arg0, %c0_i32 : i32, i32
  }
  func.func @transform_1(%arg0: i32) -> (i32, i32) {
    %c0_i32 = arith.constant 0 : i32
    %c0_i32_0 = arith.constant 0 : i32
    %c0_i32_1 = arith.constant 0 : i32
    return %c0_i32, %c0_i32_0 : i32, i32
  }
  func.func @transform_2(%arg0: i32) -> (i32, i32) {
    %c0_i32 = arith.constant 0 : i32
    %c0_i32_0 = arith.constant 0 : i32
    %c0_i32_1 = arith.constant 0 : i32
    return %c0_i32, %c0_i32_0 : i32, i32
  }
  func.func @transform_3(%arg0: i32) -> (i32, i32) {
    %c0_i32 = arith.constant 0 : i32
    %c0_i32_0 = arith.constant 0 : i32
    return %arg0, %c0_i32 : i32, i32
  }
}

module attributes {stable_mosaic.version = 11 : i64} {
  func.func @_maxpool_kernel(%arg0: i32, %arg1: memref<64x128xbf16, #tpu.memory_space<vmem>>, %arg2: memref<64x128xbf16, #tpu.memory_space<vmem>>, %arg3: memref<64x128xbf16, #tpu.memory_space<vmem>>, %arg4: memref<64x128xbf16, #tpu.memory_space<vmem>>, %arg5: memref<64x128xbf16, #tpu.memory_space<vmem>>, %arg6: memref<64x128xbf16, #tpu.memory_space<vmem>>, %arg7: memref<64x128xbf16, #tpu.memory_space<vmem>>, %arg8: memref<64x128xbf16, #tpu.memory_space<vmem>>, %arg9: memref<64x128xbf16, #tpu.memory_space<vmem>>, %arg10: memref<64x128xbf16, #tpu.memory_space<vmem>>) attributes {dimension_semantics = [#tpu.dimension_semantics<parallel>], iteration_bounds = array<i64: 2>, scalar_prefetch = 0 : i64, scratch_operands = 0 : i64, tpu.core_type = #tpu.core_type<tc>, window_params = [{transform_indices = @transform_0, window_bounds = array<i64: 64, 128>}, {transform_indices = @transform_1, window_bounds = array<i64: 64, 128>}, {transform_indices = @transform_2, window_bounds = array<i64: 64, 128>}, {transform_indices = @transform_3, window_bounds = array<i64: 64, 128>}, {transform_indices = @transform_4, window_bounds = array<i64: 64, 128>}, {transform_indices = @transform_5, window_bounds = array<i64: 64, 128>}, {transform_indices = @transform_6, window_bounds = array<i64: 64, 128>}, {transform_indices = @transform_7, window_bounds = array<i64: 64, 128>}, {transform_indices = @transform_8, window_bounds = array<i64: 64, 128>}, {transform_indices = @transform_9, window_bounds = array<i64: 64, 128>}]} {
    %c0 = arith.constant 0 : index
    %c0_0 = arith.constant 0 : index
    %0 = vector.load %arg1[%c0, %c0_0] : memref<64x128xbf16, #tpu.memory_space<vmem>>, vector<64x128xbf16>
    %1 = arith.extf %0 : vector<64x128xbf16> to vector<64x128xf32>
    %c0_1 = arith.constant 0 : index
    %c0_2 = arith.constant 0 : index
    %2 = vector.load %arg2[%c0_1, %c0_2] : memref<64x128xbf16, #tpu.memory_space<vmem>>, vector<64x128xbf16>
    %3 = arith.extf %2 : vector<64x128xbf16> to vector<64x128xf32>
    %4 = arith.maximumf %1, %3 : vector<64x128xf32>
    %c0_3 = arith.constant 0 : index
    %c0_4 = arith.constant 0 : index
    %5 = vector.load %arg3[%c0_3, %c0_4] : memref<64x128xbf16, #tpu.memory_space<vmem>>, vector<64x128xbf16>
    %6 = arith.extf %5 : vector<64x128xbf16> to vector<64x128xf32>
    %7 = arith.maximumf %4, %6 : vector<64x128xf32>
    %c0_5 = arith.constant 0 : index
    %c0_6 = arith.constant 0 : index
    %8 = vector.load %arg4[%c0_5, %c0_6] : memref<64x128xbf16, #tpu.memory_space<vmem>>, vector<64x128xbf16>
    %9 = arith.extf %8 : vector<64x128xbf16> to vector<64x128xf32>
    %10 = arith.maximumf %7, %9 : vector<64x128xf32>
    %c0_7 = arith.constant 0 : index
    %c0_8 = arith.constant 0 : index
    %11 = vector.load %arg5[%c0_7, %c0_8] : memref<64x128xbf16, #tpu.memory_space<vmem>>, vector<64x128xbf16>
    %12 = arith.extf %11 : vector<64x128xbf16> to vector<64x128xf32>
    %13 = arith.maximumf %10, %12 : vector<64x128xf32>
    %c0_9 = arith.constant 0 : index
    %c0_10 = arith.constant 0 : index
    %14 = vector.load %arg6[%c0_9, %c0_10] : memref<64x128xbf16, #tpu.memory_space<vmem>>, vector<64x128xbf16>
    %15 = arith.extf %14 : vector<64x128xbf16> to vector<64x128xf32>
    %16 = arith.maximumf %13, %15 : vector<64x128xf32>
    %c0_11 = arith.constant 0 : index
    %c0_12 = arith.constant 0 : index
    %17 = vector.load %arg7[%c0_11, %c0_12] : memref<64x128xbf16, #tpu.memory_space<vmem>>, vector<64x128xbf16>
    %18 = arith.extf %17 : vector<64x128xbf16> to vector<64x128xf32>
    %19 = arith.maximumf %16, %18 : vector<64x128xf32>
    %c0_13 = arith.constant 0 : index
    %c0_14 = arith.constant 0 : index
    %20 = vector.load %arg8[%c0_13, %c0_14] : memref<64x128xbf16, #tpu.memory_space<vmem>>, vector<64x128xbf16>
    %21 = arith.extf %20 : vector<64x128xbf16> to vector<64x128xf32>
    %22 = arith.maximumf %19, %21 : vector<64x128xf32>
    %c0_15 = arith.constant 0 : index
    %c0_16 = arith.constant 0 : index
    %23 = vector.load %arg9[%c0_15, %c0_16] : memref<64x128xbf16, #tpu.memory_space<vmem>>, vector<64x128xbf16>
    %24 = arith.extf %23 : vector<64x128xbf16> to vector<64x128xf32>
    %25 = arith.maximumf %22, %24 : vector<64x128xf32>
    %26 = arith.truncf %25 : vector<64x128xf32> to vector<64x128xbf16>
    %c0_17 = arith.constant 0 : index
    %c0_18 = arith.constant 0 : index
    %27 = vector.load %arg10[%c0_17, %c0_18] : memref<64x128xbf16, #tpu.memory_space<vmem>>, vector<64x128xbf16>
    tpu.vector_store %arg10[%c0_17, %c0_18], %26 {strides = array<i32>} : memref<64x128xbf16, #tpu.memory_space<vmem>>, vector<64x128xbf16>,
    return
  }
  func.func @transform_0(%arg0: i32) -> (i32, i32) {
    %c0_i32 = arith.constant 0 : i32
    %c0_i32_0 = arith.constant 0 : i32
    return %arg0, %c0_i32 : i32, i32
  }
  func.func @transform_1(%arg0: i32) -> (i32, i32) {
    %c0_i32 = arith.constant 0 : i32
    %c0_i32_0 = arith.constant 0 : i32
    return %arg0, %c0_i32 : i32, i32
  }
  func.func @transform_2(%arg0: i32) -> (i32, i32) {
    %c0_i32 = arith.constant 0 : i32
    %c0_i32_0 = arith.constant 0 : i32
    return %arg0, %c0_i32 : i32, i32
  }
  func.func @transform_3(%arg0: i32) -> (i32, i32) {
    %c0_i32 = arith.constant 0 : i32
    %c0_i32_0 = arith.constant 0 : i32
    return %arg0, %c0_i32 : i32, i32
  }
  func.func @transform_4(%arg0: i32) -> (i32, i32) {
    %c0_i32 = arith.constant 0 : i32
    %c0_i32_0 = arith.constant 0 : i32
    return %arg0, %c0_i32 : i32, i32
  }
  func.func @transform_5(%arg0: i32) -> (i32, i32) {
    %c0_i32 = arith.constant 0 : i32
    %c0_i32_0 = arith.constant 0 : i32
    return %arg0, %c0_i32 : i32, i32
  }
  func.func @transform_6(%arg0: i32) -> (i32, i32) {
    %c0_i32 = arith.constant 0 : i32
    %c0_i32_0 = arith.constant 0 : i32
    return %arg0, %c0_i32 : i32, i32
  }
  func.func @transform_7(%arg0: i32) -> (i32, i32) {
    %c0_i32 = arith.constant 0 : i32
    %c0_i32_0 = arith.constant 0 : i32
    return %arg0, %c0_i32 : i32, i32
  }
  func.func @transform_8(%arg0: i32) -> (i32, i32) {
    %c0_i32 = arith.constant 0 : i32
    %c0_i32_0 = arith.constant 0 : i32
    return %arg0, %c0_i32 : i32, i32
  }
  func.func @transform_9(%arg0: i32) -> (i32, i32) {
    %c0_i32 = arith.constant 0 : i32
    %c0_i32_0 = arith.constant 0 : i32
    return %arg0, %c0_i32 : i32, i32
  }
}

module attributes {stable_mosaic.version = 11 : i64} {
  func.func @_bn_act_kernel(%arg0: i32, %arg1: memref<64x128xbf16, #tpu.memory_space<vmem>>, %arg2: memref<1x128xf32, #tpu.memory_space<vmem>>, %arg3: memref<1x128xf32, #tpu.memory_space<vmem>>, %arg4: memref<64x128xbf16, #tpu.memory_space<vmem>>) attributes {dimension_semantics = [#tpu.dimension_semantics<parallel>], iteration_bounds = array<i64: 2>, scalar_prefetch = 0 : i64, scratch_operands = 0 : i64, tpu.core_type = #tpu.core_type<tc>, window_params = [{transform_indices = @transform_0, window_bounds = array<i64: 64, 128>}, {pipeline_mode = #tpu.pipeline_mode<synchronous>, transform_indices = @transform_1, window_bounds = array<i64: 1, 128>}, {pipeline_mode = #tpu.pipeline_mode<synchronous>, transform_indices = @transform_2, window_bounds = array<i64: 1, 128>}, {transform_indices = @transform_3, window_bounds = array<i64: 64, 128>}]} {
    %c0 = arith.constant 0 : index
    %c0_0 = arith.constant 0 : index
    %0 = vector.load %arg1[%c0, %c0_0] : memref<64x128xbf16, #tpu.memory_space<vmem>>, vector<64x128xbf16>
    %1 = arith.extf %0 : vector<64x128xbf16> to vector<64x128xf32>
    %c0_1 = arith.constant 0 : index
    %c0_2 = arith.constant 0 : index
    %2 = vector.load %arg2[%c0_1, %c0_2] : memref<1x128xf32, #tpu.memory_space<vmem>>, vector<1x128xf32>
    %3 = vector.broadcast %2 : vector<1x128xf32> to vector<64x128xf32>
    %4 = arith.mulf %1, %3 : vector<64x128xf32>
    %c0_3 = arith.constant 0 : index
    %c0_4 = arith.constant 0 : index
    %5 = vector.load %arg3[%c0_3, %c0_4] : memref<1x128xf32, #tpu.memory_space<vmem>>, vector<1x128xf32>
    %6 = vector.broadcast %5 : vector<1x128xf32> to vector<64x128xf32>
    %7 = arith.addf %4, %6 : vector<64x128xf32>
    %cst = arith.constant 0.000000e+00 : f32
    %8 = vector.broadcast %cst : f32 to vector<64x128xf32>
    %9 = arith.maximumf %7, %8 : vector<64x128xf32>
    %10 = arith.truncf %9 : vector<64x128xf32> to vector<64x128xbf16>
    %c0_5 = arith.constant 0 : index
    %c0_6 = arith.constant 0 : index
    %11 = vector.load %arg4[%c0_5, %c0_6] : memref<64x128xbf16, #tpu.memory_space<vmem>>, vector<64x128xbf16>
    tpu.vector_store %arg4[%c0_5, %c0_6], %10 {strides = array<i32>} : memref<64x128xbf16, #tpu.memory_space<vmem>>, vector<64x128xbf16>,
    return
  }
  func.func @transform_0(%arg0: i32) -> (i32, i32) {
    %c0_i32 = arith.constant 0 : i32
    %c0_i32_0 = arith.constant 0 : i32
    return %arg0, %c0_i32 : i32, i32
  }
  func.func @transform_1(%arg0: i32) -> (i32, i32) {
    %c0_i32 = arith.constant 0 : i32
    %c0_i32_0 = arith.constant 0 : i32
    %c0_i32_1 = arith.constant 0 : i32
    return %c0_i32, %c0_i32_0 : i32, i32
  }
  func.func @transform_2(%arg0: i32) -> (i32, i32) {
    %c0_i32 = arith.constant 0 : i32
    %c0_i32_0 = arith.constant 0 : i32
    %c0_i32_1 = arith.constant 0 : i32
    return %c0_i32, %c0_i32_0 : i32, i32
  }
  func.func @transform_3(%arg0: i32) -> (i32, i32) {
    %c0_i32 = arith.constant 0 : i32
    %c0_i32_0 = arith.constant 0 : i32
    return %arg0, %c0_i32 : i32, i32
  }
}

module attributes {stable_mosaic.version = 11 : i64} {
  func.func @_matmul_stats_kernel(%arg0: i32, %arg1: memref<64x1152xbf16, #tpu.memory_space<vmem>>, %arg2: memref<1152x128xbf16, #tpu.memory_space<vmem>>, %arg3: memref<64x128xbf16, #tpu.memory_space<vmem>>, %arg4: memref<8x128xf32, #tpu.memory_space<vmem>>) attributes {dimension_semantics = [#tpu.dimension_semantics<parallel>], iteration_bounds = array<i64: 2>, scalar_prefetch = 0 : i64, scratch_operands = 0 : i64, tpu.core_type = #tpu.core_type<tc>, window_params = [{transform_indices = @transform_0, window_bounds = array<i64: 64, 1152>}, {pipeline_mode = #tpu.pipeline_mode<synchronous>, transform_indices = @transform_1, window_bounds = array<i64: 1152, 128>}, {transform_indices = @transform_2, window_bounds = array<i64: 64, 128>}, {transform_indices = @transform_3, window_bounds = array<i64: 8, 128>}]} {
    %c0 = arith.constant 0 : index
    %c0_0 = arith.constant 0 : index
    %0 = vector.load %arg1[%c0, %c0_0] : memref<64x1152xbf16, #tpu.memory_space<vmem>>, vector<64x1152xbf16>
    %c0_1 = arith.constant 0 : index
    %c0_2 = arith.constant 0 : index
    %1 = vector.load %arg2[%c0_1, %c0_2] : memref<1152x128xbf16, #tpu.memory_space<vmem>>, vector<1152x128xbf16>
    %cst = arith.constant dense<0.000000e+00> : vector<64x128xf32>
    %2 = tpu.matmul %0, %1, %cst {dimension_numbers = #tpu.dot_dimension_numbers<[1], [0], [0], [1], [0, 0, 1, 1], [], []>} : vector<64x1152xbf16>, vector<1152x128xbf16>, vector<64x128xf32> -> vector<64x128xf32>
    %3 = arith.truncf %2 : vector<64x128xf32> to vector<64x128xbf16>
    %c0_3 = arith.constant 0 : index
    %c0_4 = arith.constant 0 : index
    %4 = vector.load %arg3[%c0_3, %c0_4] : memref<64x128xbf16, #tpu.memory_space<vmem>>, vector<64x128xbf16>
    tpu.vector_store %arg3[%c0_3, %c0_4], %3 {strides = array<i32>} : memref<64x128xbf16, #tpu.memory_space<vmem>>, vector<64x128xbf16>,
    %cst_5 = arith.constant dense<0.000000e+00> : vector<128xf32>
    %5 = vector.multi_reduction <add>, %2, %cst_5 [0] : vector<64x128xf32> to vector<128xf32>
    %6 = vector.shape_cast %5 : vector<128xf32> to vector<1x128xf32>
    %c0_6 = arith.constant 0 : index
    %c0_7 = arith.constant 0 : index
    %7 = vector.load %arg4[%c0_6, %c0_7] : memref<8x128xf32, #tpu.memory_space<vmem>>, vector<1x128xf32>
    tpu.vector_store %arg4[%c0_6, %c0_7], %6 {strides = array<i32>} : memref<8x128xf32, #tpu.memory_space<vmem>>, vector<1x128xf32>,
    %8 = arith.mulf %2, %2 : vector<64x128xf32>
    %cst_8 = arith.constant dense<0.000000e+00> : vector<128xf32>
    %9 = vector.multi_reduction <add>, %8, %cst_8 [0] : vector<64x128xf32> to vector<128xf32>
    %10 = vector.shape_cast %9 : vector<128xf32> to vector<1x128xf32>
    %c1 = arith.constant 1 : index
    %c0_9 = arith.constant 0 : index
    %11 = vector.load %arg4[%c1, %c0_9] : memref<8x128xf32, #tpu.memory_space<vmem>>, vector<1x128xf32>
    tpu.vector_store %arg4[%c1, %c0_9], %10 {strides = array<i32>} : memref<8x128xf32, #tpu.memory_space<vmem>>, vector<1x128xf32>,
    return
  }
  func.func @transform_0(%arg0: i32) -> (i32, i32) {
    %c0_i32 = arith.constant 0 : i32
    %c0_i32_0 = arith.constant 0 : i32
    return %arg0, %c0_i32 : i32, i32
  }
  func.func @transform_1(%arg0: i32) -> (i32, i32) {
    %c0_i32 = arith.constant 0 : i32
    %c0_i32_0 = arith.constant 0 : i32
    %c0_i32_1 = arith.constant 0 : i32
    return %c0_i32, %c0_i32_0 : i32, i32
  }
  func.func @transform_2(%arg0: i32) -> (i32, i32) {
    %c0_i32 = arith.constant 0 : i32
    %c0_i32_0 = arith.constant 0 : i32
    return %arg0, %c0_i32 : i32, i32
  }
  func.func @transform_3(%arg0: i32) -> (i32, i32) {
    %c0_i32 = arith.constant 0 : i32
    %c0_i32_0 = arith.constant 0 : i32
    return %arg0, %c0_i32 : i32, i32
  }
}

module attributes {stable_mosaic.version = 11 : i64} {
  func.func @_bn_act_res_kernel(%arg0: i32, %arg1: memref<64x128xbf16, #tpu.memory_space<vmem>>, %arg2: memref<1x128xf32, #tpu.memory_space<vmem>>, %arg3: memref<1x128xf32, #tpu.memory_space<vmem>>, %arg4: memref<64x128xbf16, #tpu.memory_space<vmem>>, %arg5: memref<64x128xbf16, #tpu.memory_space<vmem>>) attributes {dimension_semantics = [#tpu.dimension_semantics<parallel>], iteration_bounds = array<i64: 2>, scalar_prefetch = 0 : i64, scratch_operands = 0 : i64, tpu.core_type = #tpu.core_type<tc>, window_params = [{transform_indices = @transform_0, window_bounds = array<i64: 64, 128>}, {pipeline_mode = #tpu.pipeline_mode<synchronous>, transform_indices = @transform_1, window_bounds = array<i64: 1, 128>}, {pipeline_mode = #tpu.pipeline_mode<synchronous>, transform_indices = @transform_2, window_bounds = array<i64: 1, 128>}, {transform_indices = @transform_3, window_bounds = array<i64: 64, 128>}, {transform_indices = @transform_4, window_bounds = array<i64: 64, 128>}]} {
    %c0 = arith.constant 0 : index
    %c0_0 = arith.constant 0 : index
    %0 = vector.load %arg1[%c0, %c0_0] : memref<64x128xbf16, #tpu.memory_space<vmem>>, vector<64x128xbf16>
    %1 = arith.extf %0 : vector<64x128xbf16> to vector<64x128xf32>
    %c0_1 = arith.constant 0 : index
    %c0_2 = arith.constant 0 : index
    %2 = vector.load %arg2[%c0_1, %c0_2] : memref<1x128xf32, #tpu.memory_space<vmem>>, vector<1x128xf32>
    %3 = vector.broadcast %2 : vector<1x128xf32> to vector<64x128xf32>
    %4 = arith.mulf %1, %3 : vector<64x128xf32>
    %c0_3 = arith.constant 0 : index
    %c0_4 = arith.constant 0 : index
    %5 = vector.load %arg3[%c0_3, %c0_4] : memref<1x128xf32, #tpu.memory_space<vmem>>, vector<1x128xf32>
    %6 = vector.broadcast %5 : vector<1x128xf32> to vector<64x128xf32>
    %7 = arith.addf %4, %6 : vector<64x128xf32>
    %c0_5 = arith.constant 0 : index
    %c0_6 = arith.constant 0 : index
    %8 = vector.load %arg4[%c0_5, %c0_6] : memref<64x128xbf16, #tpu.memory_space<vmem>>, vector<64x128xbf16>
    %9 = arith.extf %8 : vector<64x128xbf16> to vector<64x128xf32>
    %10 = arith.addf %7, %9 : vector<64x128xf32>
    %cst = arith.constant 0.000000e+00 : f32
    %11 = vector.broadcast %cst : f32 to vector<64x128xf32>
    %12 = arith.maximumf %10, %11 : vector<64x128xf32>
    %13 = arith.truncf %12 : vector<64x128xf32> to vector<64x128xbf16>
    %c0_7 = arith.constant 0 : index
    %c0_8 = arith.constant 0 : index
    %14 = vector.load %arg5[%c0_7, %c0_8] : memref<64x128xbf16, #tpu.memory_space<vmem>>, vector<64x128xbf16>
    tpu.vector_store %arg5[%c0_7, %c0_8], %13 {strides = array<i32>} : memref<64x128xbf16, #tpu.memory_space<vmem>>, vector<64x128xbf16>,
    return
  }
  func.func @transform_0(%arg0: i32) -> (i32, i32) {
    %c0_i32 = arith.constant 0 : i32
    %c0_i32_0 = arith.constant 0 : i32
    return %arg0, %c0_i32 : i32, i32
  }
  func.func @transform_1(%arg0: i32) -> (i32, i32) {
    %c0_i32 = arith.constant 0 : i32
    %c0_i32_0 = arith.constant 0 : i32
    %c0_i32_1 = arith.constant 0 : i32
    return %c0_i32, %c0_i32_0 : i32, i32
  }
  func.func @transform_2(%arg0: i32) -> (i32, i32) {
    %c0_i32 = arith.constant 0 : i32
    %c0_i32_0 = arith.constant 0 : i32
    %c0_i32_1 = arith.constant 0 : i32
    return %c0_i32, %c0_i32_0 : i32, i32
  }
  func.func @transform_3(%arg0: i32) -> (i32, i32) {
    %c0_i32 = arith.constant 0 : i32
    %c0_i32_0 = arith.constant 0 : i32
    return %arg0, %c0_i32 : i32, i32
  }
  func.func @transform_4(%arg0: i32) -> (i32, i32) {
    %c0_i32 = arith.constant 0 : i32
    %c0_i32_0 = arith.constant 0 : i32
    return %arg0, %c0_i32 : i32, i32
  }
}

module attributes {stable_mosaic.version = 11 : i64} {
  func.func @_matmul_stats_kernel(%arg0: i32, %arg1: memref<16x128xbf16, #tpu.memory_space<vmem>>, %arg2: memref<128x128xbf16, #tpu.memory_space<vmem>>, %arg3: memref<16x128xbf16, #tpu.memory_space<vmem>>, %arg4: memref<8x128xf32, #tpu.memory_space<vmem>>) attributes {dimension_semantics = [#tpu.dimension_semantics<parallel>], iteration_bounds = array<i64: 2>, scalar_prefetch = 0 : i64, scratch_operands = 0 : i64, tpu.core_type = #tpu.core_type<tc>, window_params = [{transform_indices = @transform_0, window_bounds = array<i64: 16, 128>}, {pipeline_mode = #tpu.pipeline_mode<synchronous>, transform_indices = @transform_1, window_bounds = array<i64: 128, 128>}, {transform_indices = @transform_2, window_bounds = array<i64: 16, 128>}, {transform_indices = @transform_3, window_bounds = array<i64: 8, 128>}]} {
    %c0 = arith.constant 0 : index
    %c0_0 = arith.constant 0 : index
    %0 = vector.load %arg1[%c0, %c0_0] : memref<16x128xbf16, #tpu.memory_space<vmem>>, vector<16x128xbf16>
    %c0_1 = arith.constant 0 : index
    %c0_2 = arith.constant 0 : index
    %1 = vector.load %arg2[%c0_1, %c0_2] : memref<128x128xbf16, #tpu.memory_space<vmem>>, vector<128x128xbf16>
    %cst = arith.constant dense<0.000000e+00> : vector<16x128xf32>
    %2 = tpu.matmul %0, %1, %cst {dimension_numbers = #tpu.dot_dimension_numbers<[1], [0], [0], [1], [0, 0, 1, 1], [], []>} : vector<16x128xbf16>, vector<128x128xbf16>, vector<16x128xf32> -> vector<16x128xf32>
    %3 = arith.truncf %2 : vector<16x128xf32> to vector<16x128xbf16>
    %c0_3 = arith.constant 0 : index
    %c0_4 = arith.constant 0 : index
    %4 = vector.load %arg3[%c0_3, %c0_4] : memref<16x128xbf16, #tpu.memory_space<vmem>>, vector<16x128xbf16>
    tpu.vector_store %arg3[%c0_3, %c0_4], %3 {strides = array<i32>} : memref<16x128xbf16, #tpu.memory_space<vmem>>, vector<16x128xbf16>,
    %cst_5 = arith.constant dense<0.000000e+00> : vector<128xf32>
    %5 = vector.multi_reduction <add>, %2, %cst_5 [0] : vector<16x128xf32> to vector<128xf32>
    %6 = vector.shape_cast %5 : vector<128xf32> to vector<1x128xf32>
    %c0_6 = arith.constant 0 : index
    %c0_7 = arith.constant 0 : index
    %7 = vector.load %arg4[%c0_6, %c0_7] : memref<8x128xf32, #tpu.memory_space<vmem>>, vector<1x128xf32>
    tpu.vector_store %arg4[%c0_6, %c0_7], %6 {strides = array<i32>} : memref<8x128xf32, #tpu.memory_space<vmem>>, vector<1x128xf32>,
    %8 = arith.mulf %2, %2 : vector<16x128xf32>
    %cst_8 = arith.constant dense<0.000000e+00> : vector<128xf32>
    %9 = vector.multi_reduction <add>, %8, %cst_8 [0] : vector<16x128xf32> to vector<128xf32>
    %10 = vector.shape_cast %9 : vector<128xf32> to vector<1x128xf32>
    %c1 = arith.constant 1 : index
    %c0_9 = arith.constant 0 : index
    %11 = vector.load %arg4[%c1, %c0_9] : memref<8x128xf32, #tpu.memory_space<vmem>>, vector<1x128xf32>
    tpu.vector_store %arg4[%c1, %c0_9], %10 {strides = array<i32>} : memref<8x128xf32, #tpu.memory_space<vmem>>, vector<1x128xf32>,
    return
  }
  func.func @transform_0(%arg0: i32) -> (i32, i32) {
    %c0_i32 = arith.constant 0 : i32
    %c0_i32_0 = arith.constant 0 : i32
    return %arg0, %c0_i32 : i32, i32
  }
  func.func @transform_1(%arg0: i32) -> (i32, i32) {
    %c0_i32 = arith.constant 0 : i32
    %c0_i32_0 = arith.constant 0 : i32
    %c0_i32_1 = arith.constant 0 : i32
    return %c0_i32, %c0_i32_0 : i32, i32
  }
  func.func @transform_2(%arg0: i32) -> (i32, i32) {
    %c0_i32 = arith.constant 0 : i32
    %c0_i32_0 = arith.constant 0 : i32
    return %arg0, %c0_i32 : i32, i32
  }
  func.func @transform_3(%arg0: i32) -> (i32, i32) {
    %c0_i32 = arith.constant 0 : i32
    %c0_i32_0 = arith.constant 0 : i32
    return %arg0, %c0_i32 : i32, i32
  }
}

module attributes {stable_mosaic.version = 11 : i64} {
  func.func @_bn_act_kernel(%arg0: i32, %arg1: memref<16x128xbf16, #tpu.memory_space<vmem>>, %arg2: memref<1x128xf32, #tpu.memory_space<vmem>>, %arg3: memref<1x128xf32, #tpu.memory_space<vmem>>, %arg4: memref<16x128xbf16, #tpu.memory_space<vmem>>) attributes {dimension_semantics = [#tpu.dimension_semantics<parallel>], iteration_bounds = array<i64: 2>, scalar_prefetch = 0 : i64, scratch_operands = 0 : i64, tpu.core_type = #tpu.core_type<tc>, window_params = [{transform_indices = @transform_0, window_bounds = array<i64: 16, 128>}, {pipeline_mode = #tpu.pipeline_mode<synchronous>, transform_indices = @transform_1, window_bounds = array<i64: 1, 128>}, {pipeline_mode = #tpu.pipeline_mode<synchronous>, transform_indices = @transform_2, window_bounds = array<i64: 1, 128>}, {transform_indices = @transform_3, window_bounds = array<i64: 16, 128>}]} {
    %c0 = arith.constant 0 : index
    %c0_0 = arith.constant 0 : index
    %0 = vector.load %arg1[%c0, %c0_0] : memref<16x128xbf16, #tpu.memory_space<vmem>>, vector<16x128xbf16>
    %1 = arith.extf %0 : vector<16x128xbf16> to vector<16x128xf32>
    %c0_1 = arith.constant 0 : index
    %c0_2 = arith.constant 0 : index
    %2 = vector.load %arg2[%c0_1, %c0_2] : memref<1x128xf32, #tpu.memory_space<vmem>>, vector<1x128xf32>
    %3 = vector.broadcast %2 : vector<1x128xf32> to vector<16x128xf32>
    %4 = arith.mulf %1, %3 : vector<16x128xf32>
    %c0_3 = arith.constant 0 : index
    %c0_4 = arith.constant 0 : index
    %5 = vector.load %arg3[%c0_3, %c0_4] : memref<1x128xf32, #tpu.memory_space<vmem>>, vector<1x128xf32>
    %6 = vector.broadcast %5 : vector<1x128xf32> to vector<16x128xf32>
    %7 = arith.addf %4, %6 : vector<16x128xf32>
    %8 = arith.truncf %7 : vector<16x128xf32> to vector<16x128xbf16>
    %c0_5 = arith.constant 0 : index
    %c0_6 = arith.constant 0 : index
    %9 = vector.load %arg4[%c0_5, %c0_6] : memref<16x128xbf16, #tpu.memory_space<vmem>>, vector<16x128xbf16>
    tpu.vector_store %arg4[%c0_5, %c0_6], %8 {strides = array<i32>} : memref<16x128xbf16, #tpu.memory_space<vmem>>, vector<16x128xbf16>,
    return
  }
  func.func @transform_0(%arg0: i32) -> (i32, i32) {
    %c0_i32 = arith.constant 0 : i32
    %c0_i32_0 = arith.constant 0 : i32
    return %arg0, %c0_i32 : i32, i32
  }
  func.func @transform_1(%arg0: i32) -> (i32, i32) {
    %c0_i32 = arith.constant 0 : i32
    %c0_i32_0 = arith.constant 0 : i32
    %c0_i32_1 = arith.constant 0 : i32
    return %c0_i32, %c0_i32_0 : i32, i32
  }
  func.func @transform_2(%arg0: i32) -> (i32, i32) {
    %c0_i32 = arith.constant 0 : i32
    %c0_i32_0 = arith.constant 0 : i32
    %c0_i32_1 = arith.constant 0 : i32
    return %c0_i32, %c0_i32_0 : i32, i32
  }
  func.func @transform_3(%arg0: i32) -> (i32, i32) {
    %c0_i32 = arith.constant 0 : i32
    %c0_i32_0 = arith.constant 0 : i32
    return %arg0, %c0_i32 : i32, i32
  }
}

module attributes {stable_mosaic.version = 11 : i64} {
  func.func @_bn_act_kernel(%arg0: i32, %arg1: memref<16x128xbf16, #tpu.memory_space<vmem>>, %arg2: memref<1x128xf32, #tpu.memory_space<vmem>>, %arg3: memref<1x128xf32, #tpu.memory_space<vmem>>, %arg4: memref<16x128xbf16, #tpu.memory_space<vmem>>) attributes {dimension_semantics = [#tpu.dimension_semantics<parallel>], iteration_bounds = array<i64: 2>, scalar_prefetch = 0 : i64, scratch_operands = 0 : i64, tpu.core_type = #tpu.core_type<tc>, window_params = [{transform_indices = @transform_0, window_bounds = array<i64: 16, 128>}, {pipeline_mode = #tpu.pipeline_mode<synchronous>, transform_indices = @transform_1, window_bounds = array<i64: 1, 128>}, {pipeline_mode = #tpu.pipeline_mode<synchronous>, transform_indices = @transform_2, window_bounds = array<i64: 1, 128>}, {transform_indices = @transform_3, window_bounds = array<i64: 16, 128>}]} {
    %c0 = arith.constant 0 : index
    %c0_0 = arith.constant 0 : index
    %0 = vector.load %arg1[%c0, %c0_0] : memref<16x128xbf16, #tpu.memory_space<vmem>>, vector<16x128xbf16>
    %1 = arith.extf %0 : vector<16x128xbf16> to vector<16x128xf32>
    %c0_1 = arith.constant 0 : index
    %c0_2 = arith.constant 0 : index
    %2 = vector.load %arg2[%c0_1, %c0_2] : memref<1x128xf32, #tpu.memory_space<vmem>>, vector<1x128xf32>
    %3 = vector.broadcast %2 : vector<1x128xf32> to vector<16x128xf32>
    %4 = arith.mulf %1, %3 : vector<16x128xf32>
    %c0_3 = arith.constant 0 : index
    %c0_4 = arith.constant 0 : index
    %5 = vector.load %arg3[%c0_3, %c0_4] : memref<1x128xf32, #tpu.memory_space<vmem>>, vector<1x128xf32>
    %6 = vector.broadcast %5 : vector<1x128xf32> to vector<16x128xf32>
    %7 = arith.addf %4, %6 : vector<16x128xf32>
    %cst = arith.constant 0.000000e+00 : f32
    %8 = vector.broadcast %cst : f32 to vector<16x128xf32>
    %9 = arith.maximumf %7, %8 : vector<16x128xf32>
    %10 = arith.truncf %9 : vector<16x128xf32> to vector<16x128xbf16>
    %c0_5 = arith.constant 0 : index
    %c0_6 = arith.constant 0 : index
    %11 = vector.load %arg4[%c0_5, %c0_6] : memref<16x128xbf16, #tpu.memory_space<vmem>>, vector<16x128xbf16>
    tpu.vector_store %arg4[%c0_5, %c0_6], %10 {strides = array<i32>} : memref<16x128xbf16, #tpu.memory_space<vmem>>, vector<16x128xbf16>,
    return
  }
  func.func @transform_0(%arg0: i32) -> (i32, i32) {
    %c0_i32 = arith.constant 0 : i32
    %c0_i32_0 = arith.constant 0 : i32
    return %arg0, %c0_i32 : i32, i32
  }
  func.func @transform_1(%arg0: i32) -> (i32, i32) {
    %c0_i32 = arith.constant 0 : i32
    %c0_i32_0 = arith.constant 0 : i32
    %c0_i32_1 = arith.constant 0 : i32
    return %c0_i32, %c0_i32_0 : i32, i32
  }
  func.func @transform_2(%arg0: i32) -> (i32, i32) {
    %c0_i32 = arith.constant 0 : i32
    %c0_i32_0 = arith.constant 0 : i32
    %c0_i32_1 = arith.constant 0 : i32
    return %c0_i32, %c0_i32_0 : i32, i32
  }
  func.func @transform_3(%arg0: i32) -> (i32, i32) {
    %c0_i32 = arith.constant 0 : i32
    %c0_i32_0 = arith.constant 0 : i32
    return %arg0, %c0_i32 : i32, i32
  }
}

module attributes {stable_mosaic.version = 11 : i64} {
  func.func @_matmul_stats_kernel(%arg0: i32, %arg1: memref<16x1152xbf16, #tpu.memory_space<vmem>>, %arg2: memref<1152x128xbf16, #tpu.memory_space<vmem>>, %arg3: memref<16x128xbf16, #tpu.memory_space<vmem>>, %arg4: memref<8x128xf32, #tpu.memory_space<vmem>>) attributes {dimension_semantics = [#tpu.dimension_semantics<parallel>], iteration_bounds = array<i64: 2>, scalar_prefetch = 0 : i64, scratch_operands = 0 : i64, tpu.core_type = #tpu.core_type<tc>, window_params = [{transform_indices = @transform_0, window_bounds = array<i64: 16, 1152>}, {pipeline_mode = #tpu.pipeline_mode<synchronous>, transform_indices = @transform_1, window_bounds = array<i64: 1152, 128>}, {transform_indices = @transform_2, window_bounds = array<i64: 16, 128>}, {transform_indices = @transform_3, window_bounds = array<i64: 8, 128>}]} {
    %c0 = arith.constant 0 : index
    %c0_0 = arith.constant 0 : index
    %0 = vector.load %arg1[%c0, %c0_0] : memref<16x1152xbf16, #tpu.memory_space<vmem>>, vector<16x1152xbf16>
    %c0_1 = arith.constant 0 : index
    %c0_2 = arith.constant 0 : index
    %1 = vector.load %arg2[%c0_1, %c0_2] : memref<1152x128xbf16, #tpu.memory_space<vmem>>, vector<1152x128xbf16>
    %cst = arith.constant dense<0.000000e+00> : vector<16x128xf32>
    %2 = tpu.matmul %0, %1, %cst {dimension_numbers = #tpu.dot_dimension_numbers<[1], [0], [0], [1], [0, 0, 1, 1], [], []>} : vector<16x1152xbf16>, vector<1152x128xbf16>, vector<16x128xf32> -> vector<16x128xf32>
    %3 = arith.truncf %2 : vector<16x128xf32> to vector<16x128xbf16>
    %c0_3 = arith.constant 0 : index
    %c0_4 = arith.constant 0 : index
    %4 = vector.load %arg3[%c0_3, %c0_4] : memref<16x128xbf16, #tpu.memory_space<vmem>>, vector<16x128xbf16>
    tpu.vector_store %arg3[%c0_3, %c0_4], %3 {strides = array<i32>} : memref<16x128xbf16, #tpu.memory_space<vmem>>, vector<16x128xbf16>,
    %cst_5 = arith.constant dense<0.000000e+00> : vector<128xf32>
    %5 = vector.multi_reduction <add>, %2, %cst_5 [0] : vector<16x128xf32> to vector<128xf32>
    %6 = vector.shape_cast %5 : vector<128xf32> to vector<1x128xf32>
    %c0_6 = arith.constant 0 : index
    %c0_7 = arith.constant 0 : index
    %7 = vector.load %arg4[%c0_6, %c0_7] : memref<8x128xf32, #tpu.memory_space<vmem>>, vector<1x128xf32>
    tpu.vector_store %arg4[%c0_6, %c0_7], %6 {strides = array<i32>} : memref<8x128xf32, #tpu.memory_space<vmem>>, vector<1x128xf32>,
    %8 = arith.mulf %2, %2 : vector<16x128xf32>
    %cst_8 = arith.constant dense<0.000000e+00> : vector<128xf32>
    %9 = vector.multi_reduction <add>, %8, %cst_8 [0] : vector<16x128xf32> to vector<128xf32>
    %10 = vector.shape_cast %9 : vector<128xf32> to vector<1x128xf32>
    %c1 = arith.constant 1 : index
    %c0_9 = arith.constant 0 : index
    %11 = vector.load %arg4[%c1, %c0_9] : memref<8x128xf32, #tpu.memory_space<vmem>>, vector<1x128xf32>
    tpu.vector_store %arg4[%c1, %c0_9], %10 {strides = array<i32>} : memref<8x128xf32, #tpu.memory_space<vmem>>, vector<1x128xf32>,
    return
  }
  func.func @transform_0(%arg0: i32) -> (i32, i32) {
    %c0_i32 = arith.constant 0 : i32
    %c0_i32_0 = arith.constant 0 : i32
    return %arg0, %c0_i32 : i32, i32
  }
  func.func @transform_1(%arg0: i32) -> (i32, i32) {
    %c0_i32 = arith.constant 0 : i32
    %c0_i32_0 = arith.constant 0 : i32
    %c0_i32_1 = arith.constant 0 : i32
    return %c0_i32, %c0_i32_0 : i32, i32
  }
  func.func @transform_2(%arg0: i32) -> (i32, i32) {
    %c0_i32 = arith.constant 0 : i32
    %c0_i32_0 = arith.constant 0 : i32
    return %arg0, %c0_i32 : i32, i32
  }
  func.func @transform_3(%arg0: i32) -> (i32, i32) {
    %c0_i32 = arith.constant 0 : i32
    %c0_i32_0 = arith.constant 0 : i32
    return %arg0, %c0_i32 : i32, i32
  }
}

module attributes {stable_mosaic.version = 11 : i64} {
  func.func @_matmul_stats_kernel(%arg0: i32, %arg1: memref<8x128xbf16, #tpu.memory_space<vmem>>, %arg2: memref<128x128xbf16, #tpu.memory_space<vmem>>, %arg3: memref<8x128xbf16, #tpu.memory_space<vmem>>, %arg4: memref<8x128xf32, #tpu.memory_space<vmem>>) attributes {dimension_semantics = [#tpu.dimension_semantics<parallel>], iteration_bounds = array<i64: 1>, scalar_prefetch = 0 : i64, scratch_operands = 0 : i64, tpu.core_type = #tpu.core_type<tc>, window_params = [{transform_indices = @transform_0, window_bounds = array<i64: 8, 128>}, {pipeline_mode = #tpu.pipeline_mode<synchronous>, transform_indices = @transform_1, window_bounds = array<i64: 128, 128>}, {transform_indices = @transform_2, window_bounds = array<i64: 8, 128>}, {transform_indices = @transform_3, window_bounds = array<i64: 8, 128>}]} {
    %c0 = arith.constant 0 : index
    %c0_0 = arith.constant 0 : index
    %0 = vector.load %arg1[%c0, %c0_0] : memref<8x128xbf16, #tpu.memory_space<vmem>>, vector<8x128xbf16>
    %c0_1 = arith.constant 0 : index
    %c0_2 = arith.constant 0 : index
    %1 = vector.load %arg2[%c0_1, %c0_2] : memref<128x128xbf16, #tpu.memory_space<vmem>>, vector<128x128xbf16>
    %cst = arith.constant dense<0.000000e+00> : vector<8x128xf32>
    %2 = tpu.matmul %0, %1, %cst {dimension_numbers = #tpu.dot_dimension_numbers<[1], [0], [0], [1], [0, 0, 1, 1], [], []>} : vector<8x128xbf16>, vector<128x128xbf16>, vector<8x128xf32> -> vector<8x128xf32>
    %3 = arith.truncf %2 : vector<8x128xf32> to vector<8x128xbf16>
    %c0_3 = arith.constant 0 : index
    %c0_4 = arith.constant 0 : index
    %4 = vector.load %arg3[%c0_3, %c0_4] : memref<8x128xbf16, #tpu.memory_space<vmem>>, vector<8x128xbf16>
    tpu.vector_store %arg3[%c0_3, %c0_4], %3 {strides = array<i32>} : memref<8x128xbf16, #tpu.memory_space<vmem>>, vector<8x128xbf16>,
    %cst_5 = arith.constant dense<0.000000e+00> : vector<128xf32>
    %5 = vector.multi_reduction <add>, %2, %cst_5 [0] : vector<8x128xf32> to vector<128xf32>
    %6 = vector.shape_cast %5 : vector<128xf32> to vector<1x128xf32>
    %c0_6 = arith.constant 0 : index
    %c0_7 = arith.constant 0 : index
    %7 = vector.load %arg4[%c0_6, %c0_7] : memref<8x128xf32, #tpu.memory_space<vmem>>, vector<1x128xf32>
    tpu.vector_store %arg4[%c0_6, %c0_7], %6 {strides = array<i32>} : memref<8x128xf32, #tpu.memory_space<vmem>>, vector<1x128xf32>,
    %8 = arith.mulf %2, %2 : vector<8x128xf32>
    %cst_8 = arith.constant dense<0.000000e+00> : vector<128xf32>
    %9 = vector.multi_reduction <add>, %8, %cst_8 [0] : vector<8x128xf32> to vector<128xf32>
    %10 = vector.shape_cast %9 : vector<128xf32> to vector<1x128xf32>
    %c1 = arith.constant 1 : index
    %c0_9 = arith.constant 0 : index
    %11 = vector.load %arg4[%c1, %c0_9] : memref<8x128xf32, #tpu.memory_space<vmem>>, vector<1x128xf32>
    tpu.vector_store %arg4[%c1, %c0_9], %10 {strides = array<i32>} : memref<8x128xf32, #tpu.memory_space<vmem>>, vector<1x128xf32>,
    return
  }
  func.func @transform_0(%arg0: i32) -> (i32, i32) {
    %c0_i32 = arith.constant 0 : i32
    %c0_i32_0 = arith.constant 0 : i32
    return %arg0, %c0_i32 : i32, i32
  }
  func.func @transform_1(%arg0: i32) -> (i32, i32) {
    %c0_i32 = arith.constant 0 : i32
    %c0_i32_0 = arith.constant 0 : i32
    %c0_i32_1 = arith.constant 0 : i32
    return %c0_i32, %c0_i32_0 : i32, i32
  }
  func.func @transform_2(%arg0: i32) -> (i32, i32) {
    %c0_i32 = arith.constant 0 : i32
    %c0_i32_0 = arith.constant 0 : i32
    return %arg0, %c0_i32 : i32, i32
  }
  func.func @transform_3(%arg0: i32) -> (i32, i32) {
    %c0_i32 = arith.constant 0 : i32
    %c0_i32_0 = arith.constant 0 : i32
    return %arg0, %c0_i32 : i32, i32
  }
}

module attributes {stable_mosaic.version = 11 : i64} {
  func.func @_bn_act_res_kernel(%arg0: i32, %arg1: memref<16x128xbf16, #tpu.memory_space<vmem>>, %arg2: memref<1x128xf32, #tpu.memory_space<vmem>>, %arg3: memref<1x128xf32, #tpu.memory_space<vmem>>, %arg4: memref<16x128xbf16, #tpu.memory_space<vmem>>, %arg5: memref<16x128xbf16, #tpu.memory_space<vmem>>) attributes {dimension_semantics = [#tpu.dimension_semantics<parallel>], iteration_bounds = array<i64: 2>, scalar_prefetch = 0 : i64, scratch_operands = 0 : i64, tpu.core_type = #tpu.core_type<tc>, window_params = [{transform_indices = @transform_0, window_bounds = array<i64: 16, 128>}, {pipeline_mode = #tpu.pipeline_mode<synchronous>, transform_indices = @transform_1, window_bounds = array<i64: 1, 128>}, {pipeline_mode = #tpu.pipeline_mode<synchronous>, transform_indices = @transform_2, window_bounds = array<i64: 1, 128>}, {transform_indices = @transform_3, window_bounds = array<i64: 16, 128>}, {transform_indices = @transform_4, window_bounds = array<i64: 16, 128>}]} {
    %c0 = arith.constant 0 : index
    %c0_0 = arith.constant 0 : index
    %0 = vector.load %arg1[%c0, %c0_0] : memref<16x128xbf16, #tpu.memory_space<vmem>>, vector<16x128xbf16>
    %1 = arith.extf %0 : vector<16x128xbf16> to vector<16x128xf32>
    %c0_1 = arith.constant 0 : index
    %c0_2 = arith.constant 0 : index
    %2 = vector.load %arg2[%c0_1, %c0_2] : memref<1x128xf32, #tpu.memory_space<vmem>>, vector<1x128xf32>
    %3 = vector.broadcast %2 : vector<1x128xf32> to vector<16x128xf32>
    %4 = arith.mulf %1, %3 : vector<16x128xf32>
    %c0_3 = arith.constant 0 : index
    %c0_4 = arith.constant 0 : index
    %5 = vector.load %arg3[%c0_3, %c0_4] : memref<1x128xf32, #tpu.memory_space<vmem>>, vector<1x128xf32>
    %6 = vector.broadcast %5 : vector<1x128xf32> to vector<16x128xf32>
    %7 = arith.addf %4, %6 : vector<16x128xf32>
    %c0_5 = arith.constant 0 : index
    %c0_6 = arith.constant 0 : index
    %8 = vector.load %arg4[%c0_5, %c0_6] : memref<16x128xbf16, #tpu.memory_space<vmem>>, vector<16x128xbf16>
    %9 = arith.extf %8 : vector<16x128xbf16> to vector<16x128xf32>
    %10 = arith.addf %7, %9 : vector<16x128xf32>
    %cst = arith.constant 0.000000e+00 : f32
    %11 = vector.broadcast %cst : f32 to vector<16x128xf32>
    %12 = arith.maximumf %10, %11 : vector<16x128xf32>
    %13 = arith.truncf %12 : vector<16x128xf32> to vector<16x128xbf16>
    %c0_7 = arith.constant 0 : index
    %c0_8 = arith.constant 0 : index
    %14 = vector.load %arg5[%c0_7, %c0_8] : memref<16x128xbf16, #tpu.memory_space<vmem>>, vector<16x128xbf16>
    tpu.vector_store %arg5[%c0_7, %c0_8], %13 {strides = array<i32>} : memref<16x128xbf16, #tpu.memory_space<vmem>>, vector<16x128xbf16>,
    return
  }
  func.func @transform_0(%arg0: i32) -> (i32, i32) {
    %c0_i32 = arith.constant 0 : i32
    %c0_i32_0 = arith.constant 0 : i32
    return %arg0, %c0_i32 : i32, i32
  }
  func.func @transform_1(%arg0: i32) -> (i32, i32) {
    %c0_i32 = arith.constant 0 : i32
    %c0_i32_0 = arith.constant 0 : i32
    %c0_i32_1 = arith.constant 0 : i32
    return %c0_i32, %c0_i32_0 : i32, i32
  }
  func.func @transform_2(%arg0: i32) -> (i32, i32) {
    %c0_i32 = arith.constant 0 : i32
    %c0_i32_0 = arith.constant 0 : i32
    %c0_i32_1 = arith.constant 0 : i32
    return %c0_i32, %c0_i32_0 : i32, i32
  }
  func.func @transform_3(%arg0: i32) -> (i32, i32) {
    %c0_i32 = arith.constant 0 : i32
    %c0_i32_0 = arith.constant 0 : i32
    return %arg0, %c0_i32 : i32, i32
  }
  func.func @transform_4(%arg0: i32) -> (i32, i32) {
    %c0_i32 = arith.constant 0 : i32
    %c0_i32_0 = arith.constant 0 : i32
    return %arg0, %c0_i32 : i32, i32
  }
}

module attributes {stable_mosaic.version = 11 : i64} {
  func.func @_bn_act_kernel(%arg0: i32, %arg1: memref<8x128xbf16, #tpu.memory_space<vmem>>, %arg2: memref<1x128xf32, #tpu.memory_space<vmem>>, %arg3: memref<1x128xf32, #tpu.memory_space<vmem>>, %arg4: memref<8x128xbf16, #tpu.memory_space<vmem>>) attributes {dimension_semantics = [#tpu.dimension_semantics<parallel>], iteration_bounds = array<i64: 1>, scalar_prefetch = 0 : i64, scratch_operands = 0 : i64, tpu.core_type = #tpu.core_type<tc>, window_params = [{transform_indices = @transform_0, window_bounds = array<i64: 8, 128>}, {pipeline_mode = #tpu.pipeline_mode<synchronous>, transform_indices = @transform_1, window_bounds = array<i64: 1, 128>}, {pipeline_mode = #tpu.pipeline_mode<synchronous>, transform_indices = @transform_2, window_bounds = array<i64: 1, 128>}, {transform_indices = @transform_3, window_bounds = array<i64: 8, 128>}]} {
    %c0 = arith.constant 0 : index
    %c0_0 = arith.constant 0 : index
    %0 = vector.load %arg1[%c0, %c0_0] : memref<8x128xbf16, #tpu.memory_space<vmem>>, vector<8x128xbf16>
    %1 = arith.extf %0 : vector<8x128xbf16> to vector<8x128xf32>
    %c0_1 = arith.constant 0 : index
    %c0_2 = arith.constant 0 : index
    %2 = vector.load %arg2[%c0_1, %c0_2] : memref<1x128xf32, #tpu.memory_space<vmem>>, vector<1x128xf32>
    %3 = vector.broadcast %2 : vector<1x128xf32> to vector<8x128xf32>
    %4 = arith.mulf %1, %3 : vector<8x128xf32>
    %c0_3 = arith.constant 0 : index
    %c0_4 = arith.constant 0 : index
    %5 = vector.load %arg3[%c0_3, %c0_4] : memref<1x128xf32, #tpu.memory_space<vmem>>, vector<1x128xf32>
    %6 = vector.broadcast %5 : vector<1x128xf32> to vector<8x128xf32>
    %7 = arith.addf %4, %6 : vector<8x128xf32>
    %8 = arith.truncf %7 : vector<8x128xf32> to vector<8x128xbf16>
    %c0_5 = arith.constant 0 : index
    %c0_6 = arith.constant 0 : index
    %9 = vector.load %arg4[%c0_5, %c0_6] : memref<8x128xbf16, #tpu.memory_space<vmem>>, vector<8x128xbf16>
    tpu.vector_store %arg4[%c0_5, %c0_6], %8 {strides = array<i32>} : memref<8x128xbf16, #tpu.memory_space<vmem>>, vector<8x128xbf16>,
    return
  }
  func.func @transform_0(%arg0: i32) -> (i32, i32) {
    %c0_i32 = arith.constant 0 : i32
    %c0_i32_0 = arith.constant 0 : i32
    return %arg0, %c0_i32 : i32, i32
  }
  func.func @transform_1(%arg0: i32) -> (i32, i32) {
    %c0_i32 = arith.constant 0 : i32
    %c0_i32_0 = arith.constant 0 : i32
    %c0_i32_1 = arith.constant 0 : i32
    return %c0_i32, %c0_i32_0 : i32, i32
  }
  func.func @transform_2(%arg0: i32) -> (i32, i32) {
    %c0_i32 = arith.constant 0 : i32
    %c0_i32_0 = arith.constant 0 : i32
    %c0_i32_1 = arith.constant 0 : i32
    return %c0_i32, %c0_i32_0 : i32, i32
  }
  func.func @transform_3(%arg0: i32) -> (i32, i32) {
    %c0_i32 = arith.constant 0 : i32
    %c0_i32_0 = arith.constant 0 : i32
    return %arg0, %c0_i32 : i32, i32
  }
}

module attributes {stable_mosaic.version = 11 : i64} {
  func.func @_bn_act_kernel(%arg0: i32, %arg1: memref<8x128xbf16, #tpu.memory_space<vmem>>, %arg2: memref<1x128xf32, #tpu.memory_space<vmem>>, %arg3: memref<1x128xf32, #tpu.memory_space<vmem>>, %arg4: memref<8x128xbf16, #tpu.memory_space<vmem>>) attributes {dimension_semantics = [#tpu.dimension_semantics<parallel>], iteration_bounds = array<i64: 1>, scalar_prefetch = 0 : i64, scratch_operands = 0 : i64, tpu.core_type = #tpu.core_type<tc>, window_params = [{transform_indices = @transform_0, window_bounds = array<i64: 8, 128>}, {pipeline_mode = #tpu.pipeline_mode<synchronous>, transform_indices = @transform_1, window_bounds = array<i64: 1, 128>}, {pipeline_mode = #tpu.pipeline_mode<synchronous>, transform_indices = @transform_2, window_bounds = array<i64: 1, 128>}, {transform_indices = @transform_3, window_bounds = array<i64: 8, 128>}]} {
    %c0 = arith.constant 0 : index
    %c0_0 = arith.constant 0 : index
    %0 = vector.load %arg1[%c0, %c0_0] : memref<8x128xbf16, #tpu.memory_space<vmem>>, vector<8x128xbf16>
    %1 = arith.extf %0 : vector<8x128xbf16> to vector<8x128xf32>
    %c0_1 = arith.constant 0 : index
    %c0_2 = arith.constant 0 : index
    %2 = vector.load %arg2[%c0_1, %c0_2] : memref<1x128xf32, #tpu.memory_space<vmem>>, vector<1x128xf32>
    %3 = vector.broadcast %2 : vector<1x128xf32> to vector<8x128xf32>
    %4 = arith.mulf %1, %3 : vector<8x128xf32>
    %c0_3 = arith.constant 0 : index
    %c0_4 = arith.constant 0 : index
    %5 = vector.load %arg3[%c0_3, %c0_4] : memref<1x128xf32, #tpu.memory_space<vmem>>, vector<1x128xf32>
    %6 = vector.broadcast %5 : vector<1x128xf32> to vector<8x128xf32>
    %7 = arith.addf %4, %6 : vector<8x128xf32>
    %cst = arith.constant 0.000000e+00 : f32
    %8 = vector.broadcast %cst : f32 to vector<8x128xf32>
    %9 = arith.maximumf %7, %8 : vector<8x128xf32>
    %10 = arith.truncf %9 : vector<8x128xf32> to vector<8x128xbf16>
    %c0_5 = arith.constant 0 : index
    %c0_6 = arith.constant 0 : index
    %11 = vector.load %arg4[%c0_5, %c0_6] : memref<8x128xbf16, #tpu.memory_space<vmem>>, vector<8x128xbf16>
    tpu.vector_store %arg4[%c0_5, %c0_6], %10 {strides = array<i32>} : memref<8x128xbf16, #tpu.memory_space<vmem>>, vector<8x128xbf16>,
    return
  }
  func.func @transform_0(%arg0: i32) -> (i32, i32) {
    %c0_i32 = arith.constant 0 : i32
    %c0_i32_0 = arith.constant 0 : i32
    return %arg0, %c0_i32 : i32, i32
  }
  func.func @transform_1(%arg0: i32) -> (i32, i32) {
    %c0_i32 = arith.constant 0 : i32
    %c0_i32_0 = arith.constant 0 : i32
    %c0_i32_1 = arith.constant 0 : i32
    return %c0_i32, %c0_i32_0 : i32, i32
  }
  func.func @transform_2(%arg0: i32) -> (i32, i32) {
    %c0_i32 = arith.constant 0 : i32
    %c0_i32_0 = arith.constant 0 : i32
    %c0_i32_1 = arith.constant 0 : i32
    return %c0_i32, %c0_i32_0 : i32, i32
  }
  func.func @transform_3(%arg0: i32) -> (i32, i32) {
    %c0_i32 = arith.constant 0 : i32
    %c0_i32_0 = arith.constant 0 : i32
    return %arg0, %c0_i32 : i32, i32
  }
}

module attributes {stable_mosaic.version = 11 : i64} {
  func.func @_matmul_stats_kernel(%arg0: i32, %arg1: memref<8x1152xbf16, #tpu.memory_space<vmem>>, %arg2: memref<1152x128xbf16, #tpu.memory_space<vmem>>, %arg3: memref<8x128xbf16, #tpu.memory_space<vmem>>, %arg4: memref<8x128xf32, #tpu.memory_space<vmem>>) attributes {dimension_semantics = [#tpu.dimension_semantics<parallel>], iteration_bounds = array<i64: 1>, scalar_prefetch = 0 : i64, scratch_operands = 0 : i64, tpu.core_type = #tpu.core_type<tc>, window_params = [{transform_indices = @transform_0, window_bounds = array<i64: 8, 1152>}, {pipeline_mode = #tpu.pipeline_mode<synchronous>, transform_indices = @transform_1, window_bounds = array<i64: 1152, 128>}, {transform_indices = @transform_2, window_bounds = array<i64: 8, 128>}, {transform_indices = @transform_3, window_bounds = array<i64: 8, 128>}]} {
    %c0 = arith.constant 0 : index
    %c0_0 = arith.constant 0 : index
    %0 = vector.load %arg1[%c0, %c0_0] : memref<8x1152xbf16, #tpu.memory_space<vmem>>, vector<8x1152xbf16>
    %c0_1 = arith.constant 0 : index
    %c0_2 = arith.constant 0 : index
    %1 = vector.load %arg2[%c0_1, %c0_2] : memref<1152x128xbf16, #tpu.memory_space<vmem>>, vector<1152x128xbf16>
    %cst = arith.constant dense<0.000000e+00> : vector<8x128xf32>
    %2 = tpu.matmul %0, %1, %cst {dimension_numbers = #tpu.dot_dimension_numbers<[1], [0], [0], [1], [0, 0, 1, 1], [], []>} : vector<8x1152xbf16>, vector<1152x128xbf16>, vector<8x128xf32> -> vector<8x128xf32>
    %3 = arith.truncf %2 : vector<8x128xf32> to vector<8x128xbf16>
    %c0_3 = arith.constant 0 : index
    %c0_4 = arith.constant 0 : index
    %4 = vector.load %arg3[%c0_3, %c0_4] : memref<8x128xbf16, #tpu.memory_space<vmem>>, vector<8x128xbf16>
    tpu.vector_store %arg3[%c0_3, %c0_4], %3 {strides = array<i32>} : memref<8x128xbf16, #tpu.memory_space<vmem>>, vector<8x128xbf16>,
    %cst_5 = arith.constant dense<0.000000e+00> : vector<128xf32>
    %5 = vector.multi_reduction <add>, %2, %cst_5 [0] : vector<8x128xf32> to vector<128xf32>
    %6 = vector.shape_cast %5 : vector<128xf32> to vector<1x128xf32>
    %c0_6 = arith.constant 0 : index
    %c0_7 = arith.constant 0 : index
    %7 = vector.load %arg4[%c0_6, %c0_7] : memref<8x128xf32, #tpu.memory_space<vmem>>, vector<1x128xf32>
    tpu.vector_store %arg4[%c0_6, %c0_7], %6 {strides = array<i32>} : memref<8x128xf32, #tpu.memory_space<vmem>>, vector<1x128xf32>,
    %8 = arith.mulf %2, %2 : vector<8x128xf32>
    %cst_8 = arith.constant dense<0.000000e+00> : vector<128xf32>
    %9 = vector.multi_reduction <add>, %8, %cst_8 [0] : vector<8x128xf32> to vector<128xf32>
    %10 = vector.shape_cast %9 : vector<128xf32> to vector<1x128xf32>
    %c1 = arith.constant 1 : index
    %c0_9 = arith.constant 0 : index
    %11 = vector.load %arg4[%c1, %c0_9] : memref<8x128xf32, #tpu.memory_space<vmem>>, vector<1x128xf32>
    tpu.vector_store %arg4[%c1, %c0_9], %10 {strides = array<i32>} : memref<8x128xf32, #tpu.memory_space<vmem>>, vector<1x128xf32>,
    return
  }
  func.func @transform_0(%arg0: i32) -> (i32, i32) {
    %c0_i32 = arith.constant 0 : i32
    %c0_i32_0 = arith.constant 0 : i32
    return %arg0, %c0_i32 : i32, i32
  }
  func.func @transform_1(%arg0: i32) -> (i32, i32) {
    %c0_i32 = arith.constant 0 : i32
    %c0_i32_0 = arith.constant 0 : i32
    %c0_i32_1 = arith.constant 0 : i32
    return %c0_i32, %c0_i32_0 : i32, i32
  }
  func.func @transform_2(%arg0: i32) -> (i32, i32) {
    %c0_i32 = arith.constant 0 : i32
    %c0_i32_0 = arith.constant 0 : i32
    return %arg0, %c0_i32 : i32, i32
  }
  func.func @transform_3(%arg0: i32) -> (i32, i32) {
    %c0_i32 = arith.constant 0 : i32
    %c0_i32_0 = arith.constant 0 : i32
    return %arg0, %c0_i32 : i32, i32
  }
}

module attributes {stable_mosaic.version = 11 : i64} {
  func.func @_bn_act_res_kernel(%arg0: i32, %arg1: memref<8x128xbf16, #tpu.memory_space<vmem>>, %arg2: memref<1x128xf32, #tpu.memory_space<vmem>>, %arg3: memref<1x128xf32, #tpu.memory_space<vmem>>, %arg4: memref<8x128xbf16, #tpu.memory_space<vmem>>, %arg5: memref<8x128xbf16, #tpu.memory_space<vmem>>) attributes {dimension_semantics = [#tpu.dimension_semantics<parallel>], iteration_bounds = array<i64: 1>, scalar_prefetch = 0 : i64, scratch_operands = 0 : i64, tpu.core_type = #tpu.core_type<tc>, window_params = [{transform_indices = @transform_0, window_bounds = array<i64: 8, 128>}, {pipeline_mode = #tpu.pipeline_mode<synchronous>, transform_indices = @transform_1, window_bounds = array<i64: 1, 128>}, {pipeline_mode = #tpu.pipeline_mode<synchronous>, transform_indices = @transform_2, window_bounds = array<i64: 1, 128>}, {transform_indices = @transform_3, window_bounds = array<i64: 8, 128>}, {transform_indices = @transform_4, window_bounds = array<i64: 8, 128>}]} {
    %c0 = arith.constant 0 : index
    %c0_0 = arith.constant 0 : index
    %0 = vector.load %arg1[%c0, %c0_0] : memref<8x128xbf16, #tpu.memory_space<vmem>>, vector<8x128xbf16>
    %1 = arith.extf %0 : vector<8x128xbf16> to vector<8x128xf32>
    %c0_1 = arith.constant 0 : index
    %c0_2 = arith.constant 0 : index
    %2 = vector.load %arg2[%c0_1, %c0_2] : memref<1x128xf32, #tpu.memory_space<vmem>>, vector<1x128xf32>
    %3 = vector.broadcast %2 : vector<1x128xf32> to vector<8x128xf32>
    %4 = arith.mulf %1, %3 : vector<8x128xf32>
    %c0_3 = arith.constant 0 : index
    %c0_4 = arith.constant 0 : index
    %5 = vector.load %arg3[%c0_3, %c0_4] : memref<1x128xf32, #tpu.memory_space<vmem>>, vector<1x128xf32>
    %6 = vector.broadcast %5 : vector<1x128xf32> to vector<8x128xf32>
    %7 = arith.addf %4, %6 : vector<8x128xf32>
    %c0_5 = arith.constant 0 : index
    %c0_6 = arith.constant 0 : index
    %8 = vector.load %arg4[%c0_5, %c0_6] : memref<8x128xbf16, #tpu.memory_space<vmem>>, vector<8x128xbf16>
    %9 = arith.extf %8 : vector<8x128xbf16> to vector<8x128xf32>
    %10 = arith.addf %7, %9 : vector<8x128xf32>
    %cst = arith.constant 0.000000e+00 : f32
    %11 = vector.broadcast %cst : f32 to vector<8x128xf32>
    %12 = arith.maximumf %10, %11 : vector<8x128xf32>
    %13 = arith.truncf %12 : vector<8x128xf32> to vector<8x128xbf16>
    %c0_7 = arith.constant 0 : index
    %c0_8 = arith.constant 0 : index
    %14 = vector.load %arg5[%c0_7, %c0_8] : memref<8x128xbf16, #tpu.memory_space<vmem>>, vector<8x128xbf16>
    tpu.vector_store %arg5[%c0_7, %c0_8], %13 {strides = array<i32>} : memref<8x128xbf16, #tpu.memory_space<vmem>>, vector<8x128xbf16>,
    return
  }
  func.func @transform_0(%arg0: i32) -> (i32, i32) {
    %c0_i32 = arith.constant 0 : i32
    %c0_i32_0 = arith.constant 0 : i32
    return %arg0, %c0_i32 : i32, i32
  }
  func.func @transform_1(%arg0: i32) -> (i32, i32) {
    %c0_i32 = arith.constant 0 : i32
    %c0_i32_0 = arith.constant 0 : i32
    %c0_i32_1 = arith.constant 0 : i32
    return %c0_i32, %c0_i32_0 : i32, i32
  }
  func.func @transform_2(%arg0: i32) -> (i32, i32) {
    %c0_i32 = arith.constant 0 : i32
    %c0_i32_0 = arith.constant 0 : i32
    %c0_i32_1 = arith.constant 0 : i32
    return %c0_i32, %c0_i32_0 : i32, i32
  }
  func.func @transform_3(%arg0: i32) -> (i32, i32) {
    %c0_i32 = arith.constant 0 : i32
    %c0_i32_0 = arith.constant 0 : i32
    return %arg0, %c0_i32 : i32, i32
  }
  func.func @transform_4(%arg0: i32) -> (i32, i32) {
    %c0_i32 = arith.constant 0 : i32
    %c0_i32_0 = arith.constant 0 : i32
    return %arg0, %c0_i32 : i32, i32
  }
}

</mosaic_0001>

<bundles_post_ra>
// kernel: resnet_backbone_forward.26
= control target key start
LH: loop header
LB: loop body
LE: loop exit
PB: predicated region body
PF: predicated region fallthrough
CT: control target
= control target key end

     0   :  { %s851_s12 = smov 0   ;;  %s993_s0 = inlined_call_operand.vmem [shape: bf16[512,128], index: 0, kind: input, shape index: {}, may-alias: {0,3}]   ;;  %s994_s1 = inlined_call_operand.vmem [shape: f32[1,128], index: 1, kind: input, shape index: {}]   ;;  %s995_s2 = inlined_call_operand.vmem [shape: f32[1,128], index: 2, kind: input, shape index: {}]   ;;  %s996_s3 = inlined_call_operand.vmem [shape: bf16[512,128], index: 3, kind: output, shape index: {}, may-alias: {0,3}]  }
   0x1 LB: > { %s564_s13 = sadd.s32 4294967295, %s829_s12   ;;  %p568_p0 = scmp.ge.s32.totalorder %s829_s12, 1  ;;  %s829_s12 = sphi %s851_s12, %s13_s12  }
   0x2   : > { %p138_p1 = scmp.lt.s32.totalorder %s829_s12, 3 }
   0x4   : > { %p139_p2 = pnand %p568_p0, %p138_p1 }
   0x5   : > { %s569_s14 = sshll.u32 (!%p139_p2), %s564_s13, 5  ;;  %v573_v40 = vld [vmem:[%s994_s1] ss:$0 sm:$0xff] (!%p139_p2) }
   0x6   : > { %142 = sbr.rel (%p139_p2) target bundleno = 57 (0x39), region = 32  ;;  %p163_p3 = scmp.lt.s32.totalorder (!%p139_p2), %s569_s14, 63 }
   0xd   : > { %s998_s14 = smov (!%p163_p3, %s569_s14), 63 }
   0xe   : > { %s570_s15 = sshll.u32 %s998_s14, 2 }
   0xf   : > { %s867_s18 = scalar_lea.vmem %s993_s0, %s570_s15  ;;  %s934_s25 = scalar_lea.vmem %s996_s3, %s570_s15 }
  0x10   : > { %v642_v0 = vld [vmem:[%s867_s18] sm:$0xff]   ;;  %v785_v1 = vld [vmem:[%s867_s18 + $0x8] sm:$0xff]   ;;  %v786_v2 = vld [vmem:[%s867_s18 + $0x10] sm:$0xff]  }
  0x11   : > { %v643_v3 = vunpack.c.l.bf16 %v642_v0  ;;  %v644_v4 = vunpack.c.h.bf16 %v642_v0  ;;  %v647_v5 = vunpack.c.l.bf16 %v785_v1  ;;  %v648_v6 = vunpack.c.h.bf16 %v785_v1  ;;  %v787_v7 = vld [vmem:[%s867_s18 + $0x18] sm:$0xff]   ;;  %v788_v8 = vld [vmem:[%s867_s18 + $0x20] sm:$0xff]   ;;  %v789_v9 = vld [vmem:[%s867_s18 + $0x28] sm:$0xff]  }
  0x12   : > { %v651_v10 = vunpack.c.l.bf16 %v786_v2  ;;  %v652_v11 = vunpack.c.h.bf16 %v786_v2  ;;  %v655_v12 = vunpack.c.l.bf16 %v787_v7  ;;  %v656_v13 = vunpack.c.h.bf16 %v787_v7  ;;  %v790_v14 = vld [vmem:[%s867_s18 + $0x30] sm:$0xff]   ;;  %v791_v15 = vld [vmem:[%s867_s18 + $0x38] sm:$0xff]   ;;  %v792_v16 = vld [vmem:[%s867_s18 + $0x40] sm:$0xff]  }
  0x13   : > { %v659_v17 = vunpack.c.l.bf16 %v788_v8  ;;  %v660_v18 = vunpack.c.h.bf16 %v788_v8  ;;  %v663_v19 = vunpack.c.l.bf16 %v789_v9  ;;  %v664_v20 = vunpack.c.h.bf16 %v789_v9  ;;  %v793_v21 = vld [vmem:[%s867_s18 + $0x48] sm:$0xff]   ;;  %v794_v22 = vld [vmem:[%s867_s18 + $0x50] sm:$0xff]   ;;  %v795_v23 = vld [vmem:[%s867_s18 + $0x58] sm:$0xff]  }
  0x14   : > { %v667_v24 = vunpack.c.l.bf16 %v790_v14  ;;  %v668_v25 = vunpack.c.h.bf16 %v790_v14  ;;  %v671_v26 = vunpack.c.l.bf16 %v791_v15  ;;  %v672_v27 = vunpack.c.h.bf16 %v791_v15  ;;  %v796_v28 = vld [vmem:[%s867_s18 + $0x60] sm:$0xff]   ;;  %v797_v29 = vld [vmem:[%s867_s18 + $0x68] sm:$0xff]   ;;  %v798_v34 = vld [vmem:[%s867_s18 + $0x70] sm:$0xff]  }
  0x15   : > { %v675_v30 = vunpack.c.l.bf16 %v792_v16  ;;  %v676_v31 = vunpack.c.h.bf16 %v792_v16  ;;  %v679_v32 = vunpack.c.l.bf16 %v793_v21  ;;  %v680_v33 = vunpack.c.h.bf16 %v793_v21  ;;  %v799_v35 = vld [vmem:[%s867_s18 + $0x78] sm:$0xff]   ;;  %v903_v9 = vld [vmem:[%s995_s2] ss:$0 sm:$0xff] }
  0x16   : > { %v683_v36 = vunpack.c.l.bf16 %v794_v22  ;;  %v684_v37 = vunpack.c.h.bf16 %v794_v22  ;;  %v687_v38 = vunpack.c.l.bf16 %v795_v23  ;;  %v688_v39 = vunpack.c.h.bf16 %v795_v23 }
  0x17   : > { %v691_v41 = vunpack.c.l.bf16 %v796_v28  ;;  %v692_v42 = vunpack.c.h.bf16 %v796_v28  ;;  %v695_v43 = vunpack.c.l.bf16 %v797_v29  ;;  %v696_v44 = vunpack.c.h.bf16 %v797_v29 }
  0x18   : > { %v699_v45 = vunpack.c.l.bf16 %v798_v34  ;;  %v700_v46 = vunpack.c.h.bf16 %v798_v34  ;;  %v703_v47 = vunpack.c.l.bf16 %v799_v35  ;;  %v704_v48 = vunpack.c.h.bf16 %v799_v35 }
  0x19   : > { %v245_v49 = vmul.f32 %v643_v3, %v573_v40  ;;  %v246_v50 = vmul.f32 %v644_v4, %v573_v40  ;;  %v247_v51 = vmul.f32 %v647_v5, %v573_v40  ;;  %v248_v52 = vmul.f32 %v648_v6, %v573_v40 }
  0x1a   : > { %v249_v53 = vmul.f32 %v651_v10, %v573_v40  ;;  %v250_v54 = vmul.f32 %v652_v11, %v573_v40  ;;  %v251_v55 = vmul.f32 %v655_v12, %v573_v40  ;;  %v252_v56 = vmul.f32 %v656_v13, %v573_v40 }
  0x1b   : > { %v253_v57 = vmul.f32 %v659_v17, %v573_v40  ;;  %v254_v58 = vmul.f32 %v660_v18, %v573_v40  ;;  %v255_v59 = vmul.f32 %v663_v19, %v573_v40  ;;  %v256_v60 = vmul.f32 %v664_v20, %v573_v40 }
  0x1c   : > { %v257_v61 = vmul.f32 %v667_v24, %v573_v40  ;;  %v258_v62 = vmul.f32 %v668_v25, %v573_v40  ;;  %v259_v63 = vmul.f32 %v671_v26, %v573_v40  ;;  %v260_v0 = vmul.f32 %v672_v27, %v573_v40 }
  0x1d   : > { %v261_v1 = vmul.f32 %v675_v30, %v573_v40  ;;  %v262_v2 = vmul.f32 %v676_v31, %v573_v40  ;;  %v888_v7 = vmul.f32 %v679_v32, %v573_v40  ;;  %v890_v3 = vmul.f32 %v680_v33, %v573_v40 }
  0x1e   : > { %v892_v4 = vmul.f32 %v683_v36, %v573_v40  ;;  %v894_v5 = vmul.f32 %v684_v37, %v573_v40  ;;  %v896_v6 = vmul.f32 %v687_v38, %v573_v40  ;;  %v898_v8 = vmul.f32 %v688_v39, %v573_v40 }
  0x1f   : > { %v905_v10 = vmul.f32 %v691_v41, %v573_v40  ;;  %v907_v11 = vmul.f32 %v692_v42, %v573_v40  ;;  %v909_v12 = vmul.f32 %v695_v43, %v573_v40  ;;  %v911_v13 = vmul.f32 %v696_v44, %v573_v40 }
  0x20   : > { %v913_v14 = vmul.f32 %v699_v45, %v573_v40  ;;  %v915_v15 = vmul.f32 %v700_v46, %v573_v40  ;;  %v917_v16 = vmul.f32 %v703_v47, %v573_v40  ;;  %v919_v17 = vmul.f32 %v704_v48, %v573_v40 }
  0x21   : > { %v284_v18 = vadd.f32 %v903_v9, %v245_v49  ;;  %v285_v19 = vadd.f32 %v903_v9, %v246_v50  ;;  %v286_v20 = vadd.f32 %v903_v9, %v247_v51  ;;  %v287_v21 = vadd.f32 %v903_v9, %v248_v52 }
  0x22   : > { %v288_v22 = vadd.f32 %v903_v9, %v249_v53  ;;  %v289_v23 = vadd.f32 %v903_v9, %v250_v54  ;;  %v290_v24 = vadd.f32 %v903_v9, %v251_v55  ;;  %v291_v25 = vadd.f32 %v903_v9, %v252_v56 }
  0x23   : > { %v316_v26 = vmax.f32 %v284_v18, 0.0  ;;  %v317_v27 = vmax.f32 %v285_v19, 0.0  ;;  %v318_v28 = vmax.f32 %v286_v20, 0.0  ;;  %v319_v29 = vmax.f32 %v287_v21, 0.0 }
  0x24   : > { %v320_v30 = vmax.f32 %v288_v22, 0.0  ;;  %v321_v31 = vmax.f32 %v289_v23, 0.0  ;;  %v322_v32 = vmax.f32 %v290_v24, 0.0  ;;  %v323_v33 = vmax.f32 %v291_v25, 0.0 }
  0x25   : > { %v708_v34 = vpack.c.bf16 %v317_v27, %v316_v26  ;;  %v713_v35 = vpack.c.bf16 %v319_v29, %v318_v28  ;;  %v292_v36 = vadd.f32 %v903_v9, %v253_v57  ;;  %v293_v37 = vadd.f32 %v903_v9, %v254_v58 }
  0x26   : > { %v718_v38 = vpack.c.bf16 %v321_v31, %v320_v30  ;;  %v723_v39 = vpack.c.bf16 %v323_v33, %v322_v32  ;;  %v294_v40 = vadd.f32 %v903_v9, %v255_v59  ;;  %v295_v41 = vadd.f32 %v903_v9, %v256_v60 }
  0x27   : > { %709 = vst [vmem:[%s934_s25] sm:$0xff] %v708_v34   ;;  %800 = vst [vmem:[%s934_s25 + $0x8] sm:$0xff] %v713_v35   ;;  %v324_v42 = vmax.f32 %v292_v36, 0.0  ;;  %v325_v43 = vmax.f32 %v293_v37, 0.0  ;;  %v296_v44 = vadd.f32 %v903_v9, %v257_v61  ;;  %v297_v45 = vadd.f32 %v903_v9, %v258_v62 }
  0x28   : > { %801 = vst [vmem:[%s934_s25 + $0x10] sm:$0xff] %v718_v38   ;;  %802 = vst [vmem:[%s934_s25 + $0x18] sm:$0xff] %v723_v39   ;;  %v326_v46 = vmax.f32 %v294_v40, 0.0  ;;  %v327_v47 = vmax.f32 %v295_v41, 0.0  ;;  %v298_v48 = vadd.f32 %v903_v9, %v259_v63  ;;  %v299_v49 = vadd.f32 %v903_v9, %v260_v0 }
  0x29   : > { %v728_v50 = vpack.c.bf16 %v325_v43, %v324_v42  ;;  %v328_v51 = vmax.f32 %v296_v44, 0.0  ;;  %v329_v52 = vmax.f32 %v297_v45, 0.0  ;;  %v300_v53 = vadd.f32 %v903_v9, %v261_v1 }
  0x2a   : > { %v733_v54 = vpack.c.bf16 %v327_v47, %v326_v46  ;;  %v330_v55 = vmax.f32 %v298_v48, 0.0  ;;  %v331_v56 = vmax.f32 %v299_v49, 0.0  ;;  %v301_v57 = vadd.f32 %v903_v9, %v262_v2 }
  0x2b   : > { %803 = vst [vmem:[%s934_s25 + $0x20] sm:$0xff] %v728_v50   ;;  %v738_v58 = vpack.c.bf16 %v329_v52, %v328_v51  ;;  %v332_v59 = vmax.f32 %v300_v53, 0.0  ;;  %v302_v60 = vadd.f32 %v903_v9, %v888_v7  ;;  %v303_v61 = vadd.f32 %v903_v9, %v890_v3 }
  0x2c   : > { %804 = vst [vmem:[%s934_s25 + $0x28] sm:$0xff] %v733_v54   ;;  %v743_v62 = vpack.c.bf16 %v331_v56, %v330_v55  ;;  %v333_v63 = vmax.f32 %v301_v57, 0.0  ;;  %v304_v0 = vadd.f32 %v903_v9, %v892_v4  ;;  %v305_v1 = vadd.f32 %v903_v9, %v894_v5 }
  0x2d   : > { %805 = vst [vmem:[%s934_s25 + $0x30] sm:$0xff] %v738_v58   ;;  %v334_v2 = vmax.f32 %v302_v60, 0.0  ;;  %v335_v18 = vmax.f32 %v303_v61, 0.0  ;;  %v306_v19 = vadd.f32 %v903_v9, %v896_v6  ;;  %v307_v7 = vadd.f32 %v903_v9, %v898_v8 }
  0x2e   : > { %806 = vst [vmem:[%s934_s25 + $0x38] sm:$0xff] %v743_v62   ;;  %v748_v3 = vpack.c.bf16 %v333_v63, %v332_v59  ;;  %v336_v20 = vmax.f32 %v304_v0, 0.0  ;;  %v337_v21 = vmax.f32 %v305_v1, 0.0  ;;  %v308_v4 = vadd.f32 %v903_v9, %v905_v10 }
  0x2f   : > { %v753_v22 = vpack.c.bf16 %v335_v18, %v334_v2  ;;  %v338_v5 = vmax.f32 %v306_v19, 0.0  ;;  %v339_v23 = vmax.f32 %v307_v7, 0.0  ;;  %v309_v24 = vadd.f32 %v903_v9, %v907_v11 }
  0x30   : > { %807 = vst [vmem:[%s934_s25 + $0x40] sm:$0xff] %v748_v3   ;;  %v758_v6 = vpack.c.bf16 %v337_v21, %v336_v20  ;;  %v340_v25 = vmax.f32 %v308_v4, 0.0  ;;  %v310_v8 = vadd.f32 %v903_v9, %v909_v12  ;;  %v311_v26 = vadd.f32 %v903_v9, %v911_v13 }
  0x31   : > { %808 = vst [vmem:[%s934_s25 + $0x48] sm:$0xff] %v753_v22   ;;  %v763_v27 = vpack.c.bf16 %v339_v23, %v338_v5  ;;  %v341_v10 = vmax.f32 %v309_v24, 0.0  ;;  %v312_v28 = vadd.f32 %v903_v9, %v913_v14  ;;  %v313_v11 = vadd.f32 %v903_v9, %v915_v15 }
  0x32   : > { %809 = vst [vmem:[%s934_s25 + $0x50] sm:$0xff] %v758_v6   ;;  %v342_v29 = vmax.f32 %v310_v8, 0.0  ;;  %v343_v30 = vmax.f32 %v311_v26, 0.0  ;;  %v314_v12 = vadd.f32 %v903_v9, %v917_v16  ;;  %v315_v13 = vadd.f32 %v903_v9, %v919_v17 }
  0x33   : > { %810 = vst [vmem:[%s934_s25 + $0x58] sm:$0xff] %v763_v27   ;;  %v768_v31 = vpack.c.bf16 %v341_v10, %v340_v25  ;;  %v344_v32 = vmax.f32 %v312_v28, 0.0  ;;  %v345_v33 = vmax.f32 %v313_v11, 0.0 }
  0x34   : > { %v773_v14 = vpack.c.bf16 %v343_v30, %v342_v29  ;;  %v346_v34 = vmax.f32 %v314_v12, 0.0  ;;  %v347_v35 = vmax.f32 %v315_v13, 0.0 }
  0x35   : > { %811 = vst [vmem:[%s934_s25 + $0x60] sm:$0xff] %v768_v31   ;;  %v778_v15 = vpack.c.bf16 %v345_v33, %v344_v32 }
  0x36   : > { %812 = vst [vmem:[%s934_s25 + $0x68] sm:$0xff] %v773_v14   ;;  %v783_v36 = vpack.c.bf16 %v347_v35, %v346_v34 }
  0x37   : > { %813 = vst [vmem:[%s934_s25 + $0x70] sm:$0xff] %v778_v15  }
  0x38   : > { %814 = vst [vmem:[%s934_s25 + $0x78] sm:$0xff] %v783_v36  }
  0x39 PF: > { %s13_s12 = sadd.s32 1, %s829_s12  }
  0x3a   : > { %p10_p4 = scmp.ge.s32.totalorder %s13_s12, 4  }
  0x3c   :  { %12 = sbr.rel (!%p10_p4) target bundleno = 1 (0x1), region = 62 }

// kernel: resnet_backbone_forward.25
= control target key start
LH: loop header
LB: loop body
LE: loop exit
PB: predicated region body
PF: predicated region fallthrough
CT: control target
= control target key end

     0   :  { %s1474_s12 = smov 0   ;;  %s1687_s0 = inlined_call_operand.vmem [shape: bf16[512,256], index: 0, kind: input, shape index: {}]   ;;  %s1688_s1 = inlined_call_operand.vmem [shape: bf16[256,128], index: 1, kind: input, shape index: {}]   ;;  %s1689_s2 = inlined_call_operand.vmem [shape: bf16[512,128], index: 2, kind: output, shape index: {0}]   ;;  %s1690_s3 = inlined_call_operand.vmem [shape: f32[16,128], index: 3, kind: output, shape index: {1}]  }
   0x1 LB: > { %s1480_s13 = sadd.s32 4294967295, %s1452_s12   ;;  %p1029_p0 = scmp.ge.s32.totalorder %s1452_s12, 1  ;;  %s1452_s12 = sphi %s1474_s12, %s14_s12  }
   0x2   : > { %p142_p1 = scmp.lt.s32.totalorder %s1452_s12, 3 }
   0x4   : > { %p143_p2 = pnand %p1029_p0, %p142_p1 }
   0x5   : > { %v1382_v0 = vld [vmem:[%s1688_s1 + $0x40] sm:$0xff] (!%p143_p2)   ;;  %s1030_s16 = sshll.u32 (!%p143_p2), %s1480_s13, 5  ;;  %v1384_v2 = vld [vmem:[%s1688_s1 + $0x48] sm:$0xff] (!%p143_p2)   ;;  %v1386_v4 = vld [vmem:[%s1688_s1 + $0x50] sm:$0xff] (!%p143_p2)   ;;  %p184_p4 = scmp.lt.s32.totalorder (!%p143_p2), %s1480_s13, 1 }
   0x6   : > { %146 = sbr.rel (%p143_p2) target bundleno = 360 (0x168), region = 28  ;;  %v1383_v1 = vld [vmem:[%s1688_s1] sm:$0xff] (!%p143_p2)   ;;  %1246 = vmatprep.subr.bf16.mxu0 (!%p143_p2), %v1382_v0  ;;  %1358 = vmatprep.subr.bf16.mxu1 (!%p143_p2), %v1382_v0  ;;  %v1385_v3 = vld [vmem:[%s1688_s1 + $0x8] sm:$0xff] (!%p143_p2)   ;;  %p172_p3 = scmp.lt.s32.totalorder (!%p143_p2), %s1030_s16, 63  ;;  %v1387_v5 = vld [vmem:[%s1688_s1 + $0x10] sm:$0xff] (!%p143_p2)  }
   0x7   : > { %1247 = vmatpush3.bf16.msra.mxu0 (!%p143_p2), %v1383_v1  ;;  %1366 = vmatpush3.bf16.msra.mxu1 (!%p143_p2), %v1383_v1  ;;  %v1388_v6 = vld [vmem:[%s1688_s1 + $0x58] sm:$0xff] (!%p143_p2)   ;;  %v1390_v8 = vld [vmem:[%s1688_s1 + $0x60] sm:$0xff] (!%p143_p2)   ;;  %v1392_v10 = vld [vmem:[%s1688_s1 + $0x68] sm:$0xff] (!%p143_p2)  }
   0x8   : > { %1248 = vmatprep.subr.bf16.mxu0 (!%p143_p2), %v1384_v2  ;;  %1359 = vmatprep.subr.bf16.mxu1 (!%p143_p2), %v1384_v2  ;;  %v1389_v7 = vld [vmem:[%s1688_s1 + $0x18] sm:$0xff] (!%p143_p2)   ;;  %v1391_v9 = vld [vmem:[%s1688_s1 + $0x20] sm:$0xff] (!%p143_p2)   ;;  %v1393_v12 = vld [vmem:[%s1688_s1 + $0x28] sm:$0xff] (!%p143_p2)  }
   0x9   : > { %v1394_v13 = vld [vmem:[%s1688_s1 + $0x70] sm:$0xff] (!%p143_p2)   ;;  %v1396_v16 = vld [vmem:[%s1688_s1 + $0x78] sm:$0xff] (!%p143_p2)  }
   0xa   : > { %v1395_v15 = vld [vmem:[%s1688_s1 + $0x30] sm:$0xff] (!%p143_p2)   ;;  %v1397_v17 = vld [vmem:[%s1688_s1 + $0x38] sm:$0xff] (!%p143_p2)  }
   0xb   : > { %1249 = vmatpush3.bf16.msra.mxu0 (!%p143_p2), %v1385_v3  ;;  %1367 = vmatpush3.bf16.msra.mxu1 (!%p143_p2), %v1385_v3 }
   0xc   : > { %1250 = vmatprep.subr.bf16.mxu0 (!%p143_p2), %v1386_v4  ;;  %1360 = vmatprep.subr.bf16.mxu1 (!%p143_p2), %v1386_v4 }
   0xd   : > { %s1692_s16 = smov (!%p172_p3, %s1030_s16), 63  ;;  %s1694_s13 = smov (!%p184_p4, %s1480_s13), 1 }
   0xe   : > { %s1118_s4 = sshll.u32 %s1692_s16, 3  ;;  %s1034_s27 = sshll.u32 %s1692_s16, 2 }
   0xf   : > { %1251 = vmatpush3.bf16.msra.mxu0 %v1387_v5  ;;  %1368 = vmatpush3.bf16.msra.mxu1 %v1387_v5  ;;  %s1518_s9 = scalar_lea.vmem %s1687_s0, %s1118_s4  ;;  %s1579_s30 = scalar_lea.vmem %s1689_s2, %s1034_s27 }
  0x10   : > { %1252 = vmatprep.subr.bf16.mxu0 %v1388_v6  ;;  %1361 = vmatprep.subr.bf16.mxu1 %v1388_v6  ;;  %v1400_v11 = vld [vmem:[%s1518_s9 + $0x4] ss:$8 sps:$4 sm:$0xff]   ;;  %v1398_v18 = vld [vmem:[%s1518_s9] ss:$8 sps:$4 sm:$0xff]   ;;  %v1401_v19 = vld [vmem:[%s1518_s9 + $0x14] ss:$8 sps:$4 sm:$0xff]  }
  0x11   : > { %541 = vmatprep.mubr.bf16.mxu0 %v1400_v11  ;;  %v1412_v14 = vld [vmem:[%s1518_s9 + $0x84] ss:$8 sps:$4 sm:$0xff]   ;;  %v1410_v20 = vld [vmem:[%s1518_s9 + $0x80] ss:$8 sps:$4 sm:$0xff]   ;;  %v1416_v21 = vld [vmem:[%s1518_s9 + $0x94] ss:$8 sps:$4 sm:$0xff]  }
  0x12   : > { %605 = vmatprep.mubr.bf16.mxu1 %v1412_v14  ;;  %v1403_v22 = vld [vmem:[%s1518_s9 + $0x10] ss:$8 sps:$4 sm:$0xff]   ;;  %v1404_v23 = vld [vmem:[%s1518_s9 + $0x24] ss:$8 sps:$4 sm:$0xff]   ;;  %v1406_v26 = vld [vmem:[%s1518_s9 + $0x20] ss:$8 sps:$4 sm:$0xff]  }
  0x13   : > { %1253 = vmatpush3.bf16.msra.mxu0 %v1389_v7  ;;  %1369 = vmatpush3.bf16.msra.mxu1 %v1389_v7  ;;  %v1418_v24 = vld [vmem:[%s1518_s9 + $0x90] ss:$8 sps:$4 sm:$0xff]   ;;  %v1422_v25 = vld [vmem:[%s1518_s9 + $0xa4] ss:$8 sps:$4 sm:$0xff]   ;;  %v1407_v27 = vld [vmem:[%s1518_s9 + $0x34] ss:$8 sps:$4 sm:$0xff]  }
  0x14   : > { %1254 = vmatprep.subr.bf16.mxu0 %v1390_v8  ;;  %1362 = vmatprep.subr.bf16.mxu1 %v1390_v8  ;;  %v1424_v28 = vld [vmem:[%s1518_s9 + $0xa0] ss:$8 sps:$4 sm:$0xff]   ;;  %v1428_v29 = vld [vmem:[%s1518_s9 + $0xb4] ss:$8 sps:$4 sm:$0xff]   ;;  %v1409_v30 = vld [vmem:[%s1518_s9 + $0x30] ss:$8 sps:$4 sm:$0xff]  }
  0x15   : > { %v1413_v31 = vld [vmem:[%s1518_s9 + $0x44] ss:$8 sps:$4 sm:$0xff]   ;;  %v1430_v32 = vld [vmem:[%s1518_s9 + $0xb0] ss:$8 sps:$4 sm:$0xff]   ;;  %v1415_v34 = vld [vmem:[%s1518_s9 + $0x40] ss:$8 sps:$4 sm:$0xff]  }
  0x16   : > { %v1434_v33 = vld [vmem:[%s1518_s9 + $0xc4] ss:$8 sps:$4 sm:$0xff]   ;;  %v1419_v35 = vld [vmem:[%s1518_s9 + $0x54] ss:$8 sps:$4 sm:$0xff]   ;;  %v1436_v36 = vld [vmem:[%s1518_s9 + $0xc0] ss:$8 sps:$4 sm:$0xff]  }
  0x17   : > { %1255 = vmatpush3.bf16.msra.mxu0 %v1391_v9  ;;  %1370 = vmatpush3.bf16.msra.mxu1 %v1391_v9  ;;  %v1437_v37 = vld [vmem:[%s1518_s9 + $0xd4] ss:$8 sps:$4 sm:$0xff]   ;;  %v1421_v38 = vld [vmem:[%s1518_s9 + $0x50] ss:$8 sps:$4 sm:$0xff]   ;;  %v1425_v39 = vld [vmem:[%s1518_s9 + $0x64] ss:$8 sps:$4 sm:$0xff]  }
  0x18   : > { %1256 = vmatprep.subr.bf16.mxu0 %v1392_v10  ;;  %1363 = vmatprep.subr.bf16.mxu1 %v1392_v10  ;;  %v1439_v40 = vld [vmem:[%s1518_s9 + $0xd0] ss:$8 sps:$4 sm:$0xff]   ;;  %v1440_v41 = vld [vmem:[%s1518_s9 + $0xe4] ss:$8 sps:$4 sm:$0xff]   ;;  %v1427_v42 = vld [vmem:[%s1518_s9 + $0x60] ss:$8 sps:$4 sm:$0xff]  }
  0x19   : > { %v1431_v43 = vld [vmem:[%s1518_s9 + $0x74] ss:$8 sps:$4 sm:$0xff]   ;;  %v1442_v44 = vld [vmem:[%s1518_s9 + $0xe0] ss:$8 sps:$4 sm:$0xff]   ;;  %v1433_v46 = vld [vmem:[%s1518_s9 + $0x70] ss:$8 sps:$4 sm:$0xff]  }
  0x1a   : > { %v1443_v45 = vld [vmem:[%s1518_s9 + $0xf4] ss:$8 sps:$4 sm:$0xff]   ;;  %v1445_v47 = vld [vmem:[%s1518_s9 + $0xf0] ss:$8 sps:$4 sm:$0xff]   ;;  %s1035_s16 = sshll.u32 %s1694_s13, 3 }
  0x1b   : > { %1257 = vmatpush3.bf16.msra.mxu0 %v1393_v12  ;;  %1371 = vmatpush3.bf16.msra.mxu1 %v1393_v12  ;;  %s187_s6 = scalar_lea.vmem %s1690_s3, %s1035_s16 }
  0x1c   : > { %1258 = vmatprep.subr.bf16.mxu0 %v1394_v13  ;;  %1364 = vmatprep.subr.bf16.mxu1 %v1394_v13 }
  0x1f   : > { %1259 = vmatpush3.bf16.msra.mxu0 %v1395_v15  ;;  %1372 = vmatpush3.bf16.msra.mxu1 %v1395_v15 }
  0x20   : > { %1260 = vmatprep.subr.bf16.mxu0 %v1396_v16  ;;  %1365 = vmatprep.subr.bf16.mxu1 %v1396_v16 }
  0x23   : > { %1261 = vmatpush3.bf16.msra.mxu0 %v1397_v17  ;;  %1373 = vmatpush3.bf16.msra.mxu1 %v1397_v17 }
  0x26   : > { %542 = vmatmul.mubr.bf16.vlgmr.msra.gmra.mrb[0].mxu0 %v1398_v18  ;;  %606 = vmatmul.mubr.bf16.vlgmr.msra.gmra.mrb[0].mxu1 %v1410_v20 }
  0x27   : > { %549 = vmatprep.mubr.bf16.mxu0 %v1401_v19  ;;  %613 = vmatprep.mubr.bf16.mxu1 %v1416_v21 }
  0x2e   : > { %550 = vmatmul.mubr.bf16.gmra.mrb[4].mxu0 %v1403_v22  ;;  %614 = vmatmul.mubr.bf16.gmra.mrb[4].mxu1 %v1418_v24 }
  0x2f   : > { %557 = vmatprep.mubr.bf16.mxu0 %v1404_v23  ;;  %621 = vmatprep.mubr.bf16.mxu1 %v1422_v25 }
  0x36   : > { %558 = vmatmul.mubr.bf16.gmra.mrb[8].mxu0 %v1406_v26  ;;  %622 = vmatmul.mubr.bf16.gmra.mrb[8].mxu1 %v1424_v28 }
  0x37   : > { %565 = vmatprep.mubr.bf16.mxu0 %v1407_v27  ;;  %629 = vmatprep.mubr.bf16.mxu1 %v1428_v29 }
  0x3e   : > { %566 = vmatmul.mubr.bf16.gmra.mrb[12].mxu0 %v1409_v30  ;;  %630 = vmatmul.mubr.bf16.gmra.mrb[12].mxu1 %v1430_v32 }
  0x3f   : > { %573 = vmatprep.mubr.bf16.mxu0 %v1413_v31  ;;  %637 = vmatprep.mubr.bf16.mxu1 %v1434_v33 }
  0x46   : > { %574 = vmatmul.mubr.bf16.gmra.mrb[16].mxu0 %v1415_v34  ;;  %638 = vmatmul.mubr.bf16.gmra.mrb[16].mxu1 %v1436_v36 }
  0x47   : > { %581 = vmatprep.mubr.bf16.mxu0 %v1419_v35  ;;  %645 = vmatprep.mubr.bf16.mxu1 %v1437_v37 }
  0x4e   : > { %582 = vmatmul.mubr.bf16.gmra.mrb[20].mxu0 %v1421_v38  ;;  %646 = vmatmul.mubr.bf16.gmra.mrb[20].mxu1 %v1439_v40 }
  0x4f   : > { %589 = vmatprep.mubr.bf16.mxu0 %v1425_v39  ;;  %653 = vmatprep.mubr.bf16.mxu1 %v1440_v41 }
  0x56   : > { %590 = vmatmul.mubr.bf16.gmra.mrb[24].mxu0 %v1427_v42  ;;  %654 = vmatmul.mubr.bf16.gmra.mrb[24].mxu1 %v1442_v44 }
  0x57   : > { %597 = vmatprep.mubr.bf16.mxu0 %v1431_v43  ;;  %661 = vmatprep.mubr.bf16.mxu1 %v1443_v45 }
  0x5e   : > { %598 = vmatmul.mubr.bf16.gmra.mrb[28].mxu0 %v1433_v46  ;;  %662 = vmatmul.mubr.bf16.gmra.mrb[28].mxu1 %v1445_v47 }
  0xf9   : > { %v1262_v48 = vpop.f32.mrb[0].mxu0  ;;  %v1310_v50 = vpop.f32.mrb[0].mxu1 }
  0xfa   : > { %v1263_v49 = vpop.f32.mrb[1].mxu0  ;;  %v1311_v53 = vpop.f32.mrb[1].mxu1 }
  0xfb   : > { %v1264_v51 = vadd.f32 %v1263_v49, %v1262_v48  ;;  %v1265_v52 = vpop.f32.mrb[2].mxu0  ;;  %v1574_v55 = vadd.f32 %v1311_v53, %v1310_v50  ;;  %v1313_v56 = vpop.f32.mrb[2].mxu1 }
  0xfc   : > { %v1266_v54 = vpop.f32.mrb[3].mxu0  ;;  %v1314_v58 = vpop.f32.mrb[3].mxu1 }
  0xfd   : > { %v1267_v57 = vadd.f32 %v1266_v54, %v1265_v52  ;;  %v1581_v59 = vadd.f32 %v1314_v58, %v1313_v56  ;;  %v868_v60 = vmul.f32 %v1264_v51, %v1264_v51 }
  0xff   : > { %v1154_v61 = vpack.c.bf16 %v1267_v57, %v1264_v51  ;;  %v830_v62 = vadd.f32 %v1267_v57, %v1264_v51  ;;  %v869_v63 = vmul.f32 %v1267_v57, %v1267_v57  ;;  %v1194_v0 = vpack.c.bf16 %v1581_v59, %v1574_v55 }
 0x101   : > { %1155 = vst [vmem:[%s1579_s30] sm:$0xff] %v1154_v61   ;;  %v900_v1 = vadd.f32 %v869_v63, %v868_v60  ;;  %v1268_v2 = vpop.f32.mrb[4].mxu0  ;;  %1238 = vst [vmem:[%s1579_s30 + $0x40] sm:$0xff] %v1194_v0   ;;  %v1316_v4 = vpop.f32.mrb[4].mxu1 }
 0x102   : > { %v1269_v3 = vpop.f32.mrb[5].mxu0  ;;  %v1317_v7 = vpop.f32.mrb[5].mxu1 }
 0x103   : > { %v1270_v5 = vadd.f32 %v1269_v3, %v1268_v2  ;;  %v1271_v6 = vpop.f32.mrb[6].mxu0  ;;  %v1587_v9 = vadd.f32 %v1317_v7, %v1316_v4  ;;  %v1319_v10 = vpop.f32.mrb[6].mxu1 }
 0x104   : > { %v1272_v8 = vpop.f32.mrb[7].mxu0  ;;  %v1320_v14 = vpop.f32.mrb[7].mxu1 }
 0x105   : > { %v831_v11 = vadd.f32 %v1270_v5, %v830_v62  ;;  %v870_v12 = vmul.f32 %v1270_v5, %v1270_v5  ;;  %v1273_v13 = vadd.f32 %v1272_v8, %v1271_v6  ;;  %v1589_v15 = vadd.f32 %v1320_v14, %v1319_v10 }
 0x107   : > { %v901_v16 = vadd.f32 %v900_v1, %v870_v12  ;;  %v1159_v17 = vpack.c.bf16 %v1273_v13, %v1270_v5  ;;  %v832_v18 = vadd.f32 %v1273_v13, %v831_v11  ;;  %v871_v19 = vmul.f32 %v1273_v13, %v1273_v13 }
 0x108   : > { %v1199_v20 = vpack.c.bf16 %v1589_v15, %v1587_v9 }
 0x109   : > { %1231 = vst [vmem:[%s1579_s30 + $0x8] sm:$0xff] %v1159_v17   ;;  %v902_v21 = vadd.f32 %v901_v16, %v871_v19  ;;  %v1274_v22 = vpop.f32.mrb[8].mxu0  ;;  %v1322_v24 = vpop.f32.mrb[8].mxu1 }
 0x10a   : > { %v1275_v23 = vpop.f32.mrb[9].mxu0  ;;  %1239 = vst [vmem:[%s1579_s30 + $0x48] sm:$0xff] %v1199_v20   ;;  %v1323_v27 = vpop.f32.mrb[9].mxu1 }
 0x10b   : > { %v1276_v25 = vadd.f32 %v1275_v23, %v1274_v22  ;;  %v1277_v26 = vpop.f32.mrb[10].mxu0  ;;  %v1595_v29 = vadd.f32 %v1323_v27, %v1322_v24  ;;  %v1325_v30 = vpop.f32.mrb[10].mxu1 }
 0x10c   : > { %v1278_v28 = vpop.f32.mrb[11].mxu0  ;;  %v1326_v34 = vpop.f32.mrb[11].mxu1 }
 0x10d   : > { %v833_v31 = vadd.f32 %v1276_v25, %v832_v18  ;;  %v872_v32 = vmul.f32 %v1276_v25, %v1276_v25  ;;  %v1279_v33 = vadd.f32 %v1278_v28, %v1277_v26  ;;  %v1597_v35 = vadd.f32 %v1326_v34, %v1325_v30 }
 0x10f   : > { %v903_v36 = vadd.f32 %v902_v21, %v872_v32  ;;  %v1164_v37 = vpack.c.bf16 %v1279_v33, %v1276_v25  ;;  %v834_v38 = vadd.f32 %v1279_v33, %v833_v31  ;;  %v873_v39 = vmul.f32 %v1279_v33, %v1279_v33 }
 0x110   : > { %v1204_v40 = vpack.c.bf16 %v1597_v35, %v1595_v29 }
 0x111   : > { %1232 = vst [vmem:[%s1579_s30 + $0x10] sm:$0xff] %v1164_v37   ;;  %v904_v41 = vadd.f32 %v903_v36, %v873_v39  ;;  %v1280_v42 = vpop.f32.mrb[12].mxu0  ;;  %v1328_v44 = vpop.f32.mrb[12].mxu1 }
 0x112   : > { %v1281_v43 = vpop.f32.mrb[13].mxu0  ;;  %1240 = vst [vmem:[%s1579_s30 + $0x50] sm:$0xff] %v1204_v40   ;;  %v1329_v47 = vpop.f32.mrb[13].mxu1 }
 0x113   : > { %v1282_v45 = vadd.f32 %v1281_v43, %v1280_v42  ;;  %v1283_v46 = vpop.f32.mrb[14].mxu0  ;;  %v1603_v49 = vadd.f32 %v1329_v47, %v1328_v44  ;;  %v1331_v50 = vpop.f32.mrb[14].mxu1 }
 0x114   : > { %v1284_v48 = vpop.f32.mrb[15].mxu0  ;;  %v1332_v54 = vpop.f32.mrb[15].mxu1 }
 0x115   : > { %v835_v51 = vadd.f32 %v1282_v45, %v834_v38  ;;  %v874_v52 = vmul.f32 %v1282_v45, %v1282_v45  ;;  %v1285_v53 = vadd.f32 %v1284_v48, %v1283_v46  ;;  %v1605_v56 = vadd.f32 %v1332_v54, %v1331_v50 }
 0x117   : > { %v905_v57 = vadd.f32 %v904_v41, %v874_v52  ;;  %v1169_v58 = vpack.c.bf16 %v1285_v53, %v1282_v45  ;;  %v836_v60 = vadd.f32 %v1285_v53, %v835_v51  ;;  %v875_v61 = vmul.f32 %v1285_v53, %v1285_v53 }
 0x118   : > { %v1209_v62 = vpack.c.bf16 %v1605_v56, %v1603_v49 }
 0x119   : > { %1233 = vst [vmem:[%s1579_s30 + $0x18] sm:$0xff] %v1169_v58   ;;  %v906_v63 = vadd.f32 %v905_v57, %v875_v61  ;;  %v1286_v0 = vpop.f32.mrb[16].mxu0  ;;  %v1334_v2 = vpop.f32.mrb[16].mxu1 }
 0x11a   : > { %v1287_v1 = vpop.f32.mrb[17].mxu0  ;;  %1241 = vst [vmem:[%s1579_s30 + $0x58] sm:$0xff] %v1209_v62   ;;  %v1335_v5 = vpop.f32.mrb[17].mxu1 }
 0x11b   : > { %v1288_v3 = vadd.f32 %v1287_v1, %v1286_v0  ;;  %v1289_v4 = vpop.f32.mrb[18].mxu0  ;;  %v1611_v7 = vadd.f32 %v1335_v5, %v1334_v2  ;;  %v1337_v8 = vpop.f32.mrb[18].mxu1 }
 0x11c   : > { %v1290_v6 = vpop.f32.mrb[19].mxu0  ;;  %v1338_v13 = vpop.f32.mrb[19].mxu1 }
 0x11d   : > { %v837_v10 = vadd.f32 %v1288_v3, %v836_v60  ;;  %v876_v11 = vmul.f32 %v1288_v3, %v1288_v3  ;;  %v1291_v12 = vadd.f32 %v1290_v6, %v1289_v4  ;;  %v1613_v14 = vadd.f32 %v1338_v13, %v1337_v8 }
 0x11f   : > { %v907_v16 = vadd.f32 %v906_v63, %v876_v11  ;;  %v1174_v17 = vpack.c.bf16 %v1291_v12, %v1288_v3  ;;  %v838_v18 = vadd.f32 %v1291_v12, %v837_v10  ;;  %v877_v19 = vmul.f32 %v1291_v12, %v1291_v12 }
 0x120   : > { %v1214_v20 = vpack.c.bf16 %v1613_v14, %v1611_v7 }
 0x121   : > { %1234 = vst [vmem:[%s1579_s30 + $0x20] sm:$0xff] %v1174_v17   ;;  %v908_v21 = vadd.f32 %v907_v16, %v877_v19  ;;  %v1292_v22 = vpop.f32.mrb[20].mxu0  ;;  %v1340_v24 = vpop.f32.mrb[20].mxu1 }
 0x122   : > { %v1293_v23 = vpop.f32.mrb[21].mxu0  ;;  %1242 = vst [vmem:[%s1579_s30 + $0x60] sm:$0xff] %v1214_v20   ;;  %v1341_v27 = vpop.f32.mrb[21].mxu1 }
 0x123   : > { %v1294_v25 = vadd.f32 %v1293_v23, %v1292_v22  ;;  %v1295_v26 = vpop.f32.mrb[22].mxu0  ;;  %v1619_v30 = vadd.f32 %v1341_v27, %v1340_v24  ;;  %v1343_v31 = vpop.f32.mrb[22].mxu1  ;;  %v884_v27 = vmul.f32 %v1574_v55, %v1574_v55 }
 0x124   : > { %v1296_v28 = vpop.f32.mrb[23].mxu0  ;;  %v1344_v36 = vpop.f32.mrb[23].mxu1 }
 0x125   : > { %v839_v32 = vadd.f32 %v1294_v25, %v838_v18  ;;  %v878_v33 = vmul.f32 %v1294_v25, %v1294_v25  ;;  %v1297_v34 = vadd.f32 %v1296_v28, %v1295_v26  ;;  %v1621_v37 = vadd.f32 %v1344_v36, %v1343_v31 }
 0x126   : > { %v886_v36 = vmul.f32 %v1587_v9, %v1587_v9 }
 0x127   : > { %v909_v38 = vadd.f32 %v908_v21, %v878_v33  ;;  %v1179_v39 = vpack.c.bf16 %v1297_v34, %v1294_v25  ;;  %v840_v40 = vadd.f32 %v1297_v34, %v839_v32  ;;  %v879_v41 = vmul.f32 %v1297_v34, %v1297_v34 }
 0x128   : > { %v1219_v42 = vpack.c.bf16 %v1621_v37, %v1619_v30  ;;  %v885_v32 = vmul.f32 %v1581_v59, %v1581_v59 }
 0x129   : > { %1235 = vst [vmem:[%s1579_s30 + $0x28] sm:$0xff] %v1179_v39   ;;  %v910_v43 = vadd.f32 %v909_v38, %v879_v41  ;;  %v1298_v44 = vpop.f32.mrb[24].mxu0  ;;  %v1346_v46 = vpop.f32.mrb[24].mxu1 }
 0x12a   : > { %v1299_v45 = vpop.f32.mrb[25].mxu0  ;;  %1243 = vst [vmem:[%s1579_s30 + $0x68] sm:$0xff] %v1219_v42   ;;  %v1347_v50 = vpop.f32.mrb[25].mxu1  ;;  %v888_v42 = vmul.f32 %v1595_v29, %v1595_v29 }
 0x12b   : > { %v1300_v47 = vadd.f32 %v1299_v45, %v1298_v44  ;;  %v1301_v48 = vpop.f32.mrb[26].mxu0  ;;  %v1627_v52 = vadd.f32 %v1347_v50, %v1346_v46  ;;  %v1349_v53 = vpop.f32.mrb[26].mxu1 }
 0x12c   : > { %v1302_v51 = vpop.f32.mrb[27].mxu0  ;;  %v1350_v60 = vpop.f32.mrb[27].mxu1 }
 0x12d   : > { %v841_v54 = vadd.f32 %v1300_v47, %v840_v40  ;;  %v880_v57 = vmul.f32 %v1300_v47, %v1300_v47  ;;  %v1303_v58 = vadd.f32 %v1302_v51, %v1301_v48  ;;  %v1629_v61 = vadd.f32 %v1350_v60, %v1349_v53 }
 0x12e   : > { %v887_v40 = vmul.f32 %v1589_v15, %v1589_v15  ;;  %v892_v53 = vmul.f32 %v1611_v7, %v1611_v7 }
 0x12f   : > { %v911_v62 = vadd.f32 %v910_v43, %v880_v57  ;;  %v1184_v63 = vpack.c.bf16 %v1303_v58, %v1300_v47  ;;  %v842_v0 = vadd.f32 %v1303_v58, %v841_v54  ;;  %v881_v1 = vmul.f32 %v1303_v58, %v1303_v58 }
 0x130   : > { %v1224_v2 = vpack.c.bf16 %v1629_v61, %v1627_v52  ;;  %v893_v58 = vmul.f32 %v1613_v14, %v1613_v14 }
 0x131   : > { %1236 = vst [vmem:[%s1579_s30 + $0x30] sm:$0xff] %v1184_v63   ;;  %v912_v3 = vadd.f32 %v911_v62, %v881_v1  ;;  %v1304_v4 = vpop.f32.mrb[28].mxu0  ;;  %v1352_v6 = vpop.f32.mrb[28].mxu1 }
 0x132   : > { %v1305_v5 = vpop.f32.mrb[29].mxu0  ;;  %1244 = vst [vmem:[%s1579_s30 + $0x70] sm:$0xff] %v1224_v2   ;;  %v1353_v11 = vpop.f32.mrb[29].mxu1 }
 0x133   : > { %v1306_v8 = vadd.f32 %v1305_v5, %v1304_v4  ;;  %v1307_v10 = vpop.f32.mrb[30].mxu0  ;;  %v1354_v13 = vadd.f32 %v1353_v11, %v1352_v6  ;;  %v1355_v16 = vpop.f32.mrb[30].mxu1  ;;  %v897_v4 = vmul.f32 %v1629_v61, %v1629_v61 }
 0x134   : > { %v1308_v12 = vpop.f32.mrb[31].mxu0  ;;  %v1356_v20 = vpop.f32.mrb[31].mxu1 }
 0x135   : > { %v843_v17 = vadd.f32 %v1306_v8, %v842_v0  ;;  %v882_v18 = vmul.f32 %v1306_v8, %v1306_v8  ;;  %v1309_v19 = vadd.f32 %v1308_v12, %v1307_v10  ;;  %v1357_v21 = vadd.f32 %v1356_v20, %v1355_v16 }
 0x137   : > { %v913_v22 = vadd.f32 %v912_v3, %v882_v18  ;;  %v1189_v23 = vpack.c.bf16 %v1309_v19, %v1306_v8  ;;  %v844_v24 = vadd.f32 %v1309_v19, %v843_v17  ;;  %v883_v25 = vmul.f32 %v1309_v19, %v1309_v19 }
 0x138   : > { %v1229_v26 = vpack.c.bf16 %v1357_v21, %v1354_v13 }
 0x139   : > { %1237 = vst [vmem:[%s1579_s30 + $0x38] sm:$0xff] %v1189_v23   ;;  %v845_v28 = vadd.f32 %v1574_v55, %v844_v24  ;;  %v914_v31 = vadd.f32 %v913_v22, %v883_v25 }
 0x13a   : > { %1245 = vst [vmem:[%s1579_s30 + $0x78] sm:$0xff] %v1229_v26  }
 0x13b   : > { %v846_v33 = vadd.f32 %v1581_v59, %v845_v28  ;;  %v915_v34 = vadd.f32 %v914_v31, %v884_v27  ;;  %v889_v59 = vmul.f32 %v1597_v35, %v1597_v35 }
 0x13d   : > { %v847_v38 = vadd.f32 %v1587_v9, %v846_v33  ;;  %v916_v39 = vadd.f32 %v915_v34, %v885_v32  ;;  %v890_v9 = vmul.f32 %v1603_v49, %v1603_v49 }
 0x13f   : > { %v848_v41 = vadd.f32 %v1589_v15, %v847_v38  ;;  %v917_v55 = vadd.f32 %v916_v39, %v886_v36  ;;  %v891_v15 = vmul.f32 %v1605_v56, %v1605_v56 }
 0x141   : > { %v918_v43 = vadd.f32 %v917_v55, %v887_v40  ;;  %v849_v44 = vadd.f32 %v1595_v29, %v848_v41 }
 0x143   : > { %v850_v45 = vadd.f32 %v1597_v35, %v849_v44  ;;  %v919_v46 = vadd.f32 %v918_v43, %v888_v42 }
 0x145   : > { %v851_v47 = vadd.f32 %v1603_v49, %v850_v45  ;;  %v920_v48 = vadd.f32 %v919_v46, %v889_v59 }
 0x147   : > { %v852_v50 = vadd.f32 %v1605_v56, %v851_v47  ;;  %v921_v51 = vadd.f32 %v920_v48, %v890_v9  ;;  %v894_v56 = vmul.f32 %v1619_v30, %v1619_v30 }
 0x149   : > { %v853_v29 = vadd.f32 %v1611_v7, %v852_v50  ;;  %v922_v54 = vadd.f32 %v921_v51, %v891_v15  ;;  %v895_v7 = vmul.f32 %v1621_v37, %v1621_v37 }
 0x14b   : > { %v923_v35 = vadd.f32 %v922_v54, %v892_v53  ;;  %v854_v57 = vadd.f32 %v1613_v14, %v853_v29  ;;  %v896_v14 = vmul.f32 %v1627_v52, %v1627_v52 }
 0x14d   : > { %v924_v49 = vadd.f32 %v923_v35, %v893_v58  ;;  %v855_v60 = vadd.f32 %v1619_v30, %v854_v57  ;;  %v898_v30 = vmul.f32 %v1354_v13, %v1354_v13 }
 0x14f   : > { %v925_v62 = vadd.f32 %v924_v49, %v894_v56  ;;  %v856_v63 = vadd.f32 %v1621_v37, %v855_v60  ;;  %v899_v37 = vmul.f32 %v1357_v21, %v1357_v21 }
 0x151   : > { %v926_v0 = vadd.f32 %v925_v62, %v895_v7  ;;  %v857_v1 = vadd.f32 %v1627_v52, %v856_v63 }
 0x153   : > { %v927_v2 = vadd.f32 %v926_v0, %v896_v14  ;;  %v858_v3 = vadd.f32 %v1629_v61, %v857_v1 }
 0x155   : > { %v928_v5 = vadd.f32 %v927_v2, %v897_v4  ;;  %v859_v6 = vadd.f32 %v1354_v13, %v858_v3 }
 0x157   : > { %v929_v8 = vadd.f32 %v928_v5, %v898_v30  ;;  %v860_v10 = vadd.f32 %v1357_v21, %v859_v6 }
 0x159   : > { %v861_v11 = vrot.slane %v860_v10, 4  ;;  %v930_v12 = vadd.f32 %v929_v8, %v899_v37 }
 0x15b   : > { %v862_v16 = vadd.f32 %v861_v11, %v860_v10  ;;  %v931_v17 = vrot.slane %v930_v12, 4 }
 0x15d   : > { %v863_v18 = vrot.slane %v862_v16, 2  ;;  %v932_v52 = vadd.f32 %v931_v17, %v930_v12 }
 0x15f   : > { %v864_v19 = vadd.f32 %v863_v18, %v862_v16  ;;  %v933_v20 = vrot.slane %v932_v52, 2 }
 0x161   : > { %v865_v22 = vrot.slane %v864_v19, 1  ;;  %v934_v23 = vadd.f32 %v933_v20, %v932_v52 }
 0x163   : > { %v866_v61 = vadd.f32 %v865_v22, %v864_v19  ;;  %v935_v13 = vrot.slane %v934_v23, 1 }
 0x165   : > { %867 = vst [vmem:[%s187_s6] sm:$0x1] %v866_v61  ;;  %v936_v21 = vadd.f32 %v935_v13, %v934_v23 }
 0x167   : > { %937 = vst [vmem:[%s187_s6 + $0x1] sm:$0x1] %v936_v21 }
 0x168 PF: > { %s14_s12 = sadd.s32 1, %s1452_s12  }
 0x169   : > { %p11_p5 = scmp.ge.s32.totalorder %s14_s12, 4  }
 0x16b   :  { %13 = sbr.rel (!%p11_p5) target bundleno = 1 (0x1), region = 70 }

// kernel: resnet_backbone_forward.27
= control target key start
LH: loop header
LB: loop body
LE: loop exit
PB: predicated region body
PF: predicated region fallthrough
CT: control target
= control target key end

     0   :  { %s1215_s30 = smov 0   ;;  %s1332_s0 = inlined_call_operand.vmem [shape: bf16[128,128], index: 0, kind: input, shape index: {}]   ;;  %s1333_s1 = inlined_call_operand.vmem [shape: bf16[128,128], index: 1, kind: input, shape index: {}]   ;;  %s1334_s2 = inlined_call_operand.vmem [shape: bf16[128,128], index: 2, kind: input, shape index: {}]   ;;  %s1335_s3 = inlined_call_operand.vmem [shape: bf16[128,128], index: 3, kind: input, shape index: {}]   ;;  %s1336_s4 = inlined_call_operand.vmem [shape: bf16[128,128], index: 4, kind: input, shape index: {}]   ;;  %s1337_s5 = inlined_call_operand.vmem [shape: bf16[128,128], index: 5, kind: input, shape index: {}]   ;;  %s1338_s6 = inlined_call_operand.vmem [shape: bf16[128,128], index: 6, kind: input, shape index: {}]   ;;  %s1339_s7 = inlined_call_operand.vmem [shape: bf16[128,128], index: 7, kind: input, shape index: {}]   ;;  %s1340_s8 = inlined_call_operand.vmem [shape: bf16[128,128], index: 8, kind: input, shape index: {}]   ;;  %s1341_s9 = inlined_call_operand.vmem [shape: bf16[128,128], index: 9, kind: output, shape index: {}]  }
   0x1 LB: > { %s912_s10 = sadd.s32 4294967295, %s1163_s30   ;;  %p916_p0 = scmp.ge.s32.totalorder %s1163_s30, 1  ;;  %s1163_s30 = sphi %s1215_s30, %s19_s30  }
   0x2   : > { %p376_p1 = scmp.lt.s32.totalorder %s1163_s30, 3 }
   0x4   : > { %p377_p2 = pnand %p916_p0, %p376_p1 }
   0x5   : > { %s917_s11 = sshll.u32 (!%p377_p2), %s912_s10, 3 }
   0x6   : > { %380 = sbr.rel (%p377_p2) target bundleno = 62 (0x3e), region = 56  ;;  %p453_p3 = scmp.lt.s32.totalorder (!%p377_p2), %s917_s11, 15 }
   0xd   : > { %s1343_s11 = smov (!%p453_p3, %s917_s11), 15 }
   0xe   : > { %s1223_s12 = sshll.u32 %s1343_s11, 2 }
   0xf   : > { %s1229_s15 = scalar_lea.vmem %s1332_s0, %s1223_s12  ;;  %s1235_s18 = scalar_lea.vmem %s1333_s1, %s1223_s12 }
  0x10   : > { %s1241_s21 = scalar_lea.vmem %s1334_s2, %s1223_s12  ;;  %s1247_s24 = scalar_lea.vmem %s1335_s3, %s1223_s12  ;;  %v956_v0 = vld [vmem:[%s1229_s15] sm:$0xff]   ;;  %v1119_v19 = vld [vmem:[%s1229_s15 + $0x8] sm:$0xff]   ;;  %v1120_v61 = vld [vmem:[%s1229_s15 + $0x10] sm:$0xff]  }
  0x11   : > { %v972_v1 = vld [vmem:[%s1235_s18] sm:$0xff]   ;;  %s1255_s27 = scalar_lea.vmem %s1336_s4, %s1223_s12  ;;  %s1261_s10 = scalar_lea.vmem %s1337_s5, %s1223_s12  ;;  %v957_v2 = vunpack.c.l.bf16 %v956_v0  ;;  %v958_v3 = vunpack.c.h.bf16 %v956_v0  ;;  %v1122_v25 = vld [vmem:[%s1235_s18 + $0x8] sm:$0xff]   ;;  %v961_v34 = vunpack.c.l.bf16 %v1119_v19  ;;  %v962_v35 = vunpack.c.h.bf16 %v1119_v19 }
  0x12   : > { %v973_v4 = vunpack.c.l.bf16 %v972_v1  ;;  %v974_v5 = vunpack.c.h.bf16 %v972_v1  ;;  %v988_v6 = vld [vmem:[%s1241_s21] sm:$0xff]   ;;  %s1269_s14 = scalar_lea.vmem %s1338_s6, %s1223_s12  ;;  %s1275_s19 = scalar_lea.vmem %s1339_s7, %s1223_s12  ;;  %v1125_v30 = vld [vmem:[%s1241_s21 + $0x8] sm:$0xff]   ;;  %v977_v38 = vunpack.c.l.bf16 %v1122_v25  ;;  %v978_v39 = vunpack.c.h.bf16 %v1122_v25  ;;  %v1132_v25 = vld [vmem:[%s1255_s27 + $0x10] sm:$0xff]  }
  0x13   : > { %v1004_v7 = vld [vmem:[%s1247_s24] sm:$0xff]   ;;  %v989_v8 = vunpack.c.l.bf16 %v988_v6  ;;  %v990_v9 = vunpack.c.h.bf16 %v988_v6  ;;  %s1283_s23 = scalar_lea.vmem %s1340_s8, %s1223_s12  ;;  %v1128_v31 = vld [vmem:[%s1247_s24 + $0x8] sm:$0xff]   ;;  %v993_v42 = vunpack.c.l.bf16 %v1125_v30  ;;  %v994_v43 = vunpack.c.h.bf16 %v1125_v30  ;;  %v1123_v6 = vld [vmem:[%s1235_s18 + $0x10] sm:$0xff]   ;;  %s1310_s28 = scalar_lea.vmem %s1341_s9, %s1223_s12 }
  0x14   : > { %v1005_v10 = vunpack.c.l.bf16 %v1004_v7  ;;  %v1020_v11 = vld [vmem:[%s1255_s27] sm:$0xff]   ;;  %v544_v13 = vmax.f32 %v957_v2, %v973_v4  ;;  %v545_v14 = vmax.f32 %v958_v3, %v974_v5  ;;  %v1006_v15 = vunpack.c.h.bf16 %v1004_v7  ;;  %v1131_v40 = vld [vmem:[%s1255_s27 + $0x8] sm:$0xff]   ;;  %v1126_v7 = vld [vmem:[%s1241_s21 + $0x10] sm:$0xff]  }
  0x15   : > { %v1036_v12 = vld [vmem:[%s1261_s10] sm:$0xff]   ;;  %v1021_v16 = vunpack.c.l.bf16 %v1020_v11  ;;  %v1022_v20 = vunpack.c.h.bf16 %v1020_v11  ;;  %v1134_v41 = vld [vmem:[%s1261_s10 + $0x8] sm:$0xff]   ;;  %v1009_v44 = vunpack.c.l.bf16 %v1128_v31  ;;  %v1010_v45 = vunpack.c.h.bf16 %v1128_v31  ;;  %v1135_v30 = vld [vmem:[%s1261_s10 + $0x10] sm:$0xff]  }
  0x16   : > { %v1052_v17 = vld [vmem:[%s1269_s14] sm:$0xff]   ;;  %v1037_v21 = vunpack.c.l.bf16 %v1036_v12  ;;  %v1038_v22 = vunpack.c.h.bf16 %v1036_v12  ;;  %v568_v26 = vmax.f32 %v544_v13, %v989_v8  ;;  %v569_v27 = vmax.f32 %v545_v14, %v990_v9  ;;  %v1137_v50 = vld [vmem:[%s1269_s14 + $0x8] sm:$0xff]  }
  0x17   : > { %v1068_v18 = vld [vmem:[%s1275_s19] sm:$0xff]   ;;  %v1053_v23 = vunpack.c.l.bf16 %v1052_v17  ;;  %v1054_v28 = vunpack.c.h.bf16 %v1052_v17  ;;  %v546_v48 = vmax.f32 %v961_v34, %v977_v38  ;;  %v547_v49 = vmax.f32 %v962_v35, %v978_v39  ;;  %v1140_v51 = vld [vmem:[%s1275_s19 + $0x8] sm:$0xff]   ;;  %v1138_v35 = vld [vmem:[%s1269_s14 + $0x10] sm:$0xff]  }
  0x18   : > { %v1289_v24 = vld [vmem:[%s1283_s23] sm:$0xff]   ;;  %v1069_v29 = vunpack.c.l.bf16 %v1068_v18  ;;  %v1070_v32 = vunpack.c.h.bf16 %v1068_v18  ;;  %v592_v36 = vmax.f32 %v568_v26, %v1005_v10  ;;  %v593_v37 = vmax.f32 %v569_v27, %v1006_v15  ;;  %v1143_v60 = vld [vmem:[%s1283_s23 + $0x8] sm:$0xff]  }
  0x19   : > { %v1085_v33 = vunpack.c.l.bf16 %v1289_v24  ;;  %v1086_v52 = vunpack.c.h.bf16 %v1289_v24  ;;  %v1025_v53 = vunpack.c.l.bf16 %v1131_v40  ;;  %v1026_v54 = vunpack.c.h.bf16 %v1131_v40  ;;  %v1141_v40 = vld [vmem:[%s1275_s19 + $0x10] sm:$0xff]  }
  0x1a   : > { %v616_v46 = vmax.f32 %v592_v36, %v1021_v16  ;;  %v617_v47 = vmax.f32 %v593_v37, %v1022_v20  ;;  %v1041_v55 = vunpack.c.l.bf16 %v1134_v41  ;;  %v570_v58 = vmax.f32 %v546_v48, %v993_v42  ;;  %v1129_v16 = vld [vmem:[%s1247_s24 + $0x10] sm:$0xff]  }
  0x1b   : > { %v571_v59 = vmax.f32 %v547_v49, %v994_v43  ;;  %v1042_v62 = vunpack.c.h.bf16 %v1134_v41  ;;  %v1057_v63 = vunpack.c.l.bf16 %v1137_v50  ;;  %v1058_v0 = vunpack.c.h.bf16 %v1137_v50  ;;  %v1124_v49 = vld [vmem:[%s1235_s18 + $0x18] sm:$0xff]  }
  0x1c   : > { %v640_v56 = vmax.f32 %v616_v46, %v1037_v21  ;;  %v641_v57 = vmax.f32 %v617_v47, %v1038_v22  ;;  %v1073_v1 = vunpack.c.l.bf16 %v1140_v51  ;;  %v594_v4 = vmax.f32 %v570_v58, %v1009_v44  ;;  %v1121_v44 = vld [vmem:[%s1229_s15 + $0x18] sm:$0xff]  }
  0x1d   : > { %v595_v5 = vmax.f32 %v571_v59, %v1010_v45  ;;  %v1074_v8 = vunpack.c.h.bf16 %v1140_v51  ;;  %v1089_v9 = vunpack.c.l.bf16 %v1143_v60  ;;  %v965_v10 = vunpack.c.l.bf16 %v1120_v61  ;;  %v1130_v59 = vld [vmem:[%s1247_s24 + $0x18] sm:$0xff]  }
  0x1e   : > { %v664_v2 = vmax.f32 %v640_v56, %v1053_v23  ;;  %v665_v3 = vmax.f32 %v641_v57, %v1054_v28  ;;  %v966_v11 = vunpack.c.h.bf16 %v1120_v61  ;;  %v618_v14 = vmax.f32 %v594_v4, %v1025_v53  ;;  %v1144_v61 = vld [vmem:[%s1283_s23 + $0x10] sm:$0xff]  }
  0x1f   : > { %v619_v15 = vmax.f32 %v595_v5, %v1026_v54  ;;  %v981_v17 = vunpack.c.l.bf16 %v1123_v6  ;;  %v982_v18 = vunpack.c.h.bf16 %v1123_v6  ;;  %v997_v19 = vunpack.c.l.bf16 %v1126_v7  ;;  %v1127_v54 = vld [vmem:[%s1241_s21 + $0x18] sm:$0xff]  }
  0x20   : > { %v688_v12 = vmax.f32 %v664_v2, %v1069_v29  ;;  %v689_v13 = vmax.f32 %v665_v3, %v1070_v32  ;;  %v998_v20 = vunpack.c.h.bf16 %v1126_v7  ;;  %v642_v23 = vmax.f32 %v618_v14, %v1041_v55  ;;  %v1133_v5 = vld [vmem:[%s1255_s27 + $0x18] sm:$0xff]  }
  0x21   : > { %v643_v24 = vmax.f32 %v619_v15, %v1042_v62  ;;  %v548_v26 = vmax.f32 %v965_v10, %v981_v17  ;;  %v549_v27 = vmax.f32 %v966_v11, %v982_v18  ;;  %v1013_v28 = vunpack.c.l.bf16 %v1129_v16  ;;  %v1136_v14 = vld [vmem:[%s1261_s10 + $0x18] sm:$0xff]  }
  0x22   : > { %v712_v21 = vmax.f32 %v688_v12, %v1085_v33  ;;  %v713_v22 = vmax.f32 %v689_v13, %v1086_v52  ;;  %v1014_v29 = vunpack.c.h.bf16 %v1129_v16  ;;  %v666_v32 = vmax.f32 %v642_v23, %v1057_v63 }
  0x23   : > { %v667_v33 = vmax.f32 %v643_v24, %v1058_v0  ;;  %v1090_v34 = vunpack.c.h.bf16 %v1143_v60  ;;  %v572_v36 = vmax.f32 %v548_v26, %v997_v19  ;;  %v573_v37 = vmax.f32 %v549_v27, %v998_v20 }
  0x24   : > { %v1102_v31 = vpack.c.bf16 %v713_v22, %v712_v21  ;;  %v1029_v38 = vunpack.c.l.bf16 %v1132_v25  ;;  %v1030_v39 = vunpack.c.h.bf16 %v1132_v25  ;;  %v690_v41 = vmax.f32 %v666_v32, %v1073_v1  ;;  %v1139_v21 = vld [vmem:[%s1269_s14 + $0x18] sm:$0xff]  }
  0x25   : > { %v691_v42 = vmax.f32 %v667_v33, %v1074_v8  ;;  %v1045_v43 = vunpack.c.l.bf16 %v1135_v30  ;;  %v596_v45 = vmax.f32 %v572_v36, %v1013_v28  ;;  %v597_v46 = vmax.f32 %v573_v37, %v1014_v29  ;;  %v1142_v28 = vld [vmem:[%s1275_s19 + $0x18] sm:$0xff]  }
  0x26   : > { %1103 = vst [vmem:[%s1310_s28] sm:$0xff] %v1102_v31   ;;  %v1046_v47 = vunpack.c.h.bf16 %v1135_v30  ;;  %v1061_v48 = vunpack.c.l.bf16 %v1138_v35  ;;  %v714_v50 = vmax.f32 %v690_v41, %v1089_v9  ;;  %v1062_v52 = vunpack.c.h.bf16 %v1138_v35 }
  0x27   : > { %v715_v51 = vmax.f32 %v691_v42, %v1090_v34  ;;  %v1077_v53 = vunpack.c.l.bf16 %v1141_v40  ;;  %v620_v55 = vmax.f32 %v596_v45, %v1029_v38  ;;  %v621_v56 = vmax.f32 %v597_v46, %v1030_v39  ;;  %v1145_v34 = vld [vmem:[%s1283_s23 + $0x18] sm:$0xff]  }
  0x28   : > { %v1078_v57 = vunpack.c.h.bf16 %v1141_v40  ;;  %v969_v58 = vunpack.c.l.bf16 %v1121_v44  ;;  %v970_v62 = vunpack.c.h.bf16 %v1121_v44  ;;  %v985_v63 = vunpack.c.l.bf16 %v1124_v49 }
  0x29   : > { %v1107_v60 = vpack.c.bf16 %v715_v51, %v714_v50  ;;  %v986_v0 = vunpack.c.h.bf16 %v1124_v49  ;;  %v644_v1 = vmax.f32 %v620_v55, %v1045_v43  ;;  %v645_v2 = vmax.f32 %v621_v56, %v1046_v47 }
  0x2a   : > { %v1001_v3 = vunpack.c.l.bf16 %v1127_v54  ;;  %v1002_v4 = vunpack.c.h.bf16 %v1127_v54  ;;  %v550_v6 = vmax.f32 %v969_v58, %v985_v63  ;;  %v1017_v8 = vunpack.c.l.bf16 %v1130_v59 }
  0x2b   : > { %1146 = vst [vmem:[%s1310_s28 + $0x8] sm:$0xff] %v1107_v60   ;;  %v551_v7 = vmax.f32 %v970_v62, %v986_v0  ;;  %v1018_v9 = vunpack.c.h.bf16 %v1130_v59  ;;  %v668_v10 = vmax.f32 %v644_v1, %v1061_v48  ;;  %v669_v11 = vmax.f32 %v645_v2, %v1062_v52 }
  0x2c   : > { %v1093_v12 = vunpack.c.l.bf16 %v1144_v61  ;;  %v1094_v13 = vunpack.c.h.bf16 %v1144_v61  ;;  %v574_v15 = vmax.f32 %v550_v6, %v1001_v3  ;;  %v1033_v17 = vunpack.c.l.bf16 %v1133_v5 }
  0x2d   : > { %v575_v16 = vmax.f32 %v551_v7, %v1002_v4  ;;  %v1034_v18 = vunpack.c.h.bf16 %v1133_v5  ;;  %v692_v19 = vmax.f32 %v668_v10, %v1077_v53  ;;  %v693_v20 = vmax.f32 %v669_v11, %v1078_v57 }
  0x2e   : > { %v598_v22 = vmax.f32 %v574_v15, %v1017_v8  ;;  %v1049_v24 = vunpack.c.l.bf16 %v1136_v14  ;;  %v1050_v25 = vunpack.c.h.bf16 %v1136_v14  ;;  %v1065_v31 = vunpack.c.l.bf16 %v1139_v21 }
  0x2f   : > { %v599_v23 = vmax.f32 %v575_v16, %v1018_v9  ;;  %v716_v26 = vmax.f32 %v692_v19, %v1093_v12  ;;  %v717_v27 = vmax.f32 %v693_v20, %v1094_v13  ;;  %v1066_v32 = vunpack.c.h.bf16 %v1139_v21 }
  0x30   : > { %v622_v29 = vmax.f32 %v598_v22, %v1033_v17  ;;  %v1081_v37 = vunpack.c.l.bf16 %v1142_v28  ;;  %v1082_v38 = vunpack.c.h.bf16 %v1142_v28  ;;  %v1097_v41 = vunpack.c.l.bf16 %v1145_v34 }
  0x31   : > { %v623_v30 = vmax.f32 %v599_v23, %v1034_v18  ;;  %v1112_v33 = vpack.c.bf16 %v717_v27, %v716_v26  ;;  %v1098_v42 = vunpack.c.h.bf16 %v1145_v34 }
  0x32   : > { %v646_v35 = vmax.f32 %v622_v29, %v1049_v24 }
  0x33   : > { %v647_v36 = vmax.f32 %v623_v30, %v1050_v25  ;;  %1147 = vst [vmem:[%s1310_s28 + $0x10] sm:$0xff] %v1112_v33  }
  0x34   : > { %v670_v39 = vmax.f32 %v646_v35, %v1065_v31 }
  0x35   : > { %v671_v40 = vmax.f32 %v647_v36, %v1066_v32 }
  0x36   : > { %v694_v43 = vmax.f32 %v670_v39, %v1081_v37 }
  0x37   : > { %v695_v44 = vmax.f32 %v671_v40, %v1082_v38 }
  0x38   : > { %v718_v45 = vmax.f32 %v694_v43, %v1097_v41 }
  0x39   : > { %v719_v46 = vmax.f32 %v695_v44, %v1098_v42 }
  0x3b   : > { %v1117_v47 = vpack.c.bf16 %v719_v46, %v718_v45 }
  0x3d   : > { %1148 = vst [vmem:[%s1310_s28 + $0x18] sm:$0xff] %v1117_v47  }
  0x3e PF: > { %s19_s30 = sadd.s32 1, %s1163_s30  }
  0x3f   : > { %p16_p4 = scmp.ge.s32.totalorder %s19_s30, 4  }
  0x41   :  { %18 = sbr.rel (!%p16_p4) target bundleno = 1 (0x1), region = 110 }

// kernel: resnet_backbone_forward.29
= control target key start
LH: loop header
LB: loop body
LE: loop exit
PB: predicated region body
PF: predicated region fallthrough
CT: control target
= control target key end

     0   :  { %s431_s12 = smov 0   ;;  %s461_s0 = inlined_call_operand.vmem [shape: bf16[128,128], index: 0, kind: input, shape index: {}, may-alias: {0,3}]   ;;  %s462_s1 = inlined_call_operand.vmem [shape: f32[1,128], index: 1, kind: input, shape index: {}]   ;;  %s463_s2 = inlined_call_operand.vmem [shape: f32[1,128], index: 2, kind: input, shape index: {}]   ;;  %s464_s3 = inlined_call_operand.vmem [shape: bf16[128,128], index: 3, kind: output, shape index: {}, may-alias: {0,3}]  }
   0x1 LB: > { %s324_s13 = sadd.s32 4294967295, %s409_s12   ;;  %p328_p0 = scmp.ge.s32.totalorder %s409_s12, 1  ;;  %s409_s12 = sphi %s431_s12, %s13_s12  }
   0x2   : > { %p138_p1 = scmp.lt.s32.totalorder %s409_s12, 3 }
   0x4   : > { %p139_p2 = pnand %p328_p0, %p138_p1 }
   0x5   : > { %s329_s14 = sshll.u32 (!%p139_p2), %s324_s13, 3  ;;  %v333_v0 = vld [vmem:[%s462_s1] ss:$0 sm:$0xff] (!%p139_p2) }
   0x6   : > { %142 = sbr.rel (%p139_p2) target bundleno = 29 (0x1d), region = 32  ;;  %p163_p3 = scmp.lt.s32.totalorder (!%p139_p2), %s329_s14, 15  ;;  %v334_v13 = vld [vmem:[%s463_s2] ss:$0 sm:$0xff] (!%p139_p2) }
   0xd   : > { %s466_s14 = smov (!%p163_p3, %s329_s14), 15 }
   0xe   : > { %s330_s15 = sshll.u32 %s466_s14, 2 }
   0xf   : > { %s166_s18 = scalar_lea.vmem %s461_s0, %s330_s15  ;;  %s172_s25 = scalar_lea.vmem %s464_s3, %s330_s15 }
  0x10   : > { %v354_v1 = vld [vmem:[%s166_s18] sm:$0xff]   ;;  %v389_v2 = vld [vmem:[%s166_s18 + $0x8] sm:$0xff]   ;;  %v390_v3 = vld [vmem:[%s166_s18 + $0x10] sm:$0xff]  }
  0x11   : > { %v355_v4 = vunpack.c.l.bf16 %v354_v1  ;;  %v356_v5 = vunpack.c.h.bf16 %v354_v1  ;;  %v359_v6 = vunpack.c.l.bf16 %v389_v2  ;;  %v360_v7 = vunpack.c.h.bf16 %v389_v2  ;;  %v391_v8 = vld [vmem:[%s166_s18 + $0x18] sm:$0xff]  }
  0x12   : > { %v363_v9 = vunpack.c.l.bf16 %v390_v3  ;;  %v364_v10 = vunpack.c.h.bf16 %v390_v3  ;;  %v367_v11 = vunpack.c.l.bf16 %v391_v8  ;;  %v368_v12 = vunpack.c.h.bf16 %v391_v8 }
  0x13   : > { %v197_v14 = vmul.f32 %v355_v4, %v333_v0  ;;  %v198_v15 = vmul.f32 %v356_v5, %v333_v0  ;;  %v199_v16 = vmul.f32 %v359_v6, %v333_v0  ;;  %v200_v17 = vmul.f32 %v360_v7, %v333_v0 }
  0x14   : > { %v201_v18 = vmul.f32 %v363_v9, %v333_v0  ;;  %v202_v19 = vmul.f32 %v364_v10, %v333_v0  ;;  %v203_v20 = vmul.f32 %v367_v11, %v333_v0  ;;  %v204_v21 = vmul.f32 %v368_v12, %v333_v0 }
  0x15   : > { %v212_v22 = vadd.f32 %v334_v13, %v197_v14  ;;  %v213_v23 = vadd.f32 %v334_v13, %v198_v15  ;;  %v214_v24 = vadd.f32 %v334_v13, %v199_v16  ;;  %v215_v25 = vadd.f32 %v334_v13, %v200_v17 }
  0x16   : > { %v216_v26 = vadd.f32 %v334_v13, %v201_v18  ;;  %v217_v27 = vadd.f32 %v334_v13, %v202_v19  ;;  %v218_v28 = vadd.f32 %v334_v13, %v203_v20  ;;  %v219_v29 = vadd.f32 %v334_v13, %v204_v21 }
  0x17   : > { %v220_v30 = vmax.f32 %v212_v22, 0.0  ;;  %v221_v31 = vmax.f32 %v213_v23, 0.0  ;;  %v222_v32 = vmax.f32 %v214_v24, 0.0  ;;  %v223_v33 = vmax.f32 %v215_v25, 0.0 }
  0x18   : > { %v224_v34 = vmax.f32 %v216_v26, 0.0  ;;  %v225_v35 = vmax.f32 %v217_v27, 0.0  ;;  %v226_v36 = vmax.f32 %v218_v28, 0.0  ;;  %v227_v37 = vmax.f32 %v219_v29, 0.0 }
  0x19   : > { %v372_v38 = vpack.c.bf16 %v221_v31, %v220_v30  ;;  %v377_v39 = vpack.c.bf16 %v223_v33, %v222_v32 }
  0x1a   : > { %v382_v40 = vpack.c.bf16 %v225_v35, %v224_v34  ;;  %v387_v41 = vpack.c.bf16 %v227_v37, %v226_v36 }
  0x1b   : > { %373 = vst [vmem:[%s172_s25] sm:$0xff] %v372_v38   ;;  %392 = vst [vmem:[%s172_s25 + $0x8] sm:$0xff] %v377_v39  }
  0x1c   : > { %393 = vst [vmem:[%s172_s25 + $0x10] sm:$0xff] %v382_v40   ;;  %394 = vst [vmem:[%s172_s25 + $0x18] sm:$0xff] %v387_v41  }
  0x1d PF: > { %s13_s12 = sadd.s32 1, %s409_s12  }
  0x1e   : > { %p10_p4 = scmp.ge.s32.totalorder %s13_s12, 4  }
  0x20   :  { %12 = sbr.rel (!%p10_p4) target bundleno = 1 (0x1), region = 62 }

// kernel: resnet_backbone_forward.31
= control target key start
LH: loop header
LB: loop body
LE: loop exit
PB: predicated region body
PF: predicated region fallthrough
CT: control target
= control target key end

     0   :  { %s542_s15 = smov 0   ;;  %s573_s0 = inlined_call_operand.vmem [shape: bf16[128,128], index: 0, kind: input, shape index: {}, may-alias: {0,4}]   ;;  %s574_s1 = inlined_call_operand.vmem [shape: f32[1,128], index: 1, kind: input, shape index: {}]   ;;  %s575_s2 = inlined_call_operand.vmem [shape: f32[1,128], index: 2, kind: input, shape index: {}]   ;;  %s576_s3 = inlined_call_operand.vmem [shape: bf16[128,128], index: 3, kind: input, shape index: {}]   ;;  %s577_s4 = inlined_call_operand.vmem [shape: bf16[128,128], index: 4, kind: output, shape index: {}, may-alias: {0,4}]  }
   0x1 LB: > { %s409_s16 = sadd.s32 4294967295, %s515_s15   ;;  %p413_p0 = scmp.ge.s32.totalorder %s515_s15, 1  ;;  %s515_s15 = sphi %s542_s15, %s14_s15  }
   0x2   : > { %p174_p1 = scmp.lt.s32.totalorder %s515_s15, 3 }
   0x4   : > { %p175_p2 = pnand %p413_p0, %p174_p1 }
   0x5   : > { %s414_s17 = sshll.u32 (!%p175_p2), %s409_s16, 3  ;;  %v420_v0 = vld [vmem:[%s574_s1] ss:$0 sm:$0xff] (!%p175_p2) }
   0x6   : > { %178 = sbr.rel (%p175_p2) target bundleno = 33 (0x21), region = 36  ;;  %p206_p3 = scmp.lt.s32.totalorder (!%p175_p2), %s414_s17, 15  ;;  %v421_v13 = vld [vmem:[%s575_s2] ss:$0 sm:$0xff] (!%p175_p2) }
   0xd   : > { %s579_s17 = smov (!%p206_p3, %s414_s17), 15 }
   0xe   : > { %s550_s18 = sshll.u32 %s579_s17, 2 }
   0xf   : > { %s209_s21 = scalar_lea.vmem %s573_s0, %s550_s18  ;;  %s215_s26 = scalar_lea.vmem %s576_s3, %s550_s18 }
  0x10   : > { %v441_v1 = vld [vmem:[%s209_s21] sm:$0xff]   ;;  %v492_v2 = vld [vmem:[%s209_s21 + $0x8] sm:$0xff]   ;;  %v493_v3 = vld [vmem:[%s209_s21 + $0x10] sm:$0xff]   ;;  %s221_s5 = scalar_lea.vmem %s577_s4, %s550_s18 }
  0x11   : > { %v442_v4 = vunpack.c.l.bf16 %v441_v1  ;;  %v443_v5 = vunpack.c.h.bf16 %v441_v1  ;;  %v446_v6 = vunpack.c.l.bf16 %v492_v2  ;;  %v447_v7 = vunpack.c.h.bf16 %v492_v2  ;;  %v494_v8 = vld [vmem:[%s209_s21 + $0x18] sm:$0xff]   ;;  %v457_v22 = vld [vmem:[%s215_s26] sm:$0xff]   ;;  %v495_v23 = vld [vmem:[%s215_s26 + $0x8] sm:$0xff]  }
  0x12   : > { %v450_v9 = vunpack.c.l.bf16 %v493_v3  ;;  %v451_v10 = vunpack.c.h.bf16 %v493_v3  ;;  %v454_v11 = vunpack.c.l.bf16 %v494_v8  ;;  %v455_v12 = vunpack.c.h.bf16 %v494_v8  ;;  %v496_v28 = vld [vmem:[%s215_s26 + $0x10] sm:$0xff]   ;;  %v497_v29 = vld [vmem:[%s215_s26 + $0x18] sm:$0xff]  }
  0x13   : > { %v246_v14 = vmul.f32 %v442_v4, %v420_v0  ;;  %v247_v15 = vmul.f32 %v443_v5, %v420_v0  ;;  %v248_v16 = vmul.f32 %v446_v6, %v420_v0  ;;  %v249_v17 = vmul.f32 %v447_v7, %v420_v0 }
  0x14   : > { %v250_v18 = vmul.f32 %v450_v9, %v420_v0  ;;  %v251_v19 = vmul.f32 %v451_v10, %v420_v0  ;;  %v252_v20 = vmul.f32 %v454_v11, %v420_v0  ;;  %v253_v21 = vmul.f32 %v455_v12, %v420_v0 }
  0x15   : > { %v261_v24 = vadd.f32 %v421_v13, %v246_v14  ;;  %v262_v25 = vadd.f32 %v421_v13, %v247_v15  ;;  %v263_v26 = vadd.f32 %v421_v13, %v248_v16  ;;  %v264_v27 = vadd.f32 %v421_v13, %v249_v17 }
  0x16   : > { %v265_v30 = vadd.f32 %v421_v13, %v250_v18  ;;  %v266_v31 = vadd.f32 %v421_v13, %v251_v19  ;;  %v267_v32 = vadd.f32 %v421_v13, %v252_v20  ;;  %v268_v33 = vadd.f32 %v421_v13, %v253_v21 }
  0x17   : > { %v458_v34 = vunpack.c.l.bf16 %v457_v22  ;;  %v459_v35 = vunpack.c.h.bf16 %v457_v22  ;;  %v462_v36 = vunpack.c.l.bf16 %v495_v23  ;;  %v463_v37 = vunpack.c.h.bf16 %v495_v23 }
  0x18   : > { %v466_v38 = vunpack.c.l.bf16 %v496_v28  ;;  %v467_v39 = vunpack.c.h.bf16 %v496_v28  ;;  %v470_v40 = vunpack.c.l.bf16 %v497_v29  ;;  %v471_v41 = vunpack.c.h.bf16 %v497_v29 }
  0x19   : > { %v285_v42 = vadd.f32 %v458_v34, %v261_v24  ;;  %v286_v43 = vadd.f32 %v459_v35, %v262_v25  ;;  %v287_v44 = vadd.f32 %v462_v36, %v263_v26  ;;  %v288_v45 = vadd.f32 %v463_v37, %v264_v27 }
  0x1a   : > { %v289_v46 = vadd.f32 %v466_v38, %v265_v30  ;;  %v290_v47 = vadd.f32 %v467_v39, %v266_v31  ;;  %v291_v48 = vadd.f32 %v470_v40, %v267_v32  ;;  %v292_v49 = vadd.f32 %v471_v41, %v268_v33 }
  0x1b   : > { %v293_v50 = vmax.f32 %v285_v42, 0.0  ;;  %v294_v51 = vmax.f32 %v286_v43, 0.0  ;;  %v295_v52 = vmax.f32 %v287_v44, 0.0  ;;  %v296_v53 = vmax.f32 %v288_v45, 0.0 }
  0x1c   : > { %v297_v54 = vmax.f32 %v289_v46, 0.0  ;;  %v298_v55 = vmax.f32 %v290_v47, 0.0  ;;  %v299_v56 = vmax.f32 %v291_v48, 0.0  ;;  %v300_v57 = vmax.f32 %v292_v49, 0.0 }
  0x1d   : > { %v475_v58 = vpack.c.bf16 %v294_v51, %v293_v50  ;;  %v480_v59 = vpack.c.bf16 %v296_v53, %v295_v52 }
  0x1e   : > { %v485_v60 = vpack.c.bf16 %v298_v55, %v297_v54  ;;  %v490_v61 = vpack.c.bf16 %v300_v57, %v299_v56 }
  0x1f   : > { %476 = vst [vmem:[%s221_s5] sm:$0xff] %v475_v58   ;;  %498 = vst [vmem:[%s221_s5 + $0x8] sm:$0xff] %v480_v59  }
  0x20   : > { %499 = vst [vmem:[%s221_s5 + $0x10] sm:$0xff] %v485_v60   ;;  %500 = vst [vmem:[%s221_s5 + $0x18] sm:$0xff] %v490_v61  }
  0x21 PF: > { %s14_s15 = sadd.s32 1, %s515_s15  }
  0x22   : > { %p11_p4 = scmp.ge.s32.totalorder %s14_s15, 4  }
  0x24   :  { %13 = sbr.rel (!%p11_p4) target bundleno = 1 (0x1), region = 69 }

// kernel: resnet_backbone_forward.32
= control target key start
LH: loop header
LB: loop body
LE: loop exit
PB: predicated region body
PF: predicated region fallthrough
CT: control target
= control target key end

     0   :  { %s522_s12 = smov 0   ;;  %s571_s0 = inlined_call_operand.vmem [shape: bf16[32,128], index: 0, kind: input, shape index: {}]   ;;  %s572_s1 = inlined_call_operand.vmem [shape: bf16[128,128], index: 1, kind: input, shape index: {}]   ;;  %s573_s2 = inlined_call_operand.vmem [shape: bf16[32,128], index: 2, kind: output, shape index: {0}]   ;;  %s574_s3 = inlined_call_operand.vmem [shape: f32[16,128], index: 3, kind: output, shape index: {1}]  }
   0x1 LB: > { %s528_s13 = sadd.s32 4294967295, %s498_s12   ;;  %p418_p0 = scmp.ge.s32.totalorder %s498_s12, 1  ;;  %s498_s12 = sphi %s522_s12, %s14_s12  }
   0x2   : > { %p141_p1 = scmp.lt.s32.totalorder %s498_s12, 3 }
   0x4   : > { %p142_p2 = pnand %p418_p0, %p141_p1 }
   0x5   : > { %v483_v0 = vld [vmem:[%s572_s1] sm:$0xff] (!%p142_p2)   ;;  %v500_v1 = vmov (!%p142_p2), 0.0   ;;  %v484_v2 = vld [vmem:[%s572_s1 + $0x8] sm:$0xff] (!%p142_p2)   ;;  %vm501_vm0 = vmmov (!%p142_p2), 0   ;;  %s419_s18 = sshll.u32 (!%p142_p2), %s528_s13, 1  ;;  %v485_v3 = vld [vmem:[%s572_s1 + $0x10] sm:$0xff] (!%p142_p2)  }
   0x6   : > { %145 = sbr.rel (%p142_p2) target bundleno = 269 (0x10d), region = 28  ;;  %453 = vmatprep.subr.bf16.mxu0 (!%p142_p2), %v500_v1  ;;  %469 = vmatprep.mubr.msk.bf16.mxu0 (!%p142_p2), %vm501_vm0, %v500_v1  ;;  %p170_p3 = scmp.lt.s32.totalorder (!%p142_p2), %s419_s18, 3  ;;  %v486_v4 = vld [vmem:[%s572_s1 + $0x18] sm:$0xff] (!%p142_p2)   ;;  %v487_v5 = vld [vmem:[%s572_s1 + $0x20] sm:$0xff] (!%p142_p2)   ;;  %v488_v6 = vld [vmem:[%s572_s1 + $0x28] sm:$0xff] (!%p142_p2)  }
   0x7   : > { %454 = vmatpush3.bf16.msra.mxu0 (!%p142_p2), %v483_v0  ;;  %v489_v7 = vld [vmem:[%s572_s1 + $0x30] sm:$0xff] (!%p142_p2)   ;;  %v490_v8 = vld [vmem:[%s572_s1 + $0x38] sm:$0xff] (!%p142_p2)   ;;  %p181_p4 = scmp.lt.s32.totalorder (!%p142_p2), %s528_s13, 1 }
   0x8   : > { %455 = vmatprep.subr.bf16.mxu0 (!%p142_p2), %v500_v1 }
   0xb   : > { %456 = vmatpush3.bf16.msra.mxu0 (!%p142_p2), %v484_v2 }
   0xc   : > { %457 = vmatprep.subr.bf16.mxu0 (!%p142_p2), %v500_v1 }
   0xd   : > { %s576_s18 = smov (!%p170_p3, %s419_s18), 3  ;;  %s578_s13 = smov (!%p181_p4, %s528_s13), 1 }
   0xe   : > { %s420_s21 = sshll.u32 %s576_s18, 2  ;;  %s423_s11 = sshll.u32 %s578_s13, 3 }
   0xf   : > { %s173_s24 = scalar_lea.vmem %s571_s0, %s420_s21  ;;  %458 = vmatpush3.bf16.msra.mxu0 %v485_v3  ;;  %s179_s10 = scalar_lea.vmem %s573_s2, %s420_s21 }
  0x10   : > { %459 = vmatprep.subr.bf16.mxu0 %v500_v1  ;;  %v491_v9 = vld [vmem:[%s173_s24] sm:$0xff]   ;;  %s184_s16 = scalar_lea.vmem %s574_s3, %s423_s11 }
  0x13   : > { %460 = vmatpush3.bf16.msra.mxu0 %v486_v4 }
  0x14   : > { %461 = vmatprep.subr.bf16.mxu0 %v500_v1 }
  0x17   : > { %462 = vmatpush3.bf16.msra.mxu0 %v487_v5 }
  0x18   : > { %463 = vmatprep.subr.bf16.mxu0 %v500_v1 }
  0x1b   : > { %464 = vmatpush3.bf16.msra.mxu0 %v488_v6 }
  0x1c   : > { %465 = vmatprep.subr.bf16.mxu0 %v500_v1 }
  0x1f   : > { %466 = vmatpush3.bf16.msra.mxu0 %v489_v7 }
  0x20   : > { %467 = vmatprep.subr.bf16.mxu0 %v500_v1 }
  0x23   : > { %468 = vmatpush3.bf16.msra.mxu0 %v490_v8 }
  0x26   : > { %470 = vmatmul.mubr.bf16.vlgmr.msra.gmra.mrb[0].mxu0 %v491_v9 }
  0xf9   : > { %v292_v10 = vpop.f32.mrb[0].mxu0 }
  0xfa   : > { %v471_v11 = vpop.f32.mrb[1].mxu0  ;;  %v317_v13 = vmul.f32 %v292_v10, %v292_v10 }
  0xfb   : > { %v295_v12 = vpop.f32.mrb[2].mxu0 }
  0xfc   : > { %v442_v14 = vpack.c.bf16 %v295_v12, %v292_v10  ;;  %v309_v15 = vadd.f32 %v295_v12, %v292_v10  ;;  %v318_v16 = vmul.f32 %v295_v12, %v295_v12  ;;  %v472_v17 = vpop.f32.mrb[3].mxu0 }
  0xfe   : > { %443 = vst [vmem:[%s179_s10] sm:$0xff] %v442_v14   ;;  %v310_v18 = vrot.slane %v309_v15, 4  ;;  %v319_v19 = vadd.f32 %v318_v16, %v317_v13 }
 0x100   : > { %v311_v20 = vadd.f32 %v310_v18, %v309_v15  ;;  %v320_v21 = vrot.slane %v319_v19, 4 }
 0x102   : > { %v312_v22 = vrot.slane %v311_v20, 2  ;;  %v321_v23 = vadd.f32 %v320_v21, %v319_v19 }
 0x104   : > { %v313_v24 = vadd.f32 %v312_v22, %v311_v20  ;;  %v322_v25 = vrot.slane %v321_v23, 2 }
 0x106   : > { %v314_v26 = vrot.slane %v313_v24, 1  ;;  %v323_v27 = vadd.f32 %v322_v25, %v321_v23 }
 0x108   : > { %v315_v28 = vadd.f32 %v314_v26, %v313_v24  ;;  %v324_v29 = vrot.slane %v323_v27, 1 }
 0x10a   : > { %316 = vst [vmem:[%s184_s16] sm:$0x1] %v315_v28  ;;  %v325_v30 = vadd.f32 %v324_v29, %v323_v27 }
 0x10c   : > { %326 = vst [vmem:[%s184_s16 + $0x1] sm:$0x1] %v325_v30 }
 0x10d PF: > { %s14_s12 = sadd.s32 1, %s498_s12  }
 0x10e   : > { %p11_p5 = scmp.ge.s32.totalorder %s14_s12, 4  }
 0x110   :  { %13 = sbr.rel (!%p11_p5) target bundleno = 1 (0x1), region = 70 }

// kernel: resnet_backbone_forward.33
= control target key start
LH: loop header
LB: loop body
LE: loop exit
PB: predicated region body
PF: predicated region fallthrough
CT: control target
= control target key end

     0   :  { %s324_s12 = smov 0   ;;  %s341_s0 = inlined_call_operand.vmem [shape: bf16[32,128], index: 0, kind: input, shape index: {}, may-alias: {0,3}]   ;;  %s342_s1 = inlined_call_operand.vmem [shape: f32[1,128], index: 1, kind: input, shape index: {}]   ;;  %s343_s2 = inlined_call_operand.vmem [shape: f32[1,128], index: 2, kind: input, shape index: {}]   ;;  %s344_s3 = inlined_call_operand.vmem [shape: bf16[32,128], index: 3, kind: output, shape index: {}, may-alias: {0,3}]  }
   0x1 LB: > { %s262_s13 = sadd.s32 4294967295, %s302_s12   ;;  %p266_p0 = scmp.ge.s32.totalorder %s302_s12, 1  ;;  %s302_s12 = sphi %s324_s12, %s13_s12  }
   0x2   : > { %p138_p1 = scmp.lt.s32.totalorder %s302_s12, 3 }
   0x4   : > { %p139_p2 = pnand %p266_p0, %p138_p1 }
   0x5   : > { %s267_s14 = sshll.u32 (!%p139_p2), %s262_s13, 1  ;;  %v271_v1 = vld [vmem:[%s342_s1] ss:$0 sm:$0xff] (!%p139_p2) }
   0x6   : > { %142 = sbr.rel (%p139_p2) target bundleno = 26 (0x1a), region = 32  ;;  %p163_p3 = scmp.lt.s32.totalorder (!%p139_p2), %s267_s14, 3  ;;  %v272_v4 = vld [vmem:[%s343_s2] ss:$0 sm:$0xff] (!%p139_p2) }
   0xd   : > { %s346_s14 = smov (!%p163_p3, %s267_s14), 3 }
   0xe   : > { %s268_s15 = sshll.u32 %s346_s14, 2 }
   0xf   : > { %s166_s18 = scalar_lea.vmem %s341_s0, %s268_s15  ;;  %s172_s25 = scalar_lea.vmem %s344_s3, %s268_s15 }
  0x10   : > { %v280_v0 = vld [vmem:[%s166_s18] sm:$0xff]  }
  0x11   : > { %v281_v2 = vunpack.c.l.bf16 %v280_v0  ;;  %v282_v3 = vunpack.c.h.bf16 %v280_v0 }
  0x13   : > { %v185_v5 = vmul.f32 %v281_v2, %v271_v1  ;;  %v186_v6 = vmul.f32 %v282_v3, %v271_v1 }
  0x15   : > { %v194_v7 = vadd.f32 %v272_v4, %v185_v5  ;;  %v195_v8 = vadd.f32 %v272_v4, %v186_v6 }
  0x17   : > { %v286_v9 = vpack.c.bf16 %v195_v8, %v194_v7 }
  0x19   : > { %287 = vst [vmem:[%s172_s25] sm:$0xff] %v286_v9  }
  0x1a PF: > { %s13_s12 = sadd.s32 1, %s302_s12  }
  0x1b   : > { %p10_p4 = scmp.ge.s32.totalorder %s13_s12, 4  }
  0x1d   :  { %12 = sbr.rel (!%p10_p4) target bundleno = 1 (0x1), region = 62 }

// kernel: resnet_backbone_forward.28
= control target key start
LH: loop header
LB: loop body
LE: loop exit
PB: predicated region body
PF: predicated region fallthrough
CT: control target
= control target key end

     0   :  { %s2009_s12 = smov 0   ;;  %s2295_s0 = inlined_call_operand.vmem [shape: bf16[128,1152], index: 0, kind: input, shape index: {}]   ;;  %s2296_s1 = inlined_call_operand.vmem [shape: bf16[1152,128], index: 1, kind: input, shape index: {}]   ;;  %s2297_s2 = inlined_call_operand.vmem [shape: bf16[128,128], index: 2, kind: output, shape index: {0}]   ;;  %s2298_s3 = inlined_call_operand.vmem [shape: f32[16,128], index: 3, kind: output, shape index: {1}]  }
   0x1 LB: > { %s2015_s13 = sadd.s32 4294967295, %s1987_s12   ;;  %p1481_p0 = scmp.ge.s32.totalorder %s1987_s12, 1  ;;  %s1987_s12 = sphi %s2009_s12, %s14_s12  }
   0x2   : > { %p142_p1 = scmp.lt.s32.totalorder %s1987_s12, 3 }
   0x4   : > { %p143_p2 = pnand %p1481_p0, %p142_p1 }
   0x5   : > { %v1857_v0 = vld [vmem:[%s2296_s1 + $0x40] sm:$0xff] (!%p143_p2)   ;;  %v1861_v4 = vld [vmem:[%s2296_s1 + $0x48] sm:$0xff] (!%p143_p2)   ;;  %v1865_v8 = vld [vmem:[%s2296_s1 + $0x50] sm:$0xff] (!%p143_p2)   ;;  %s1482_s19 = sshll.u32 (!%p143_p2), %s2015_s13, 3  ;;  %p184_p4 = scmp.lt.s32.totalorder (!%p143_p2), %s2015_s13, 1 }
   0x6   : > { %146 = sbr.rel (%p143_p2) target bundleno = 350 (0x15e), region = 28  ;;  %v1858_v1 = vld [vmem:[%s2296_s1 + $0xc0] sm:$0xff] (!%p143_p2)   ;;  %1636 = vmatprep.subr.bf16.mxu0 (!%p143_p2), %v1857_v0  ;;  %v1862_v5 = vld [vmem:[%s2296_s1 + $0xc8] sm:$0xff] (!%p143_p2)   ;;  %v1866_v9 = vld [vmem:[%s2296_s1 + $0xd0] sm:$0xff] (!%p143_p2)   ;;  %p172_p3 = scmp.lt.s32.totalorder (!%p143_p2), %s1482_s19, 15 }
   0x7   : > { %v1859_v2 = vld [vmem:[%s2296_s1] sm:$0xff] (!%p143_p2)   ;;  %1676 = vmatprep.subr.bf16.mxu1 (!%p143_p2), %v1858_v1  ;;  %v1863_v6 = vld [vmem:[%s2296_s1 + $0x8] sm:$0xff] (!%p143_p2)   ;;  %v1867_v10 = vld [vmem:[%s2296_s1 + $0x10] sm:$0xff] (!%p143_p2)  }
   0x8   : > { %v1860_v3 = vld [vmem:[%s2296_s1 + $0x80] sm:$0xff] (!%p143_p2)   ;;  %1637 = vmatpush3.bf16.msra.mxu0 (!%p143_p2), %v1859_v2  ;;  %v1864_v7 = vld [vmem:[%s2296_s1 + $0x88] sm:$0xff] (!%p143_p2)   ;;  %v1868_v11 = vld [vmem:[%s2296_s1 + $0x90] sm:$0xff] (!%p143_p2)  }
   0x9   : > { %1677 = vmatpush3.bf16.msra.mxu1 (!%p143_p2), %v1860_v3  ;;  %1638 = vmatprep.subr.bf16.mxu0 (!%p143_p2), %v1861_v4  ;;  %v1869_v12 = vld [vmem:[%s2296_s1 + $0x58] sm:$0xff] (!%p143_p2)   ;;  %v1873_v16 = vld [vmem:[%s2296_s1 + $0x60] sm:$0xff] (!%p143_p2)   ;;  %v1877_v20 = vld [vmem:[%s2296_s1 + $0x68] sm:$0xff] (!%p143_p2)  }
   0xa   : > { %1678 = vmatprep.subr.bf16.mxu1 (!%p143_p2), %v1862_v5  ;;  %v1870_v13 = vld [vmem:[%s2296_s1 + $0xd8] sm:$0xff] (!%p143_p2)   ;;  %v1874_v17 = vld [vmem:[%s2296_s1 + $0xe0] sm:$0xff] (!%p143_p2)   ;;  %v1878_v21 = vld [vmem:[%s2296_s1 + $0xe8] sm:$0xff] (!%p143_p2)  }
   0xb   : > { %v1871_v14 = vld [vmem:[%s2296_s1 + $0x18] sm:$0xff] (!%p143_p2)   ;;  %v1875_v18 = vld [vmem:[%s2296_s1 + $0x20] sm:$0xff] (!%p143_p2)   ;;  %v1879_v22 = vld [vmem:[%s2296_s1 + $0x28] sm:$0xff] (!%p143_p2)  }
   0xc   : > { %1639 = vmatpush3.bf16.msra.mxu0 (!%p143_p2), %v1863_v6  ;;  %v1872_v15 = vld [vmem:[%s2296_s1 + $0x98] sm:$0xff] (!%p143_p2)   ;;  %v1876_v19 = vld [vmem:[%s2296_s1 + $0xa0] sm:$0xff] (!%p143_p2)   ;;  %v1880_v23 = vld [vmem:[%s2296_s1 + $0xa8] sm:$0xff] (!%p143_p2)  }
   0xd   : > { %1679 = vmatpush3.bf16.msra.mxu1 %v1864_v7  ;;  %1640 = vmatprep.subr.bf16.mxu0 %v1865_v8  ;;  %s2300_s19 = smov (!%p172_p3, %s1482_s19), 15  ;;  %v1881_v24 = vld [vmem:[%s2296_s1 + $0x70] sm:$0xff]   ;;  %v1885_v28 = vld [vmem:[%s2296_s1 + $0x78] sm:$0xff]   ;;  %v1895_v36 = vld [vmem:[%s2296_s1 + $0x140] sm:$0xff]   ;;  %s2302_s13 = smov (!%p184_p4, %s2015_s13), 1 }
   0xe   : > { %1680 = vmatprep.subr.bf16.mxu1 %v1866_v9  ;;  %v1882_v25 = vld [vmem:[%s2296_s1 + $0xf0] sm:$0xff]   ;;  %s1848_s17 = smul.u32 36, %s2300_s19  ;;  %v1886_v29 = vld [vmem:[%s2296_s1 + $0xf8] sm:$0xff]   ;;  %v1896_v37 = vld [vmem:[%s2296_s1 + $0x1c0] sm:$0xff]  }
   0xf   : > { %v1883_v26 = vld [vmem:[%s2296_s1 + $0x30] sm:$0xff]   ;;  %v1887_v30 = vld [vmem:[%s2296_s1 + $0x38] sm:$0xff]   ;;  %v1897_v38 = vld [vmem:[%s2296_s1 + $0x100] sm:$0xff]  }
  0x10   : > { %1641 = vmatpush3.bf16.msra.mxu0 %v1867_v10  ;;  %v1884_v27 = vld [vmem:[%s2296_s1 + $0xb0] sm:$0xff]   ;;  %s2116_s29 = scalar_lea.vmem %s2295_s0, %s1848_s17  ;;  %v1888_v31 = vld [vmem:[%s2296_s1 + $0xb8] sm:$0xff]   ;;  %v1898_v39 = vld [vmem:[%s2296_s1 + $0x180] sm:$0xff]  }
  0x11   : > { %1681 = vmatpush3.bf16.msra.mxu1 %v1868_v11  ;;  %1642 = vmatprep.subr.bf16.mxu0 %v1869_v12  ;;  %v1889_v32 = vld [vmem:[%s2116_s29] ss:$36 sps:$4 sm:$0xff]   ;;  %v1892_v34 = vld [vmem:[%s2116_s29 + $0x8] ss:$36 sps:$4 sm:$0xff]   ;;  %v1905_v45 = vld [vmem:[%s2116_s29 + $0x54] ss:$36 sps:$4 sm:$0xff]  }
  0x12   : > { %1682 = vmatprep.subr.bf16.mxu1 %v1870_v13  ;;  %v1891_v33 = vld [vmem:[%s2116_s29 + $0x4] ss:$36 sps:$4 sm:$0xff]   ;;  %v1894_v35 = vld [vmem:[%s2116_s29 + $0xc] ss:$36 sps:$4 sm:$0xff]   ;;  %v1913_v52 = vld [vmem:[%s2296_s1 + $0x158] sm:$0xff]  }
  0x13   : > { %1021 = vmatprep.mubr.bf16.mxu0 %v1891_v33  ;;  %1086 = vmatprep.mubr.bf16.mxu1 %v1894_v35  ;;  %v1899_v40 = vld [vmem:[%s2296_s1 + $0x148] sm:$0xff]   ;;  %v1908_v47 = vld [vmem:[%s2116_s29 + $0x50] ss:$36 sps:$4 sm:$0xff]   ;;  %v1914_v53 = vld [vmem:[%s2296_s1 + $0x1d8] sm:$0xff]  }
  0x14   : > { %1643 = vmatpush3.bf16.msra.mxu0 %v1871_v14  ;;  %v1900_v41 = vld [vmem:[%s2296_s1 + $0x1c8] sm:$0xff]   ;;  %v1909_v48 = vld [vmem:[%s2296_s1 + $0x150] sm:$0xff]   ;;  %v1915_v54 = vld [vmem:[%s2296_s1 + $0x118] sm:$0xff]  }
  0x15   : > { %1683 = vmatpush3.bf16.msra.mxu1 %v1872_v15  ;;  %1644 = vmatprep.subr.bf16.mxu0 %v1873_v16  ;;  %v1901_v42 = vld [vmem:[%s2296_s1 + $0x108] sm:$0xff]   ;;  %v1910_v49 = vld [vmem:[%s2296_s1 + $0x1d0] sm:$0xff]   ;;  %v1916_v55 = vld [vmem:[%s2296_s1 + $0x198] sm:$0xff]  }
  0x16   : > { %1684 = vmatprep.subr.bf16.mxu1 %v1874_v17  ;;  %v1902_v43 = vld [vmem:[%s2296_s1 + $0x188] sm:$0xff]   ;;  %v1911_v50 = vld [vmem:[%s2296_s1 + $0x110] sm:$0xff]   ;;  %v1919_v57 = vld [vmem:[%s2116_s29 + $0x9c] ss:$36 sps:$4 sm:$0xff]  }
  0x17   : > { %v1903_v44 = vld [vmem:[%s2116_s29 + $0x4c] ss:$36 sps:$4 sm:$0xff]   ;;  %v1917_v56 = vld [vmem:[%s2116_s29 + $0x94] ss:$36 sps:$4 sm:$0xff]   ;;  %v1923_v60 = vld [vmem:[%s2296_s1 + $0x160] sm:$0xff]  }
  0x18   : > { %1645 = vmatpush3.bf16.msra.mxu0 %v1875_v18  ;;  %v1907_v46 = vld [vmem:[%s2116_s29 + $0x48] ss:$36 sps:$4 sm:$0xff]   ;;  %v1912_v51 = vld [vmem:[%s2296_s1 + $0x190] sm:$0xff]   ;;  %v1922_v59 = vld [vmem:[%s2116_s29 + $0x98] ss:$36 sps:$4 sm:$0xff]  }
  0x19   : > { %1685 = vmatpush3.bf16.msra.mxu1 %v1876_v19  ;;  %1646 = vmatprep.subr.bf16.mxu0 %v1877_v20  ;;  %v1921_v58 = vld [vmem:[%s2116_s29 + $0x90] ss:$36 sps:$4 sm:$0xff]   ;;  %v1924_v61 = vld [vmem:[%s2296_s1 + $0x1e0] sm:$0xff]   ;;  %v1927_v0 = vld [vmem:[%s2296_s1 + $0x168] sm:$0xff]  }
  0x1a   : > { %1686 = vmatprep.subr.bf16.mxu1 %v1878_v21  ;;  %v1925_v62 = vld [vmem:[%s2296_s1 + $0x120] sm:$0xff]   ;;  %v1928_v1 = vld [vmem:[%s2296_s1 + $0x1e8] sm:$0xff]   ;;  %v1935_v6 = vld [vmem:[%s2116_s29 + $0xd8] ss:$36 sps:$4 sm:$0xff]  }
  0x1b   : > { %v1926_v63 = vld [vmem:[%s2296_s1 + $0x1a0] sm:$0xff]   ;;  %v1929_v2 = vld [vmem:[%s2296_s1 + $0x128] sm:$0xff]   ;;  %v1937_v8 = vld [vmem:[%s2296_s1 + $0x170] sm:$0xff]  }
  0x1c   : > { %1647 = vmatpush3.bf16.msra.mxu0 %v1879_v22  ;;  %v1930_v3 = vld [vmem:[%s2296_s1 + $0x1a8] sm:$0xff]   ;;  %v1931_v4 = vld [vmem:[%s2116_s29 + $0xdc] ss:$36 sps:$4 sm:$0xff]   ;;  %v1938_v9 = vld [vmem:[%s2296_s1 + $0x1f0] sm:$0xff]  }
  0x1d   : > { %1687 = vmatpush3.bf16.msra.mxu1 %v1880_v23  ;;  %1648 = vmatprep.subr.bf16.mxu0 %v1881_v24  ;;  %v1933_v5 = vld [vmem:[%s2116_s29 + $0xe4] ss:$36 sps:$4 sm:$0xff]   ;;  %v1939_v10 = vld [vmem:[%s2296_s1 + $0x130] sm:$0xff]   ;;  %v1941_v12 = vld [vmem:[%s2296_s1 + $0x178] sm:$0xff]  }
  0x1e   : > { %1688 = vmatprep.subr.bf16.mxu1 %v1882_v25  ;;  %v1936_v7 = vld [vmem:[%s2116_s29 + $0xe0] ss:$36 sps:$4 sm:$0xff]   ;;  %v1940_v11 = vld [vmem:[%s2296_s1 + $0x1b0] sm:$0xff]   ;;  %v1942_v13 = vld [vmem:[%s2296_s1 + $0x1f8] sm:$0xff]  }
  0x1f   : > { %v1943_v14 = vld [vmem:[%s2296_s1 + $0x138] sm:$0xff]   ;;  %v1945_v16 = vld [vmem:[%s2116_s29 + $0x10] ss:$36 sps:$4 sm:$0xff]   ;;  %v1951_v20 = vld [vmem:[%s2296_s1 + $0x200] sm:$0xff]  }
  0x20   : > { %1649 = vmatpush3.bf16.msra.mxu0 %v1883_v26  ;;  %v1944_v15 = vld [vmem:[%s2296_s1 + $0x1b8] sm:$0xff]   ;;  %v1952_v21 = vld [vmem:[%s2296_s1 + $0x208] sm:$0xff]   ;;  %v1958_v25 = vld [vmem:[%s2116_s29 + $0x60] ss:$36 sps:$4 sm:$0xff]  }
  0x21   : > { %1689 = vmatpush3.bf16.msra.mxu1 %v1884_v27  ;;  %1650 = vmatprep.subr.bf16.mxu0 %v1885_v28  ;;  %v1947_v17 = vld [vmem:[%s2116_s29 + $0x14] ss:$36 sps:$4 sm:$0xff]   ;;  %v1950_v19 = vld [vmem:[%s2116_s29 + $0x1c] ss:$36 sps:$4 sm:$0xff]   ;;  %v1955_v23 = vld [vmem:[%s2116_s29 + $0x64] ss:$36 sps:$4 sm:$0xff]  }
  0x22   : > { %1690 = vmatprep.subr.bf16.mxu1 %v1886_v29  ;;  %v1948_v18 = vld [vmem:[%s2116_s29 + $0x18] ss:$36 sps:$4 sm:$0xff]   ;;  %v1959_v26 = vld [vmem:[%s2296_s1 + $0x210] sm:$0xff]   ;;  %v1961_v27 = vld [vmem:[%s2116_s29 + $0xa4] ss:$36 sps:$4 sm:$0xff]  }
  0x23   : > { %v1953_v22 = vld [vmem:[%s2116_s29 + $0x5c] ss:$36 sps:$4 sm:$0xff]   ;;  %v1963_v28 = vld [vmem:[%s2116_s29 + $0xac] ss:$36 sps:$4 sm:$0xff]  }
  0x24   : > { %1651 = vmatpush3.bf16.msra.mxu0 %v1887_v30  ;;  %v1957_v24 = vld [vmem:[%s2116_s29 + $0x58] ss:$36 sps:$4 sm:$0xff]   ;;  %v1965_v30 = vld [vmem:[%s2116_s29 + $0xa0] ss:$36 sps:$4 sm:$0xff]   ;;  %v1969_v33 = vld [vmem:[%s2116_s29 + $0xec] ss:$36 sps:$4 sm:$0xff]  }
  0x25   : > { %1691 = vmatpush3.bf16.msra.mxu1 %v1888_v31  ;;  %1716 = vmatprep.subr.bf16.mxu0 %v1895_v36  ;;  %v1960_v29 = vld [vmem:[%s2296_s1 + $0x218] sm:$0xff]   ;;  %v1966_v31 = vld [vmem:[%s2116_s29 + $0xa8] ss:$36 sps:$4 sm:$0xff]  }
  0x26   : > { %1756 = vmatprep.subr.bf16.mxu1 %v1896_v37  ;;  %v1968_v35 = vld [vmem:[%s2296_s1 + $0x228] sm:$0xff]   ;;  %v1975_v37 = vld [vmem:[%s2296_s1 + $0x230] sm:$0xff]  }
  0x27   : > { %1022 = vmatmul.mubr.bf16.vlgmr.msra.gmra.mrb[0].mxu0 %v1889_v32  ;;  %v1967_v32 = vld [vmem:[%s2296_s1 + $0x220] sm:$0xff]   ;;  %v1973_v36 = vld [vmem:[%s2116_s29 + $0xe8] ss:$36 sps:$4 sm:$0xff]  }
  0x28   : > { %1087 = vmatmul.mubr.bf16.vlgmr.msra.gmra.mrb[0].mxu1 %v1892_v34  ;;  %1717 = vmatpush3.bf16.msra.mxu0 %v1897_v38  ;;  %v1971_v34 = vld [vmem:[%s2116_s29 + $0xf4] ss:$36 sps:$4 sm:$0xff]  }
  0x29   : > { %1757 = vmatpush3.bf16.msra.mxu1 %v1898_v39  ;;  %1718 = vmatprep.subr.bf16.mxu0 %v1899_v40  ;;  %v1974_v38 = vld [vmem:[%s2116_s29 + $0xf0] ss:$36 sps:$4 sm:$0xff]   ;;  %v1977_v39 = vld [vmem:[%s2116_s29 + $0x20] ss:$36 sps:$4 sm:$0xff]  }
  0x2a   : > { %1758 = vmatprep.subr.bf16.mxu1 %v1900_v41  ;;  %1029 = vmatprep.mubr.bf16.mxu0 %v1903_v44  ;;  %v1978_v40 = vld [vmem:[%s2116_s29 + $0xb0] ss:$36 sps:$4 sm:$0xff]   ;;  %v1976_v41 = vld [vmem:[%s2296_s1 + $0x238] sm:$0xff]  }
  0x2b   : > { %1094 = vmatprep.mubr.bf16.mxu1 %v1905_v45 }
  0x2c   : > { %1719 = vmatpush3.bf16.msra.mxu0 %v1901_v42  ;;  %v1979_v42 = vld [vmem:[%s2116_s29 + $0x68] ss:$36 sps:$4 sm:$0xff]  }
  0x2d   : > { %1759 = vmatpush3.bf16.msra.mxu1 %v1902_v43  ;;  %1720 = vmatprep.subr.bf16.mxu0 %v1909_v48  ;;  %v1980_v43 = vld [vmem:[%s2116_s29 + $0xf8] ss:$36 sps:$4 sm:$0xff]   ;;  %s1485_s29 = sshll.u32 %s2300_s19, 2  ;;  %s1486_s19 = sshll.u32 %s2302_s13, 3 }
  0x2e   : > { %1760 = vmatprep.subr.bf16.mxu1 %v1910_v49  ;;  %s182_s23 = scalar_lea.vmem %s2297_s2, %s1485_s29  ;;  %s187_s26 = scalar_lea.vmem %s2298_s3, %s1486_s19 }
  0x2f   : > { %1030 = vmatmul.mubr.bf16.gmra.mrb[4].mxu0 %v1907_v46 }
  0x30   : > { %1095 = vmatmul.mubr.bf16.gmra.mrb[4].mxu1 %v1908_v47  ;;  %1721 = vmatpush3.bf16.msra.mxu0 %v1911_v50 }
  0x31   : > { %1761 = vmatpush3.bf16.msra.mxu1 %v1912_v51  ;;  %1722 = vmatprep.subr.bf16.mxu0 %v1913_v52 }
  0x32   : > { %1762 = vmatprep.subr.bf16.mxu1 %v1914_v53  ;;  %1037 = vmatprep.mubr.bf16.mxu0 %v1917_v56 }
  0x33   : > { %1102 = vmatprep.mubr.bf16.mxu1 %v1919_v57 }
  0x34   : > { %1723 = vmatpush3.bf16.msra.mxu0 %v1915_v54 }
  0x35   : > { %1763 = vmatpush3.bf16.msra.mxu1 %v1916_v55  ;;  %1724 = vmatprep.subr.bf16.mxu0 %v1923_v60 }
  0x36   : > { %1764 = vmatprep.subr.bf16.mxu1 %v1924_v61 }
  0x37   : > { %1038 = vmatmul.mubr.bf16.gmra.mrb[8].mxu0 %v1921_v58 }
  0x38   : > { %1103 = vmatmul.mubr.bf16.gmra.mrb[8].mxu1 %v1922_v59  ;;  %1725 = vmatpush3.bf16.msra.mxu0 %v1925_v62 }
  0x39   : > { %1765 = vmatpush3.bf16.msra.mxu1 %v1926_v63  ;;  %1726 = vmatprep.subr.bf16.mxu0 %v1927_v0 }
  0x3a   : > { %1766 = vmatprep.subr.bf16.mxu1 %v1928_v1  ;;  %1045 = vmatprep.mubr.bf16.mxu0 %v1931_v4 }
  0x3b   : > { %1110 = vmatprep.mubr.bf16.mxu1 %v1933_v5 }
  0x3c   : > { %1727 = vmatpush3.bf16.msra.mxu0 %v1929_v2 }
  0x3d   : > { %1767 = vmatpush3.bf16.msra.mxu1 %v1930_v3  ;;  %1728 = vmatprep.subr.bf16.mxu0 %v1937_v8 }
  0x3e   : > { %1768 = vmatprep.subr.bf16.mxu1 %v1938_v9 }
  0x3f   : > { %1046 = vmatmul.mubr.bf16.gmra.mrb[12].mxu0 %v1935_v6 }
  0x40   : > { %1111 = vmatmul.mubr.bf16.gmra.mrb[12].mxu1 %v1936_v7  ;;  %1729 = vmatpush3.bf16.msra.mxu0 %v1939_v10 }
  0x41   : > { %1769 = vmatpush3.bf16.msra.mxu1 %v1940_v11  ;;  %1730 = vmatprep.subr.bf16.mxu0 %v1941_v12 }
  0x42   : > { %1770 = vmatprep.subr.bf16.mxu1 %v1942_v13  ;;  %1151 = vmatprep.mubr.bf16.mxu0 %v1947_v17 }
  0x43   : > { %1216 = vmatprep.mubr.bf16.mxu1 %v1950_v19 }
  0x44   : > { %1731 = vmatpush3.bf16.msra.mxu0 %v1943_v14 }
  0x45   : > { %1771 = vmatpush3.bf16.msra.mxu1 %v1944_v15  ;;  %1808 = vmatprep.subr.bf16.mxu0 %v1951_v20 }
  0x46   : > { %1832 = vmatprep.subr.bf16.mxu1 %v1951_v20 }
  0x47   : > { %1152 = vmatmul.mubr.bf16.vlgmr.msra.gmra.mrb[16].mxu0 %v1945_v16 }
  0x48   : > { %1217 = vmatmul.mubr.bf16.vlgmr.msra.gmra.mrb[16].mxu1 %v1948_v18  ;;  %1809 = vmatpush3.bf16.msra.mxu0 %v1951_v20 }
  0x49   : > { %1840 = vmatpush3.bf16.msra.mxu1 %v1951_v20  ;;  %1810 = vmatprep.subr.bf16.mxu0 %v1952_v21 }
  0x4a   : > { %1833 = vmatprep.subr.bf16.mxu1 %v1952_v21  ;;  %1159 = vmatprep.mubr.bf16.mxu0 %v1953_v22 }
  0x4b   : > { %1224 = vmatprep.mubr.bf16.mxu1 %v1955_v23 }
  0x4c   : > { %1811 = vmatpush3.bf16.msra.mxu0 %v1952_v21 }
  0x4d   : > { %1841 = vmatpush3.bf16.msra.mxu1 %v1952_v21  ;;  %1812 = vmatprep.subr.bf16.mxu0 %v1959_v26 }
  0x4e   : > { %1834 = vmatprep.subr.bf16.mxu1 %v1959_v26 }
  0x4f   : > { %1160 = vmatmul.mubr.bf16.gmra.mrb[20].mxu0 %v1957_v24 }
  0x50   : > { %1225 = vmatmul.mubr.bf16.gmra.mrb[20].mxu1 %v1958_v25  ;;  %1167 = vmatprep.mubr.bf16.mxu0 %v1961_v27 }
  0x51   : > { %1813 = vmatpush3.bf16.msra.mxu0 %v1959_v26  ;;  %1232 = vmatprep.mubr.bf16.mxu1 %v1963_v28 }
  0x52   : > { %1842 = vmatpush3.bf16.msra.mxu1 %v1959_v26  ;;  %1814 = vmatprep.subr.bf16.mxu0 %v1960_v29 }
  0x53   : > { %1835 = vmatprep.subr.bf16.mxu1 %v1960_v29 }
  0x55   : > { %1815 = vmatpush3.bf16.msra.mxu0 %v1960_v29 }
  0x56   : > { %1843 = vmatpush3.bf16.msra.mxu1 %v1960_v29  ;;  %1816 = vmatprep.subr.bf16.mxu0 %v1967_v32 }
  0x57   : > { %1168 = vmatmul.mubr.bf16.gmra.mrb[24].mxu0 %v1965_v30  ;;  %1836 = vmatprep.subr.bf16.mxu1 %v1967_v32 }
  0x58   : > { %1233 = vmatmul.mubr.bf16.gmra.mrb[24].mxu1 %v1966_v31  ;;  %1175 = vmatprep.mubr.bf16.mxu0 %v1969_v33 }
  0x59   : > { %1817 = vmatpush3.bf16.msra.mxu0 %v1967_v32  ;;  %1240 = vmatprep.mubr.bf16.mxu1 %v1971_v34 }
  0x5a   : > { %1844 = vmatpush3.bf16.msra.mxu1 %v1967_v32  ;;  %1818 = vmatprep.subr.bf16.mxu0 %v1968_v35 }
  0x5b   : > { %1837 = vmatprep.subr.bf16.mxu1 %v1968_v35 }
  0x5d   : > { %1819 = vmatpush3.bf16.msra.mxu0 %v1968_v35 }
  0x5e   : > { %1845 = vmatpush3.bf16.msra.mxu1 %v1968_v35  ;;  %1820 = vmatprep.subr.bf16.mxu0 %v1975_v37 }
  0x5f   : > { %1176 = vmatmul.mubr.bf16.gmra.mrb[28].mxu0 %v1973_v36  ;;  %1838 = vmatprep.subr.bf16.mxu1 %v1975_v37 }
  0x60   : > { %1241 = vmatmul.mubr.bf16.gmra.mrb[28].mxu1 %v1974_v38  ;;  %1824 = vmatprep.mubr.bf16.mxu0 %v1977_v39 }
  0x61   : > { %1821 = vmatpush3.bf16.msra.mxu0 %v1975_v37  ;;  %1828 = vmatprep.mubr.bf16.mxu1 %v1978_v40 }
  0x62   : > { %1846 = vmatpush3.bf16.msra.mxu1 %v1975_v37  ;;  %1822 = vmatprep.subr.bf16.mxu0 %v1976_v41 }
  0x63   : > { %1839 = vmatprep.subr.bf16.mxu1 %v1976_v41 }
  0x65   : > { %1823 = vmatpush3.bf16.msra.mxu0 %v1976_v41 }
  0x66   : > { %1847 = vmatpush3.bf16.msra.mxu1 %v1976_v41 }
  0x68   : > { %1825 = vmatmul.mubr.bf16.vlgmr.msra.gmra.mrb[32].mxu0 %v1979_v42 }
  0x69   : > { %1829 = vmatmul.mubr.bf16.vlgmr.msra.gmra.mrb[32].mxu1 %v1980_v43 }
  0xfa   : > { %v1652_v44 = vpop.f32.mrb[0].mxu0 }
  0xfb   : > { %v1692_v45 = vpop.f32.mrb[0].mxu1  ;;  %v1653_v46 = vpop.f32.mrb[1].mxu0 }
  0xfc   : > { %v1654_v47 = vadd.f32 %v1653_v46, %v1652_v44  ;;  %v1693_v48 = vpop.f32.mrb[1].mxu1  ;;  %v1655_v49 = vpop.f32.mrb[2].mxu0 }
  0xfd   : > { %v1694_v50 = vadd.f32 %v1693_v48, %v1692_v45  ;;  %v1695_v51 = vpop.f32.mrb[2].mxu1  ;;  %v1656_v52 = vpop.f32.mrb[3].mxu0 }
  0xfe   : > { %v1657_v53 = vadd.f32 %v1656_v52, %v1655_v49  ;;  %v1696_v54 = vpop.f32.mrb[3].mxu1 }
  0xff   : > { %v1089_v55 = vadd.f32 %v1694_v50, %v1654_v47  ;;  %v1697_v56 = vadd.f32 %v1696_v54, %v1695_v51 }
 0x101   : > { %v1092_v57 = vadd.f32 %v1697_v56, %v1657_v53 }
 0x102   : > { %v1658_v58 = vpop.f32.mrb[4].mxu0 }
 0x103   : > { %v1698_v59 = vpop.f32.mrb[4].mxu1  ;;  %v1659_v60 = vpop.f32.mrb[5].mxu0 }
 0x104   : > { %v1660_v61 = vadd.f32 %v1659_v60, %v1658_v58  ;;  %v1699_v62 = vpop.f32.mrb[5].mxu1  ;;  %v1661_v63 = vpop.f32.mrb[6].mxu0 }
 0x105   : > { %v1700_v0 = vadd.f32 %v1699_v62, %v1698_v59  ;;  %v1701_v1 = vpop.f32.mrb[6].mxu1  ;;  %v1662_v2 = vpop.f32.mrb[7].mxu0 }
 0x106   : > { %v1663_v3 = vadd.f32 %v1662_v2, %v1661_v63  ;;  %v1702_v4 = vpop.f32.mrb[7].mxu1 }
 0x107   : > { %v1097_v5 = vadd.f32 %v1700_v0, %v1660_v61  ;;  %v1703_v6 = vadd.f32 %v1702_v4, %v1701_v1 }
 0x109   : > { %v1100_v7 = vadd.f32 %v1703_v6, %v1663_v3 }
 0x10a   : > { %v1664_v8 = vpop.f32.mrb[8].mxu0 }
 0x10b   : > { %v1704_v9 = vpop.f32.mrb[8].mxu1  ;;  %v1665_v10 = vpop.f32.mrb[9].mxu0 }
 0x10c   : > { %v1666_v11 = vadd.f32 %v1665_v10, %v1664_v8  ;;  %v1705_v12 = vpop.f32.mrb[9].mxu1  ;;  %v1667_v13 = vpop.f32.mrb[10].mxu0 }
 0x10d   : > { %v1706_v14 = vadd.f32 %v1705_v12, %v1704_v9  ;;  %v1707_v15 = vpop.f32.mrb[10].mxu1  ;;  %v1668_v16 = vpop.f32.mrb[11].mxu0 }
 0x10e   : > { %v1669_v17 = vadd.f32 %v1668_v16, %v1667_v13  ;;  %v1708_v18 = vpop.f32.mrb[11].mxu1 }
 0x10f   : > { %v1105_v19 = vadd.f32 %v1706_v14, %v1666_v11  ;;  %v1709_v20 = vadd.f32 %v1708_v18, %v1707_v15 }
 0x111   : > { %v1108_v21 = vadd.f32 %v1709_v20, %v1669_v17 }
 0x112   : > { %v1670_v22 = vpop.f32.mrb[12].mxu0 }
 0x113   : > { %v1710_v23 = vpop.f32.mrb[12].mxu1  ;;  %v1671_v24 = vpop.f32.mrb[13].mxu0 }
 0x114   : > { %v1711_v25 = vpop.f32.mrb[13].mxu1  ;;  %v1672_v26 = vadd.f32 %v1671_v24, %v1670_v22  ;;  %v1673_v28 = vpop.f32.mrb[14].mxu0 }
 0x115   : > { %v1712_v27 = vadd.f32 %v1711_v25, %v1710_v23  ;;  %v1713_v29 = vpop.f32.mrb[14].mxu1  ;;  %v1674_v30 = vpop.f32.mrb[15].mxu0 }
 0x116   : > { %v1714_v31 = vpop.f32.mrb[15].mxu1  ;;  %v1675_v33 = vadd.f32 %v1674_v30, %v1673_v28 }
 0x117   : > { %v1113_v32 = vadd.f32 %v1712_v27, %v1672_v26  ;;  %v1715_v34 = vadd.f32 %v1714_v31, %v1713_v29 }
 0x119   : > { %v1116_v35 = vadd.f32 %v1715_v34, %v1675_v33 }
 0x11a   : > { %v1732_v36 = vpop.f32.mrb[16].mxu0 }
 0x11b   : > { %v1733_v37 = vpop.f32.mrb[17].mxu0  ;;  %v1772_v40 = vpop.f32.mrb[16].mxu1 }
 0x11c   : > { %v1734_v38 = vadd.f32 %v1733_v37, %v1732_v36  ;;  %v1735_v39 = vpop.f32.mrb[18].mxu0  ;;  %v1773_v42 = vpop.f32.mrb[17].mxu1 }
 0x11d   : > { %v1736_v41 = vpop.f32.mrb[19].mxu0  ;;  %v1774_v45 = vadd.f32 %v1773_v42, %v1772_v40  ;;  %v1775_v46 = vpop.f32.mrb[18].mxu1 }
 0x11e   : > { %v1154_v43 = vadd.f32 %v1734_v38, %v1089_v55  ;;  %v1737_v44 = vadd.f32 %v1736_v41, %v1735_v39  ;;  %v1776_v47 = vpop.f32.mrb[19].mxu1 }
 0x11f   : > { %v1777_v49 = vadd.f32 %v1776_v47, %v1775_v46 }
 0x120   : > { %v1157_v48 = vadd.f32 %v1737_v44, %v1092_v57  ;;  %v1219_v50 = vadd.f32 %v1774_v45, %v1154_v43 }
 0x122   : > { %v1738_v51 = vpop.f32.mrb[20].mxu0  ;;  %v2280_v52 = vadd.f32 %v1777_v49, %v1157_v48 }
 0x123   : > { %v1739_v53 = vpop.f32.mrb[21].mxu0  ;;  %v1778_v58 = vpop.f32.mrb[20].mxu1 }
 0x124   : > { %v1740_v54 = vadd.f32 %v1739_v53, %v1738_v51  ;;  %v1741_v56 = vpop.f32.mrb[22].mxu0  ;;  %v1779_v60 = vpop.f32.mrb[21].mxu1 }
 0x125   : > { %v1742_v59 = vpop.f32.mrb[23].mxu0  ;;  %v1780_v63 = vadd.f32 %v1779_v60, %v1778_v58  ;;  %v1781_v55 = vpop.f32.mrb[22].mxu1 }
 0x126   : > { %v1162_v61 = vadd.f32 %v1740_v54, %v1097_v5  ;;  %v1743_v62 = vadd.f32 %v1742_v59, %v1741_v56  ;;  %v1782_v0 = vpop.f32.mrb[23].mxu1 }
 0x127   : > { %v1783_v2 = vadd.f32 %v1782_v0, %v1781_v55 }
 0x128   : > { %v1165_v1 = vadd.f32 %v1743_v62, %v1100_v7  ;;  %v1227_v3 = vadd.f32 %v1780_v63, %v1162_v61 }
 0x12a   : > { %v1744_v57 = vpop.f32.mrb[24].mxu0  ;;  %v1230_v4 = vadd.f32 %v1783_v2, %v1165_v1 }
 0x12b   : > { %v1745_v6 = vpop.f32.mrb[25].mxu0  ;;  %v1784_v10 = vpop.f32.mrb[24].mxu1 }
 0x12c   : > { %v1746_v8 = vadd.f32 %v1745_v6, %v1744_v57  ;;  %v1747_v9 = vpop.f32.mrb[26].mxu0  ;;  %v1785_v12 = vpop.f32.mrb[25].mxu1 }
 0x12d   : > { %v1748_v11 = vpop.f32.mrb[27].mxu0  ;;  %v1786_v15 = vadd.f32 %v1785_v12, %v1784_v10  ;;  %v1787_v16 = vpop.f32.mrb[26].mxu1 }
 0x12e   : > { %v1170_v13 = vadd.f32 %v1746_v8, %v1105_v19  ;;  %v1749_v14 = vadd.f32 %v1748_v11, %v1747_v9  ;;  %v1788_v5 = vpop.f32.mrb[27].mxu1 }
 0x12f   : > { %v1789_v18 = vadd.f32 %v1788_v5, %v1787_v16 }
 0x130   : > { %v1173_v17 = vadd.f32 %v1749_v14, %v1108_v21  ;;  %v1235_v20 = vadd.f32 %v1786_v15, %v1170_v13 }
 0x132   : > { %v1750_v22 = vpop.f32.mrb[28].mxu0  ;;  %v1238_v7 = vadd.f32 %v1789_v18, %v1173_v17 }
 0x133   : > { %v1751_v23 = vpop.f32.mrb[29].mxu0  ;;  %v1790_v26 = vpop.f32.mrb[28].mxu1 }
 0x134   : > { %v1752_v24 = vadd.f32 %v1751_v23, %v1750_v22  ;;  %v1753_v25 = vpop.f32.mrb[30].mxu0  ;;  %v1791_v28 = vpop.f32.mrb[29].mxu1 }
 0x135   : > { %v1754_v27 = vpop.f32.mrb[31].mxu0  ;;  %v1792_v31 = vadd.f32 %v1791_v28, %v1790_v26  ;;  %v1793_v19 = vpop.f32.mrb[30].mxu1 }
 0x136   : > { %v1178_v29 = vadd.f32 %v1752_v24, %v1113_v32  ;;  %v1755_v30 = vadd.f32 %v1754_v27, %v1753_v25  ;;  %v1794_v33 = vpop.f32.mrb[31].mxu1 }
 0x137   : > { %v1795_v36 = vadd.f32 %v1794_v33, %v1793_v19 }
 0x138   : > { %v1181_v34 = vadd.f32 %v1755_v30, %v1116_v35  ;;  %v1243_v37 = vadd.f32 %v1792_v31, %v1178_v29 }
 0x13a   : > { %v1246_v21 = vadd.f32 %v1795_v36, %v1181_v34 }
 0x13b   : > { %v1826_v38 = vpop.f32.mrb[32].mxu0 }
 0x13c   : > { %v1292_v39 = vadd.f32 %v1826_v38, %v1227_v3  ;;  %v1830_v40 = vpop.f32.mrb[32].mxu1  ;;  %v1283_v41 = vpop.f32.mrb[33].mxu0 }
 0x13d   : > { %v1308_v42 = vadd.f32 %v1830_v40, %v1243_v37  ;;  %v1284_v43 = vadd.f32 %v1283_v41, %v1219_v50  ;;  %v1299_v44 = vpop.f32.mrb[33].mxu1  ;;  %v1827_v45 = vpop.f32.mrb[34].mxu0 }
 0x13e   : > { %v1300_v46 = vadd.f32 %v1299_v44, %v1235_v20  ;;  %v1295_v47 = vadd.f32 %v1827_v45, %v1230_v4  ;;  %v1831_v32 = vpop.f32.mrb[34].mxu1  ;;  %v1286_v48 = vpop.f32.mrb[35].mxu0  ;;  %v1370_v63 = vmul.f32 %v1292_v39, %v1292_v39 }
 0x13f   : > { %v1311_v35 = vadd.f32 %v1831_v32, %v1246_v21  ;;  %v1287_v49 = vadd.f32 %v1286_v48, %v2280_v52  ;;  %v1302_v51 = vpop.f32.mrb[35].mxu1  ;;  %v1368_v50 = vmul.f32 %v1284_v43, %v1284_v43  ;;  %v1374_v10 = vmul.f32 %v1308_v42, %v1308_v42 }
 0x140   : > { %v1621_v53 = vpack.c.bf16 %v1295_v47, %v1292_v39  ;;  %v1303_v54 = vadd.f32 %v1302_v51, %v1238_v7  ;;  %v1371_v1 = vmul.f32 %v1295_v47, %v1295_v47  ;;  %v1372_v3 = vmul.f32 %v1300_v46, %v1300_v46 }
 0x141   : > { %v1631_v56 = vpack.c.bf16 %v1311_v35, %v1308_v42  ;;  %v1616_v58 = vpack.c.bf16 %v1287_v49, %v1284_v43  ;;  %v1354_v59 = vadd.f32 %v1287_v49, %v1284_v43  ;;  %v1369_v60 = vmul.f32 %v1287_v49, %v1287_v49 }
 0x142   : > { %1633 = vst [vmem:[%s182_s23 + $0x8] sm:$0xff] %v1621_v53   ;;  %v1626_v61 = vpack.c.bf16 %v1303_v54, %v1300_v46  ;;  %v1373_v6 = vmul.f32 %v1303_v54, %v1303_v54  ;;  %v1375_v13 = vmul.f32 %v1311_v35, %v1311_v35 }
 0x143   : > { %1635 = vst [vmem:[%s182_s23 + $0x18] sm:$0xff] %v1631_v56   ;;  %1617 = vst [vmem:[%s182_s23] sm:$0xff] %v1616_v58   ;;  %v1355_v62 = vadd.f32 %v1354_v59, %v1292_v39  ;;  %v1376_v55 = vadd.f32 %v1369_v60, %v1368_v50 }
 0x144   : > { %1634 = vst [vmem:[%s182_s23 + $0x10] sm:$0xff] %v1626_v61  }
 0x145   : > { %v1356_v0 = vadd.f32 %v1355_v62, %v1295_v47  ;;  %v1377_v52 = vadd.f32 %v1376_v55, %v1370_v63 }
 0x147   : > { %v1357_v2 = vadd.f32 %v1356_v0, %v1300_v46  ;;  %v1378_v57 = vadd.f32 %v1377_v52, %v1371_v1 }
 0x149   : > { %v1358_v4 = vadd.f32 %v1357_v2, %v1303_v54  ;;  %v1379_v8 = vadd.f32 %v1378_v57, %v1372_v3 }
 0x14b   : > { %v1359_v9 = vadd.f32 %v1358_v4, %v1308_v42  ;;  %v1380_v11 = vadd.f32 %v1379_v8, %v1373_v6 }
 0x14d   : > { %v1360_v12 = vadd.f32 %v1359_v9, %v1311_v35  ;;  %v1381_v14 = vadd.f32 %v1380_v11, %v1374_v10 }
 0x14f   : > { %v1361_v15 = vrot.slane %v1360_v12, 4  ;;  %v1382_v16 = vadd.f32 %v1381_v14, %v1375_v13 }
 0x151   : > { %v1362_v5 = vadd.f32 %v1361_v15, %v1360_v12  ;;  %v1383_v17 = vrot.slane %v1382_v16, 4 }
 0x153   : > { %v1363_v18 = vrot.slane %v1362_v5, 2  ;;  %v1384_v20 = vadd.f32 %v1383_v17, %v1382_v16 }
 0x155   : > { %v1364_v22 = vadd.f32 %v1363_v18, %v1362_v5  ;;  %v1385_v7 = vrot.slane %v1384_v20, 2 }
 0x157   : > { %v1365_v23 = vrot.slane %v1364_v22, 1  ;;  %v1386_v24 = vadd.f32 %v1385_v7, %v1384_v20 }
 0x159   : > { %v1366_v25 = vadd.f32 %v1365_v23, %v1364_v22  ;;  %v1387_v26 = vrot.slane %v1386_v24, 1 }
 0x15b   : > { %1367 = vst [vmem:[%s187_s26] sm:$0x1] %v1366_v25  ;;  %v1388_v27 = vadd.f32 %v1387_v26, %v1386_v24 }
 0x15d   : > { %1389 = vst [vmem:[%s187_s26 + $0x1] sm:$0x1] %v1388_v27 }
 0x15e PF: > { %s14_s12 = sadd.s32 1, %s1987_s12  }
 0x15f   : > { %p11_p5 = scmp.ge.s32.totalorder %s14_s12, 4  }
 0x161   :  { %13 = sbr.rel (!%p11_p5) target bundleno = 1 (0x1), region = 70 }

// kernel: resnet_backbone_forward.35
= control target key start
LH: loop header
LB: loop body
LE: loop exit
PB: predicated region body
PF: predicated region fallthrough
CT: control target
= control target key end

     0   :  { %s326_s12 = smov 0   ;;  %s343_s0 = inlined_call_operand.vmem [shape: bf16[32,128], index: 0, kind: input, shape index: {}, may-alias: {0,3}]   ;;  %s344_s1 = inlined_call_operand.vmem [shape: f32[1,128], index: 1, kind: input, shape index: {}]   ;;  %s345_s2 = inlined_call_operand.vmem [shape: f32[1,128], index: 2, kind: input, shape index: {}]   ;;  %s346_s3 = inlined_call_operand.vmem [shape: bf16[32,128], index: 3, kind: output, shape index: {}, may-alias: {0,3}]  }
   0x1 LB: > { %s264_s13 = sadd.s32 4294967295, %s304_s12   ;;  %p268_p0 = scmp.ge.s32.totalorder %s304_s12, 1  ;;  %s304_s12 = sphi %s326_s12, %s13_s12  }
   0x2   : > { %p138_p1 = scmp.lt.s32.totalorder %s304_s12, 3 }
   0x4   : > { %p139_p2 = pnand %p268_p0, %p138_p1 }
   0x5   : > { %s269_s14 = sshll.u32 (!%p139_p2), %s264_s13, 1  ;;  %v273_v1 = vld [vmem:[%s344_s1] ss:$0 sm:$0xff] (!%p139_p2) }
   0x6   : > { %142 = sbr.rel (%p139_p2) target bundleno = 28 (0x1c), region = 32  ;;  %p163_p3 = scmp.lt.s32.totalorder (!%p139_p2), %s269_s14, 3  ;;  %v274_v4 = vld [vmem:[%s345_s2] ss:$0 sm:$0xff] (!%p139_p2) }
   0xd   : > { %s348_s14 = smov (!%p163_p3, %s269_s14), 3 }
   0xe   : > { %s270_s15 = sshll.u32 %s348_s14, 2 }
   0xf   : > { %s166_s18 = scalar_lea.vmem %s343_s0, %s270_s15  ;;  %s172_s25 = scalar_lea.vmem %s346_s3, %s270_s15 }
  0x10   : > { %v282_v0 = vld [vmem:[%s166_s18] sm:$0xff]  }
  0x11   : > { %v283_v2 = vunpack.c.l.bf16 %v282_v0  ;;  %v284_v3 = vunpack.c.h.bf16 %v282_v0 }
  0x13   : > { %v185_v5 = vmul.f32 %v283_v2, %v273_v1  ;;  %v186_v6 = vmul.f32 %v284_v3, %v273_v1 }
  0x15   : > { %v194_v7 = vadd.f32 %v274_v4, %v185_v5  ;;  %v195_v8 = vadd.f32 %v274_v4, %v186_v6 }
  0x17   : > { %v196_v9 = vmax.f32 %v194_v7, 0.0  ;;  %v197_v10 = vmax.f32 %v195_v8, 0.0 }
  0x19   : > { %v288_v11 = vpack.c.bf16 %v197_v10, %v196_v9 }
  0x1b   : > { %289 = vst [vmem:[%s172_s25] sm:$0xff] %v288_v11  }
  0x1c PF: > { %s13_s12 = sadd.s32 1, %s304_s12  }
  0x1d   : > { %p10_p4 = scmp.ge.s32.totalorder %s13_s12, 4  }
  0x1f   :  { %12 = sbr.rel (!%p10_p4) target bundleno = 1 (0x1), region = 62 }

// kernel: resnet_backbone_forward.38
= control target key start
LH: loop header
LB: loop body
LE: loop exit
PB: predicated region body
PF: predicated region fallthrough
CT: control target
= control target key end

     0   :  { %v191_v0 = vmov 0.0   ;;  %vm192_vm0 = vmmov 0   ;;  %s249_s1 = inlined_call_operand.vmem [shape: bf16[128,128], index: 1, kind: input, shape index: {}]   ;;  %s250_s0 = inlined_call_operand.vmem [shape: bf16[8,128], index: 0, kind: input, shape index: {}]   ;;  %s251_s2 = inlined_call_operand.vmem [shape: bf16[8,128], index: 2, kind: output, shape index: {0}]   ;;  %s252_s3 = inlined_call_operand.vmem [shape: f32[8,128], index: 3, kind: output, shape index: {1}]  }
   0x1   :  { %161 = vmatprep.subr.bf16.mxu0 %v191_v0  ;;  %v183_v1 = vld [vmem:[%s249_s1] sm:$0xff]   ;;  %177 = vmatprep.mubr.msk.bf16.mxu0 %vm192_vm0, %v191_v0  ;;  %v184_v2 = vld [vmem:[%s249_s1 + $0x8] sm:$0xff]   ;;  %v185_v3 = vld [vmem:[%s249_s1 + $0x10] sm:$0xff]  }
   0x2   :  { %162 = vmatpush3.bf16.msra.mxu0 %v183_v1  ;;  %v186_v4 = vld [vmem:[%s249_s1 + $0x18] sm:$0xff]   ;;  %v187_v5 = vld [vmem:[%s249_s1 + $0x20] sm:$0xff]   ;;  %v188_v6 = vld [vmem:[%s249_s1 + $0x28] sm:$0xff]  }
   0x3   :  { %163 = vmatprep.subr.bf16.mxu0 %v191_v0  ;;  %v189_v7 = vld [vmem:[%s249_s1 + $0x30] sm:$0xff]   ;;  %v190_v8 = vld [vmem:[%s249_s1 + $0x38] sm:$0xff]   ;;  %v14_v9 = vld [vmem:[%s250_s0] sm:$0xf] }
   0x6   :  { %164 = vmatpush3.bf16.msra.mxu0 %v184_v2 }
   0x7   :  { %165 = vmatprep.subr.bf16.mxu0 %v191_v0 }
   0xa   :  { %166 = vmatpush3.bf16.msra.mxu0 %v185_v3 }
   0xb   :  { %167 = vmatprep.subr.bf16.mxu0 %v191_v0 }
   0xe   :  { %168 = vmatpush3.bf16.msra.mxu0 %v186_v4 }
   0xf   :  { %169 = vmatprep.subr.bf16.mxu0 %v191_v0 }
  0x12   :  { %170 = vmatpush3.bf16.msra.mxu0 %v187_v5 }
  0x13   :  { %171 = vmatprep.subr.bf16.mxu0 %v191_v0 }
  0x16   :  { %172 = vmatpush3.bf16.msra.mxu0 %v188_v6 }
  0x17   :  { %173 = vmatprep.subr.bf16.mxu0 %v191_v0 }
  0x1a   :  { %174 = vmatpush3.bf16.msra.mxu0 %v189_v7 }
  0x1b   :  { %175 = vmatprep.subr.bf16.mxu0 %v191_v0 }
  0x1e   :  { %176 = vmatpush3.bf16.msra.mxu0 %v190_v8 }
  0x21   :  { %178 = vmatmul.mubr.bf16.vlgmr.msra.gmra.mrb[0].mxu0 %v14_v9 }
  0xf4   :  { %v113_v10 = vpop.f32.mrb[0].mxu0 }
  0xf5   :  { %v119_v11 = vpack.c.bf16 %v113_v10, %v113_v10  ;;  %v121_v12 = vrot.slane %v113_v10, 4  ;;  %v128_v13 = vmul.f32 %v113_v10, %v113_v10  ;;  %v179_v14 = vpop.f32.mrb[1].mxu0 }
  0xf6   :  { %v116_v15 = vpop.f32.mrb[2].mxu0 }
  0xf7   :  { %120 = vst [vmem:[%s251_s2] sm:$0xf] %v119_v11  ;;  %v122_v16 = vadd.f32 %v121_v12, %v113_v10  ;;  %v129_v17 = vrot.slane %v128_v13, 4  ;;  %v180_v18 = vpop.f32.mrb[3].mxu0 }
  0xf9   :  { %v123_v19 = vrot.slane %v122_v16, 2  ;;  %v130_v20 = vadd.f32 %v129_v17, %v128_v13 }
  0xfb   :  { %v124_v21 = vadd.f32 %v123_v19, %v122_v16  ;;  %v131_v22 = vrot.slane %v130_v20, 2 }
  0xfd   :  { %v125_v23 = vrot.slane %v124_v21, 1  ;;  %v132_v24 = vadd.f32 %v131_v22, %v130_v20 }
  0xff   :  { %v126_v25 = vadd.f32 %v125_v23, %v124_v21  ;;  %v133_v26 = vrot.slane %v132_v24, 1 }
 0x101   :  { %127 = vst [vmem:[%s252_s3] sm:$0x1] %v126_v25  ;;  %v134_v27 = vadd.f32 %v133_v26, %v132_v24 }
 0x103   :  { %135 = vst [vmem:[%s252_s3 + $0x1] sm:$0x1] %v134_v27 }

// kernel: resnet_backbone_forward.37
= control target key start
LH: loop header
LB: loop body
LE: loop exit
PB: predicated region body
PF: predicated region fallthrough
CT: control target
= control target key end

     0   :  { %s404_s15 = smov 0   ;;  %s430_s0 = inlined_call_operand.vmem [shape: bf16[32,128], index: 0, kind: input, shape index: {}, may-alias: {0,4}]   ;;  %s431_s1 = inlined_call_operand.vmem [shape: f32[1,128], index: 1, kind: input, shape index: {}]   ;;  %s432_s2 = inlined_call_operand.vmem [shape: f32[1,128], index: 2, kind: input, shape index: {}]   ;;  %s433_s3 = inlined_call_operand.vmem [shape: bf16[32,128], index: 3, kind: input, shape index: {}]   ;;  %s434_s4 = inlined_call_operand.vmem [shape: bf16[32,128], index: 4, kind: output, shape index: {}, may-alias: {0,4}]  }
   0x1 LB: > { %s331_s16 = sadd.s32 4294967295, %s377_s15   ;;  %p335_p0 = scmp.ge.s32.totalorder %s377_s15, 1  ;;  %s377_s15 = sphi %s404_s15, %s14_s15  }
   0x2   : > { %p174_p1 = scmp.lt.s32.totalorder %s377_s15, 3 }
   0x4   : > { %p175_p2 = pnand %p335_p0, %p174_p1 }
   0x5   : > { %s336_s17 = sshll.u32 (!%p175_p2), %s331_s16, 1  ;;  %v342_v1 = vld [vmem:[%s431_s1] ss:$0 sm:$0xff] (!%p175_p2) }
   0x6   : > { %178 = sbr.rel (%p175_p2) target bundleno = 30 (0x1e), region = 36  ;;  %p206_p3 = scmp.lt.s32.totalorder (!%p175_p2), %s336_s17, 3  ;;  %v343_v5 = vld [vmem:[%s432_s2] ss:$0 sm:$0xff] (!%p175_p2) }
   0xd   : > { %s436_s17 = smov (!%p206_p3, %s336_s17), 3 }
   0xe   : > { %s337_s18 = sshll.u32 %s436_s17, 2 }
   0xf   : > { %s209_s21 = scalar_lea.vmem %s430_s0, %s337_s18  ;;  %s215_s24 = scalar_lea.vmem %s433_s3, %s337_s18 }
  0x10   : > { %v351_v0 = vld [vmem:[%s209_s21] sm:$0xff]   ;;  %s221_s5 = scalar_lea.vmem %s434_s4, %s337_s18 }
  0x11   : > { %v355_v2 = vld [vmem:[%s215_s24] sm:$0xff]   ;;  %v352_v3 = vunpack.c.l.bf16 %v351_v0  ;;  %v353_v4 = vunpack.c.h.bf16 %v351_v0 }
  0x12   : > { %v356_v8 = vunpack.c.l.bf16 %v355_v2  ;;  %v357_v9 = vunpack.c.h.bf16 %v355_v2 }
  0x13   : > { %v234_v6 = vmul.f32 %v352_v3, %v342_v1  ;;  %v235_v7 = vmul.f32 %v353_v4, %v342_v1 }
  0x15   : > { %v243_v10 = vadd.f32 %v343_v5, %v234_v6  ;;  %v244_v11 = vadd.f32 %v343_v5, %v235_v7 }
  0x17   : > { %v249_v12 = vadd.f32 %v356_v8, %v243_v10  ;;  %v250_v13 = vadd.f32 %v357_v9, %v244_v11 }
  0x19   : > { %v251_v14 = vmax.f32 %v249_v12, 0.0  ;;  %v252_v15 = vmax.f32 %v250_v13, 0.0 }
  0x1b   : > { %v361_v16 = vpack.c.bf16 %v252_v15, %v251_v14 }
  0x1d   : > { %362 = vst [vmem:[%s221_s5] sm:$0xff] %v361_v16  }
  0x1e PF: > { %s14_s15 = sadd.s32 1, %s377_s15  }
  0x1f   : > { %p11_p4 = scmp.ge.s32.totalorder %s14_s15, 4  }
  0x21   :  { %13 = sbr.rel (!%p11_p4) target bundleno = 1 (0x1), region = 69 }

// kernel: resnet_backbone_forward.34
= control target key start
LH: loop header
LB: loop body
LE: loop exit
PB: predicated region body
PF: predicated region fallthrough
CT: control target
= control target key end

     0   :  { %s1486_s12 = smov 0   ;;  %s1742_s0 = inlined_call_operand.vmem [shape: bf16[32,1152], index: 0, kind: input, shape index: {}]   ;;  %s1743_s1 = inlined_call_operand.vmem [shape: bf16[1152,128], index: 1, kind: input, shape index: {}]   ;;  %s1744_s2 = inlined_call_operand.vmem [shape: bf16[32,128], index: 2, kind: output, shape index: {0}]   ;;  %s1745_s3 = inlined_call_operand.vmem [shape: f32[16,128], index: 3, kind: output, shape index: {1}]  }
   0x1 LB: > { %s1492_s13 = sadd.s32 4294967295, %s1462_s12   ;;  %p1145_p0 = scmp.ge.s32.totalorder %s1462_s12, 1  ;;  %s1462_s12 = sphi %s1486_s12, %s14_s12  }
   0x2   : > { %p142_p1 = scmp.lt.s32.totalorder %s1462_s12, 3 }
   0x4   : > { %p143_p2 = pnand %p1145_p0, %p142_p1 }
   0x5   : > { %v1371_v0 = vld [vmem:[%s1743_s1 + $0x40] sm:$0xff] (!%p143_p2)   ;;  %v1375_v4 = vld [vmem:[%s1743_s1 + $0x48] sm:$0xff] (!%p143_p2)   ;;  %v1379_v8 = vld [vmem:[%s1743_s1 + $0x50] sm:$0xff] (!%p143_p2)   ;;  %s1146_s19 = sshll.u32 (!%p143_p2), %s1492_s13, 1  ;;  %vm1465_vm0 = vmmov (!%p143_p2), 0   ;;  %p184_p4 = scmp.lt.s32.totalorder (!%p143_p2), %s1492_s13, 1 }
   0x6   : > { %146 = sbr.rel (%p143_p2) target bundleno = 336 (0x150), region = 28  ;;  %v1372_v1 = vld [vmem:[%s1743_s1 + $0xc0] sm:$0xff] (!%p143_p2)   ;;  %1243 = vmatprep.subr.bf16.mxu0 (!%p143_p2), %v1371_v0  ;;  %v1376_v5 = vld [vmem:[%s1743_s1 + $0xc8] sm:$0xff] (!%p143_p2)   ;;  %v1380_v9 = vld [vmem:[%s1743_s1 + $0xd0] sm:$0xff] (!%p143_p2)   ;;  %p172_p3 = scmp.lt.s32.totalorder (!%p143_p2), %s1146_s19, 3 }
   0x7   : > { %v1373_v2 = vld [vmem:[%s1743_s1] sm:$0xff] (!%p143_p2)   ;;  %1265 = vmatprep.subr.bf16.mxu1 (!%p143_p2), %v1372_v1  ;;  %v1377_v6 = vld [vmem:[%s1743_s1 + $0x8] sm:$0xff] (!%p143_p2)   ;;  %v1381_v10 = vld [vmem:[%s1743_s1 + $0x10] sm:$0xff] (!%p143_p2)  }
   0x8   : > { %v1374_v3 = vld [vmem:[%s1743_s1 + $0x80] sm:$0xff] (!%p143_p2)   ;;  %1244 = vmatpush3.bf16.msra.mxu0 (!%p143_p2), %v1373_v2  ;;  %v1378_v7 = vld [vmem:[%s1743_s1 + $0x88] sm:$0xff] (!%p143_p2)   ;;  %v1382_v11 = vld [vmem:[%s1743_s1 + $0x90] sm:$0xff] (!%p143_p2)  }
   0x9   : > { %1266 = vmatpush3.bf16.msra.mxu1 (!%p143_p2), %v1374_v3  ;;  %1245 = vmatprep.subr.bf16.mxu0 (!%p143_p2), %v1375_v4  ;;  %v1383_v12 = vld [vmem:[%s1743_s1 + $0x58] sm:$0xff] (!%p143_p2)   ;;  %v1387_v16 = vld [vmem:[%s1743_s1 + $0x60] sm:$0xff] (!%p143_p2)   ;;  %v1391_v20 = vld [vmem:[%s1743_s1 + $0x68] sm:$0xff] (!%p143_p2)  }
   0xa   : > { %1267 = vmatprep.subr.bf16.mxu1 (!%p143_p2), %v1376_v5  ;;  %v1384_v13 = vld [vmem:[%s1743_s1 + $0xd8] sm:$0xff] (!%p143_p2)   ;;  %v1388_v17 = vld [vmem:[%s1743_s1 + $0xe0] sm:$0xff] (!%p143_p2)   ;;  %v1392_v21 = vld [vmem:[%s1743_s1 + $0xe8] sm:$0xff] (!%p143_p2)  }
   0xb   : > { %v1385_v14 = vld [vmem:[%s1743_s1 + $0x18] sm:$0xff] (!%p143_p2)   ;;  %v1389_v18 = vld [vmem:[%s1743_s1 + $0x20] sm:$0xff] (!%p143_p2)   ;;  %v1393_v22 = vld [vmem:[%s1743_s1 + $0x28] sm:$0xff] (!%p143_p2)  }
   0xc   : > { %1246 = vmatpush3.bf16.msra.mxu0 (!%p143_p2), %v1377_v6  ;;  %v1386_v15 = vld [vmem:[%s1743_s1 + $0x98] sm:$0xff] (!%p143_p2)   ;;  %v1390_v19 = vld [vmem:[%s1743_s1 + $0xa0] sm:$0xff] (!%p143_p2)   ;;  %v1394_v23 = vld [vmem:[%s1743_s1 + $0xa8] sm:$0xff] (!%p143_p2)   ;;  %v1464_v6 = vmov (!%p143_p2), 0.0  }
   0xd   : > { %1268 = vmatpush3.bf16.msra.mxu1 %v1378_v7  ;;  %1247 = vmatprep.subr.bf16.mxu0 %v1379_v8  ;;  %s1747_s19 = smov (!%p172_p3, %s1146_s19), 3  ;;  %v1395_v24 = vld [vmem:[%s1743_s1 + $0x70] sm:$0xff]   ;;  %v1399_v28 = vld [vmem:[%s1743_s1 + $0x78] sm:$0xff]   ;;  %v1409_v36 = vld [vmem:[%s1743_s1 + $0x140] sm:$0xff]   ;;  %s1749_s13 = smov (!%p184_p4, %s1492_s13), 1 }
   0xe   : > { %1269 = vmatprep.subr.bf16.mxu1 %v1380_v9  ;;  %v1396_v25 = vld [vmem:[%s1743_s1 + $0xf0] sm:$0xff]   ;;  %s1360_s17 = smul.u32 36, %s1747_s19  ;;  %v1400_v29 = vld [vmem:[%s1743_s1 + $0xf8] sm:$0xff]   ;;  %v1410_v37 = vld [vmem:[%s1743_s1 + $0x100] sm:$0xff]  }
   0xf   : > { %v1397_v26 = vld [vmem:[%s1743_s1 + $0x30] sm:$0xff]   ;;  %v1401_v30 = vld [vmem:[%s1743_s1 + $0x38] sm:$0xff]   ;;  %v1411_v38 = vld [vmem:[%s1743_s1 + $0x1c0] sm:$0xff]  }
  0x10   : > { %1248 = vmatpush3.bf16.msra.mxu0 %v1381_v10  ;;  %v1398_v27 = vld [vmem:[%s1743_s1 + $0xb0] sm:$0xff]   ;;  %s1593_s29 = scalar_lea.vmem %s1742_s0, %s1360_s17  ;;  %v1402_v31 = vld [vmem:[%s1743_s1 + $0xb8] sm:$0xff]   ;;  %v1412_v39 = vld [vmem:[%s1743_s1 + $0x180] sm:$0xff]  }
  0x11   : > { %1270 = vmatpush3.bf16.msra.mxu1 %v1382_v11  ;;  %1249 = vmatprep.subr.bf16.mxu0 %v1383_v12  ;;  %v1403_v32 = vld [vmem:[%s1593_s29] ss:$36 sps:$4 sm:$0xff]   ;;  %v1406_v34 = vld [vmem:[%s1593_s29 + $0x8] ss:$36 sps:$4 sm:$0xff]   ;;  %v1417_v44 = vld [vmem:[%s1743_s1 + $0x150] sm:$0xff]  }
  0x12   : > { %1271 = vmatprep.subr.bf16.mxu1 %v1384_v13  ;;  %v1405_v33 = vld [vmem:[%s1593_s29 + $0x4] ss:$36 sps:$4 sm:$0xff]   ;;  %v1408_v35 = vld [vmem:[%s1593_s29 + $0xc] ss:$36 sps:$4 sm:$0xff]   ;;  %v1421_v48 = vld [vmem:[%s1743_s1 + $0x158] sm:$0xff]  }
  0x13   : > { %853 = vmatprep.mubr.bf16.mxu0 %v1405_v33  ;;  %894 = vmatprep.mubr.bf16.mxu1 %v1408_v35  ;;  %v1413_v40 = vld [vmem:[%s1743_s1 + $0x148] sm:$0xff]   ;;  %v1418_v45 = vld [vmem:[%s1743_s1 + $0x110] sm:$0xff]   ;;  %v1422_v49 = vld [vmem:[%s1743_s1 + $0x118] sm:$0xff]  }
  0x14   : > { %1250 = vmatpush3.bf16.msra.mxu0 %v1385_v14  ;;  %v1414_v41 = vld [vmem:[%s1743_s1 + $0x108] sm:$0xff]   ;;  %v1419_v46 = vld [vmem:[%s1743_s1 + $0x1d0] sm:$0xff]   ;;  %v1423_v50 = vld [vmem:[%s1743_s1 + $0x1d8] sm:$0xff]  }
  0x15   : > { %1272 = vmatpush3.bf16.msra.mxu1 %v1386_v15  ;;  %1251 = vmatprep.subr.bf16.mxu0 %v1387_v16  ;;  %v1415_v42 = vld [vmem:[%s1743_s1 + $0x1c8] sm:$0xff]   ;;  %v1420_v47 = vld [vmem:[%s1743_s1 + $0x190] sm:$0xff]   ;;  %v1424_v51 = vld [vmem:[%s1743_s1 + $0x198] sm:$0xff]  }
  0x16   : > { %1273 = vmatprep.subr.bf16.mxu1 %v1388_v17  ;;  %v1416_v43 = vld [vmem:[%s1743_s1 + $0x188] sm:$0xff]   ;;  %v1425_v52 = vld [vmem:[%s1743_s1 + $0x160] sm:$0xff]   ;;  %v1433_v60 = vld [vmem:[%s1743_s1 + $0x170] sm:$0xff]  }
  0x17   : > { %v1426_v53 = vld [vmem:[%s1743_s1 + $0x120] sm:$0xff]   ;;  %v1429_v56 = vld [vmem:[%s1743_s1 + $0x168] sm:$0xff]   ;;  %v1434_v61 = vld [vmem:[%s1743_s1 + $0x130] sm:$0xff]  }
  0x18   : > { %1252 = vmatpush3.bf16.msra.mxu0 %v1389_v18  ;;  %v1427_v54 = vld [vmem:[%s1743_s1 + $0x1e0] sm:$0xff]   ;;  %v1430_v57 = vld [vmem:[%s1743_s1 + $0x128] sm:$0xff]   ;;  %v1435_v62 = vld [vmem:[%s1743_s1 + $0x1f0] sm:$0xff]  }
  0x19   : > { %1274 = vmatpush3.bf16.msra.mxu1 %v1390_v19  ;;  %1253 = vmatprep.subr.bf16.mxu0 %v1391_v20  ;;  %v1428_v55 = vld [vmem:[%s1743_s1 + $0x1a0] sm:$0xff]   ;;  %v1431_v58 = vld [vmem:[%s1743_s1 + $0x1e8] sm:$0xff]   ;;  %v1436_v63 = vld [vmem:[%s1743_s1 + $0x1b0] sm:$0xff]  }
  0x1a   : > { %1275 = vmatprep.subr.bf16.mxu1 %v1392_v21  ;;  %v1432_v59 = vld [vmem:[%s1743_s1 + $0x1a8] sm:$0xff]   ;;  %v1437_v0 = vld [vmem:[%s1743_s1 + $0x178] sm:$0xff]   ;;  %v1440_v3 = vld [vmem:[%s1593_s29 + $0x10] ss:$36 sps:$4 sm:$0xff]  }
  0x1b   : > { %v1438_v1 = vld [vmem:[%s1743_s1 + $0x138] sm:$0xff]   ;;  %v1447_v9 = vld [vmem:[%s1743_s1 + $0x200] sm:$0xff]   ;;  %v1448_v10 = vld [vmem:[%s1743_s1 + $0x208] sm:$0xff]  }
  0x1c   : > { %1254 = vmatpush3.bf16.msra.mxu0 %v1393_v22  ;;  %v1439_v2 = vld [vmem:[%s1743_s1 + $0x1f8] sm:$0xff]   ;;  %v1449_v11 = vld [vmem:[%s1743_s1 + $0x210] sm:$0xff]   ;;  %v1451_v13 = vld [vmem:[%s1743_s1 + $0x220] sm:$0xff]  }
  0x1d   : > { %1276 = vmatpush3.bf16.msra.mxu1 %v1394_v23  ;;  %1255 = vmatprep.subr.bf16.mxu0 %v1395_v24  ;;  %v1442_v4 = vld [vmem:[%s1593_s29 + $0x14] ss:$36 sps:$4 sm:$0xff]   ;;  %v1446_v8 = vld [vmem:[%s1593_s29 + $0x1c] ss:$36 sps:$4 sm:$0xff]   ;;  %v1452_v14 = vld [vmem:[%s1743_s1 + $0x228] sm:$0xff]  }
  0x1e   : > { %1277 = vmatprep.subr.bf16.mxu1 %v1396_v25  ;;  %v1443_v5 = vld [vmem:[%s1743_s1 + $0x1b8] sm:$0xff]   ;;  %v1453_v15 = vld [vmem:[%s1743_s1 + $0x230] sm:$0xff]   ;;  %v1455_v17 = vld [vmem:[%s1593_s29 + $0x20] ss:$36 sps:$4 sm:$0xff]  }
  0x1f   : > { %v1444_v7 = vld [vmem:[%s1593_s29 + $0x18] ss:$36 sps:$4 sm:$0xff]   ;;  %s1149_s29 = sshll.u32 %s1747_s19, 2  ;;  %s1150_s19 = sshll.u32 %s1749_s13, 3 }
  0x20   : > { %1256 = vmatpush3.bf16.msra.mxu0 %v1397_v26  ;;  %v1450_v12 = vld [vmem:[%s1743_s1 + $0x218] sm:$0xff]   ;;  %s182_s23 = scalar_lea.vmem %s1744_s2, %s1149_s29  ;;  %s187_s26 = scalar_lea.vmem %s1745_s3, %s1150_s19 }
  0x21   : > { %1278 = vmatpush3.bf16.msra.mxu1 %v1398_v27  ;;  %1257 = vmatprep.subr.bf16.mxu0 %v1399_v28  ;;  %v1454_v16 = vld [vmem:[%s1743_s1 + $0x238] sm:$0xff]  }
  0x22   : > { %1279 = vmatprep.subr.bf16.mxu1 %v1400_v29 }
  0x24   : > { %1258 = vmatpush3.bf16.msra.mxu0 %v1401_v30 }
  0x25   : > { %1280 = vmatpush3.bf16.msra.mxu1 %v1402_v31  ;;  %1287 = vmatprep.subr.bf16.mxu0 %v1409_v36 }
  0x26   : > { %1309 = vmatprep.subr.bf16.mxu1 %v1411_v38 }
  0x27   : > { %854 = vmatmul.mubr.bf16.vlgmr.msra.gmra.mrb[0].mxu0 %v1403_v32 }
  0x28   : > { %895 = vmatmul.mubr.bf16.vlgmr.msra.gmra.mrb[0].mxu1 %v1406_v34  ;;  %1288 = vmatpush3.bf16.msra.mxu0 %v1410_v37 }
  0x29   : > { %1310 = vmatpush3.bf16.msra.mxu1 %v1412_v39  ;;  %1289 = vmatprep.subr.bf16.mxu0 %v1413_v40 }
  0x2a   : > { %1311 = vmatprep.subr.bf16.mxu1 %v1415_v42  ;;  %935 = vmatprep.mubr.bf16.mxu0 %v1442_v4 }
  0x2b   : > { %976 = vmatprep.mubr.bf16.mxu1 %v1446_v8 }
  0x2c   : > { %1290 = vmatpush3.bf16.msra.mxu0 %v1414_v41 }
  0x2d   : > { %1312 = vmatpush3.bf16.msra.mxu1 %v1416_v43  ;;  %1291 = vmatprep.subr.bf16.mxu0 %v1417_v44 }
  0x2e   : > { %1313 = vmatprep.subr.bf16.mxu1 %v1419_v46 }
  0x30   : > { %1292 = vmatpush3.bf16.msra.mxu0 %v1418_v45 }
  0x31   : > { %1314 = vmatpush3.bf16.msra.mxu1 %v1420_v47  ;;  %1293 = vmatprep.subr.bf16.mxu0 %v1421_v48 }
  0x32   : > { %1315 = vmatprep.subr.bf16.mxu1 %v1423_v50 }
  0x34   : > { %1294 = vmatpush3.bf16.msra.mxu0 %v1422_v49 }
  0x35   : > { %1316 = vmatpush3.bf16.msra.mxu1 %v1424_v51  ;;  %1295 = vmatprep.subr.bf16.mxu0 %v1425_v52 }
  0x36   : > { %1317 = vmatprep.subr.bf16.mxu1 %v1427_v54 }
  0x38   : > { %1296 = vmatpush3.bf16.msra.mxu0 %v1426_v53 }
  0x39   : > { %1318 = vmatpush3.bf16.msra.mxu1 %v1428_v55  ;;  %1297 = vmatprep.subr.bf16.mxu0 %v1429_v56 }
  0x3a   : > { %1319 = vmatprep.subr.bf16.mxu1 %v1431_v58 }
  0x3c   : > { %1298 = vmatpush3.bf16.msra.mxu0 %v1430_v57 }
  0x3d   : > { %1320 = vmatpush3.bf16.msra.mxu1 %v1432_v59  ;;  %1299 = vmatprep.subr.bf16.mxu0 %v1433_v60 }
  0x3e   : > { %1321 = vmatprep.subr.bf16.mxu1 %v1435_v62 }
  0x40   : > { %1300 = vmatpush3.bf16.msra.mxu0 %v1434_v61 }
  0x41   : > { %1322 = vmatpush3.bf16.msra.mxu1 %v1436_v63  ;;  %1301 = vmatprep.subr.bf16.mxu0 %v1437_v0 }
  0x42   : > { %1323 = vmatprep.subr.bf16.mxu1 %v1439_v2 }
  0x44   : > { %1302 = vmatpush3.bf16.msra.mxu0 %v1438_v1 }
  0x45   : > { %1340 = vmatprep.subr.bf16.mxu0 %v1464_v6  ;;  %1324 = vmatpush3.bf16.msra.mxu1 %v1443_v5 }
  0x47   : > { %936 = vmatmul.mubr.bf16.vlgmr.msra.gmra.mrb[4].mxu0 %v1440_v3 }
  0x48   : > { %1356 = vmatprep.mubr.msk.bf16.mxu0 %vm1465_vm0, %v1464_v6  ;;  %1341 = vmatpush3.bf16.msra.mxu0 %v1447_v9 }
  0x49   : > { %977 = vmatmul.mubr.bf16.vlgmr.msra.gmra.mrb[4].mxu1 %v1444_v7  ;;  %1342 = vmatprep.subr.bf16.mxu0 %v1464_v6 }
  0x4c   : > { %1343 = vmatpush3.bf16.msra.mxu0 %v1448_v10 }
  0x4d   : > { %1344 = vmatprep.subr.bf16.mxu0 %v1464_v6 }
  0x50   : > { %1345 = vmatpush3.bf16.msra.mxu0 %v1449_v11 }
  0x51   : > { %1346 = vmatprep.subr.bf16.mxu0 %v1464_v6 }
  0x54   : > { %1347 = vmatpush3.bf16.msra.mxu0 %v1450_v12 }
  0x55   : > { %1348 = vmatprep.subr.bf16.mxu0 %v1464_v6 }
  0x58   : > { %1349 = vmatpush3.bf16.msra.mxu0 %v1451_v13 }
  0x59   : > { %1350 = vmatprep.subr.bf16.mxu0 %v1464_v6 }
  0x5c   : > { %1351 = vmatpush3.bf16.msra.mxu0 %v1452_v14 }
  0x5d   : > { %1352 = vmatprep.subr.bf16.mxu0 %v1464_v6 }
  0x60   : > { %1353 = vmatpush3.bf16.msra.mxu0 %v1453_v15 }
  0x61   : > { %1354 = vmatprep.subr.bf16.mxu0 %v1464_v6 }
  0x64   : > { %1355 = vmatpush3.bf16.msra.mxu0 %v1454_v16 }
  0x67   : > { %1357 = vmatmul.mubr.bf16.vlgmr.msra.gmra.mrb[8].mxu0 %v1455_v17 }
  0xfa   : > { %v1259_v18 = vpop.f32.mrb[0].mxu0 }
  0xfb   : > { %v1281_v19 = vpop.f32.mrb[0].mxu1  ;;  %v1260_v20 = vpop.f32.mrb[1].mxu0 }
  0xfc   : > { %v1261_v21 = vadd.f32 %v1260_v20, %v1259_v18  ;;  %v1282_v22 = vpop.f32.mrb[1].mxu1  ;;  %v1262_v23 = vpop.f32.mrb[2].mxu0 }
  0xfd   : > { %v1283_v24 = vadd.f32 %v1282_v22, %v1281_v19  ;;  %v1284_v25 = vpop.f32.mrb[2].mxu1  ;;  %v1263_v26 = vpop.f32.mrb[3].mxu0 }
  0xfe   : > { %v1264_v27 = vadd.f32 %v1263_v26, %v1262_v23  ;;  %v1285_v28 = vpop.f32.mrb[3].mxu1 }
  0xff   : > { %v897_v29 = vadd.f32 %v1283_v24, %v1261_v21  ;;  %v1286_v30 = vadd.f32 %v1285_v28, %v1284_v25 }
 0x101   : > { %v900_v31 = vadd.f32 %v1286_v30, %v1264_v27 }
 0x11a   : > { %v1303_v32 = vpop.f32.mrb[4].mxu0 }
 0x11b   : > { %v1304_v33 = vpop.f32.mrb[5].mxu0 }
 0x11c   : > { %v1305_v34 = vadd.f32 %v1304_v33, %v1303_v32  ;;  %v1306_v35 = vpop.f32.mrb[6].mxu0  ;;  %v1325_v36 = vpop.f32.mrb[4].mxu1 }
 0x11d   : > { %v1307_v37 = vpop.f32.mrb[7].mxu0  ;;  %v1326_v40 = vpop.f32.mrb[5].mxu1 }
 0x11e   : > { %v938_v38 = vadd.f32 %v1305_v34, %v897_v29  ;;  %v1308_v39 = vadd.f32 %v1307_v37, %v1306_v35  ;;  %v1327_v41 = vadd.f32 %v1326_v40, %v1325_v36  ;;  %v1328_v42 = vpop.f32.mrb[6].mxu1 }
 0x11f   : > { %v1329_v44 = vpop.f32.mrb[7].mxu1 }
 0x120   : > { %v941_v43 = vadd.f32 %v1308_v39, %v900_v31  ;;  %v1330_v45 = vadd.f32 %v1329_v44, %v1328_v42  ;;  %v979_v46 = vadd.f32 %v1327_v41, %v938_v38 }
 0x122   : > { %v982_v47 = vadd.f32 %v1330_v45, %v941_v43 }
 0x13a   : > { %v1019_v48 = vpop.f32.mrb[8].mxu0 }
 0x13b   : > { %v1020_v49 = vadd.f32 %v1019_v48, %v979_v46  ;;  %v1358_v50 = vpop.f32.mrb[9].mxu0 }
 0x13c   : > { %v1022_v51 = vpop.f32.mrb[10].mxu0 }
 0x13d   : > { %v1023_v52 = vadd.f32 %v1022_v51, %v982_v47  ;;  %v1359_v53 = vpop.f32.mrb[11].mxu0  ;;  %v1044_v54 = vmul.f32 %v1020_v49, %v1020_v49 }
 0x13f   : > { %v1241_v55 = vpack.c.bf16 %v1023_v52, %v1020_v49  ;;  %v1036_v56 = vadd.f32 %v1023_v52, %v1020_v49  ;;  %v1045_v57 = vmul.f32 %v1023_v52, %v1023_v52 }
 0x141   : > { %1242 = vst [vmem:[%s182_s23] sm:$0xff] %v1241_v55   ;;  %v1037_v58 = vrot.slane %v1036_v56, 4  ;;  %v1046_v59 = vadd.f32 %v1045_v57, %v1044_v54 }
 0x143   : > { %v1038_v60 = vadd.f32 %v1037_v58, %v1036_v56  ;;  %v1047_v61 = vrot.slane %v1046_v59, 4 }
 0x145   : > { %v1039_v62 = vrot.slane %v1038_v60, 2  ;;  %v1048_v63 = vadd.f32 %v1047_v61, %v1046_v59 }
 0x147   : > { %v1040_v0 = vadd.f32 %v1039_v62, %v1038_v60  ;;  %v1049_v1 = vrot.slane %v1048_v63, 2 }
 0x149   : > { %v1041_v2 = vrot.slane %v1040_v0, 1  ;;  %v1050_v3 = vadd.f32 %v1049_v1, %v1048_v63 }
 0x14b   : > { %v1042_v4 = vadd.f32 %v1041_v2, %v1040_v0  ;;  %v1051_v5 = vrot.slane %v1050_v3, 1 }
 0x14d   : > { %1043 = vst [vmem:[%s187_s26] sm:$0x1] %v1042_v4  ;;  %v1052_v6 = vadd.f32 %v1051_v5, %v1050_v3 }
 0x14f   : > { %1053 = vst [vmem:[%s187_s26 + $0x1] sm:$0x1] %v1052_v6 }
 0x150 PF: > { %s14_s12 = sadd.s32 1, %s1462_s12  }
 0x151   : > { %p11_p5 = scmp.ge.s32.totalorder %s14_s12, 4  }
 0x153   :  { %13 = sbr.rel (!%p11_p5) target bundleno = 1 (0x1), region = 70 }

// kernel: resnet_backbone_forward.39
= control target key start
LH: loop header
LB: loop body
LE: loop exit
PB: predicated region body
PF: predicated region fallthrough
CT: control target
= control target key end

     0   :  { %s72_s0 = inlined_call_operand.vmem [shape: bf16[8,128], index: 0, kind: input, shape index: {}, may-alias: {0,3}]   ;;  %s73_s1 = inlined_call_operand.vmem [shape: f32[1,128], index: 1, kind: input, shape index: {}]   ;;  %s74_s2 = inlined_call_operand.vmem [shape: f32[1,128], index: 2, kind: input, shape index: {}]   ;;  %s75_s3 = inlined_call_operand.vmem [shape: bf16[8,128], index: 3, kind: output, shape index: {}, may-alias: {0,3}]  }
   0x1   :  { %v14_v0 = vld [vmem:[%s72_s0] sm:$0xf] }
   0x2   :  { %v38_v1 = vld [vmem:[%s73_s1] ss:$0 sm:$0xff]  ;;  %v15_v2 = vunpack.c.l.bf16 %v14_v0 }
   0x3   :  { %v39_v3 = vld [vmem:[%s74_s2] ss:$0 sm:$0xff] }
   0x4   :  { %v23_v4 = vmul.f32 %v38_v1, %v15_v2 }
   0x6   :  { %v31_v5 = vadd.f32 %v39_v3, %v23_v4 }
   0x8   :  { %v32_v6 = vpack.c.bf16 %v31_v5, %v31_v5 }
   0xa   :  { %33 = vst [vmem:[%s75_s3] sm:$0xf] %v32_v6 }

// kernel: resnet_backbone_forward.41
= control target key start
LH: loop header
LB: loop body
LE: loop exit
PB: predicated region body
PF: predicated region fallthrough
CT: control target
= control target key end

     0   :  { %s73_s0 = inlined_call_operand.vmem [shape: bf16[8,128], index: 0, kind: input, shape index: {}, may-alias: {0,3}]   ;;  %s74_s1 = inlined_call_operand.vmem [shape: f32[1,128], index: 1, kind: input, shape index: {}]   ;;  %s75_s2 = inlined_call_operand.vmem [shape: f32[1,128], index: 2, kind: input, shape index: {}]   ;;  %s76_s3 = inlined_call_operand.vmem [shape: bf16[8,128], index: 3, kind: output, shape index: {}, may-alias: {0,3}]  }
   0x1   :  { %v14_v0 = vld [vmem:[%s73_s0] sm:$0xf] }
   0x2   :  { %v39_v1 = vld [vmem:[%s74_s1] ss:$0 sm:$0xff]  ;;  %v15_v2 = vunpack.c.l.bf16 %v14_v0 }
   0x3   :  { %v40_v3 = vld [vmem:[%s75_s2] ss:$0 sm:$0xff] }
   0x4   :  { %v23_v4 = vmul.f32 %v39_v1, %v15_v2 }
   0x6   :  { %v31_v5 = vadd.f32 %v40_v3, %v23_v4 }
   0x8   :  { %v32_v6 = vmax.f32 %v31_v5, 0.0 }
   0xa   :  { %v33_v7 = vpack.c.bf16 %v32_v6, %v32_v6 }
   0xc   :  { %34 = vst [vmem:[%s76_s3] sm:$0xf] %v33_v7 }

// kernel: resnet_backbone_forward.43
= control target key start
LH: loop header
LB: loop body
LE: loop exit
PB: predicated region body
PF: predicated region fallthrough
CT: control target
= control target key end

     0   :  { %s87_s0 = inlined_call_operand.vmem [shape: bf16[8,128], index: 0, kind: input, shape index: {}, may-alias: {0,4}]   ;;  %s88_s1 = inlined_call_operand.vmem [shape: f32[1,128], index: 1, kind: input, shape index: {}]   ;;  %s89_s2 = inlined_call_operand.vmem [shape: f32[1,128], index: 2, kind: input, shape index: {}]   ;;  %s90_s3 = inlined_call_operand.vmem [shape: bf16[8,128], index: 3, kind: input, shape index: {}]   ;;  %s91_s4 = inlined_call_operand.vmem [shape: bf16[8,128], index: 4, kind: output, shape index: {}, may-alias: {0,4}]  }
   0x1   :  { %v17_v0 = vld [vmem:[%s87_s0] sm:$0xf] }
   0x2   :  { %v45_v1 = vld [vmem:[%s88_s1] ss:$0 sm:$0xff]  ;;  %v18_v2 = vunpack.c.l.bf16 %v17_v0 }
   0x3   :  { %v35_v3 = vld [vmem:[%s90_s3] sm:$0xf] }
   0x4   :  { %v46_v4 = vld [vmem:[%s89_s2] ss:$0 sm:$0xff]  ;;  %v26_v5 = vmul.f32 %v45_v1, %v18_v2  ;;  %v36_v6 = vunpack.c.l.bf16 %v35_v3 }
   0x6   :  { %v34_v7 = vadd.f32 %v46_v4, %v26_v5 }
   0x8   :  { %v37_v8 = vadd.f32 %v36_v6, %v34_v7 }
   0xa   :  { %v38_v9 = vmax.f32 %v37_v8, 0.0 }
   0xc   :  { %v39_v10 = vpack.c.bf16 %v38_v9, %v38_v9 }
   0xe   :  { %40 = vst [vmem:[%s91_s4] sm:$0xf] %v39_v10 }

// kernel: resnet_backbone_forward.40
= control target key start
LH: loop header
LB: loop body
LE: loop exit
PB: predicated region body
PF: predicated region fallthrough
CT: control target
= control target key end

     0   :  { %vm1134_vm0 = vmmov 0   ;;  %s1395_s1 = inlined_call_operand.vmem [shape: bf16[1152,128], index: 1, kind: input, shape index: {}]   ;;  %s1396_s0 = inlined_call_operand.vmem [shape: bf16[8,1152], index: 0, kind: input, shape index: {}]   ;;  %s1397_s2 = inlined_call_operand.vmem [shape: bf16[8,128], index: 2, kind: output, shape index: {0}]   ;;  %s1398_s3 = inlined_call_operand.vmem [shape: f32[8,128], index: 3, kind: output, shape index: {1}]  }
   0x1   :  { %v1052_v0 = vld [vmem:[%s1395_s1 + $0x40] sm:$0xff]   ;;  %v1056_v4 = vld [vmem:[%s1395_s1 + $0x48] sm:$0xff]   ;;  %v1060_v8 = vld [vmem:[%s1395_s1 + $0x50] sm:$0xff]  }
   0x2   :  { %v1053_v1 = vld [vmem:[%s1395_s1 + $0xc0] sm:$0xff]   ;;  %933 = vmatprep.subr.bf16.mxu0 %v1052_v0  ;;  %v1057_v5 = vld [vmem:[%s1395_s1 + $0xc8] sm:$0xff]   ;;  %v1061_v9 = vld [vmem:[%s1395_s1 + $0xd0] sm:$0xff]  }
   0x3   :  { %v1054_v2 = vld [vmem:[%s1395_s1] sm:$0xff]   ;;  %955 = vmatprep.subr.bf16.mxu1 %v1053_v1  ;;  %v1058_v6 = vld [vmem:[%s1395_s1 + $0x8] sm:$0xff]   ;;  %v1062_v10 = vld [vmem:[%s1395_s1 + $0x10] sm:$0xff]  }
   0x4   :  { %v1055_v3 = vld [vmem:[%s1395_s1 + $0x80] sm:$0xff]   ;;  %934 = vmatpush3.bf16.msra.mxu0 %v1054_v2  ;;  %v1059_v7 = vld [vmem:[%s1395_s1 + $0x88] sm:$0xff]   ;;  %v1063_v11 = vld [vmem:[%s1395_s1 + $0x90] sm:$0xff]  }
   0x5   :  { %956 = vmatpush3.bf16.msra.mxu1 %v1055_v3  ;;  %935 = vmatprep.subr.bf16.mxu0 %v1056_v4  ;;  %v1064_v12 = vld [vmem:[%s1395_s1 + $0x58] sm:$0xff]   ;;  %v1068_v16 = vld [vmem:[%s1395_s1 + $0x60] sm:$0xff]   ;;  %v1072_v20 = vld [vmem:[%s1395_s1 + $0x68] sm:$0xff]  }
   0x6   :  { %957 = vmatprep.subr.bf16.mxu1 %v1057_v5  ;;  %v1065_v13 = vld [vmem:[%s1395_s1 + $0xd8] sm:$0xff]   ;;  %v1069_v17 = vld [vmem:[%s1395_s1 + $0xe0] sm:$0xff]   ;;  %v1073_v21 = vld [vmem:[%s1395_s1 + $0xe8] sm:$0xff]  }
   0x7   :  { %v1066_v14 = vld [vmem:[%s1395_s1 + $0x18] sm:$0xff]   ;;  %v1070_v18 = vld [vmem:[%s1395_s1 + $0x20] sm:$0xff]   ;;  %v1074_v22 = vld [vmem:[%s1395_s1 + $0x28] sm:$0xff]  }
   0x8   :  { %936 = vmatpush3.bf16.msra.mxu0 %v1058_v6  ;;  %v1067_v15 = vld [vmem:[%s1395_s1 + $0x98] sm:$0xff]   ;;  %v1071_v19 = vld [vmem:[%s1395_s1 + $0xa0] sm:$0xff]   ;;  %v1075_v23 = vld [vmem:[%s1395_s1 + $0xa8] sm:$0xff]  }
   0x9   :  { %958 = vmatpush3.bf16.msra.mxu1 %v1059_v7  ;;  %937 = vmatprep.subr.bf16.mxu0 %v1060_v8  ;;  %v1076_v24 = vld [vmem:[%s1395_s1 + $0x70] sm:$0xff]   ;;  %v1080_v28 = vld [vmem:[%s1395_s1 + $0x78] sm:$0xff]   ;;  %v14_v32 = vld [vmem:[%s1396_s0] sm:$0xff] }
   0xa   :  { %959 = vmatprep.subr.bf16.mxu1 %v1061_v9  ;;  %v1077_v25 = vld [vmem:[%s1395_s1 + $0xf0] sm:$0xff]   ;;  %v1081_v29 = vld [vmem:[%s1395_s1 + $0xf8] sm:$0xff]   ;;  %v15_v33 = vld [vmem:[%s1396_s0 + $0x8] sm:$0xff]  ;;  %v852_v34 = vcombine.low %v14_v32, %v14_v32  ;;  %v853_v35 = vcombine.high %v14_v32, %v14_v32 }
   0xb   :  { %v1078_v26 = vld [vmem:[%s1395_s1 + $0x30] sm:$0xff]   ;;  %v1082_v30 = vld [vmem:[%s1395_s1 + $0x38] sm:$0xff]   ;;  %v854_v36 = vcombine.low %v15_v33, %v15_v33  ;;  %v855_v37 = vcombine.high %v15_v33, %v15_v33  ;;  %v1088_v38 = vld [vmem:[%s1395_s1 + $0x140] sm:$0xff]  }
   0xc   :  { %938 = vmatpush3.bf16.msra.mxu0 %v1062_v10  ;;  %v1079_v27 = vld [vmem:[%s1395_s1 + $0xb0] sm:$0xff]   ;;  %v1083_v31 = vld [vmem:[%s1395_s1 + $0xb8] sm:$0xff]   ;;  %v1089_v39 = vld [vmem:[%s1395_s1 + $0x100] sm:$0xff]   ;;  %659 = vmatprep.mubr.bf16.mxu0 %v853_v35 }
   0xd   :  { %960 = vmatpush3.bf16.msra.mxu1 %v1063_v11  ;;  %939 = vmatprep.subr.bf16.mxu0 %v1064_v12  ;;  %v1090_v40 = vld [vmem:[%s1395_s1 + $0x1c0] sm:$0xff]   ;;  %v1092_v42 = vld [vmem:[%s1395_s1 + $0x148] sm:$0xff]   ;;  %v1096_v46 = vld [vmem:[%s1395_s1 + $0x150] sm:$0xff]  }
   0xe   :  { %961 = vmatprep.subr.bf16.mxu1 %v1065_v13  ;;  %699 = vmatprep.mubr.bf16.mxu1 %v855_v37  ;;  %v1091_v41 = vld [vmem:[%s1395_s1 + $0x180] sm:$0xff]   ;;  %v1093_v43 = vld [vmem:[%s1395_s1 + $0x108] sm:$0xff]   ;;  %v1097_v47 = vld [vmem:[%s1395_s1 + $0x110] sm:$0xff]   ;;  %v1133_v13 = vmov 0.0  }
   0xf   :  { %v1094_v44 = vld [vmem:[%s1395_s1 + $0x1c8] sm:$0xff]   ;;  %v1098_v48 = vld [vmem:[%s1395_s1 + $0x1d0] sm:$0xff]   ;;  %v1100_v50 = vld [vmem:[%s1395_s1 + $0x158] sm:$0xff]  }
  0x10   :  { %940 = vmatpush3.bf16.msra.mxu0 %v1066_v14  ;;  %v1095_v45 = vld [vmem:[%s1395_s1 + $0x188] sm:$0xff]   ;;  %v1099_v49 = vld [vmem:[%s1395_s1 + $0x190] sm:$0xff]   ;;  %v1101_v51 = vld [vmem:[%s1395_s1 + $0x118] sm:$0xff]  }
  0x11   :  { %962 = vmatpush3.bf16.msra.mxu1 %v1067_v15  ;;  %941 = vmatprep.subr.bf16.mxu0 %v1068_v16  ;;  %v1102_v52 = vld [vmem:[%s1395_s1 + $0x1d8] sm:$0xff]   ;;  %v1104_v54 = vld [vmem:[%s1395_s1 + $0x160] sm:$0xff]   ;;  %v1108_v58 = vld [vmem:[%s1395_s1 + $0x168] sm:$0xff]  }
  0x12   :  { %963 = vmatprep.subr.bf16.mxu1 %v1069_v17  ;;  %v1103_v53 = vld [vmem:[%s1395_s1 + $0x198] sm:$0xff]   ;;  %v1105_v55 = vld [vmem:[%s1395_s1 + $0x120] sm:$0xff]   ;;  %v1109_v59 = vld [vmem:[%s1395_s1 + $0x128] sm:$0xff]  }
  0x13   :  { %v1106_v56 = vld [vmem:[%s1395_s1 + $0x1e0] sm:$0xff]   ;;  %v1110_v60 = vld [vmem:[%s1395_s1 + $0x1e8] sm:$0xff]   ;;  %v1112_v62 = vld [vmem:[%s1395_s1 + $0x170] sm:$0xff]  }
  0x14   :  { %942 = vmatpush3.bf16.msra.mxu0 %v1070_v18  ;;  %v1107_v57 = vld [vmem:[%s1395_s1 + $0x1a0] sm:$0xff]   ;;  %v1111_v61 = vld [vmem:[%s1395_s1 + $0x1a8] sm:$0xff]   ;;  %v1113_v63 = vld [vmem:[%s1395_s1 + $0x130] sm:$0xff]  }
  0x15   :  { %964 = vmatpush3.bf16.msra.mxu1 %v1071_v19  ;;  %943 = vmatprep.subr.bf16.mxu0 %v1072_v20  ;;  %v1114_v0 = vld [vmem:[%s1395_s1 + $0x1f0] sm:$0xff]   ;;  %v1116_v2 = vld [vmem:[%s1395_s1 + $0x178] sm:$0xff]   ;;  %v1124_v12 = vld [vmem:[%s1395_s1 + $0x200] sm:$0xff]  }
  0x16   :  { %965 = vmatprep.subr.bf16.mxu1 %v1073_v21  ;;  %v1115_v1 = vld [vmem:[%s1395_s1 + $0x1b0] sm:$0xff]   ;;  %v1117_v3 = vld [vmem:[%s1395_s1 + $0x138] sm:$0xff]   ;;  %v1125_v14 = vld [vmem:[%s1395_s1 + $0x208] sm:$0xff]  }
  0x17   :  { %v1118_v4 = vld [vmem:[%s1395_s1 + $0x1f8] sm:$0xff]   ;;  %v16_v5 = vld [vmem:[%s1396_s0 + $0x10] sm:$0xff]  ;;  %v1128_v17 = vld [vmem:[%s1395_s1 + $0x220] sm:$0xff]  }
  0x18   :  { %944 = vmatpush3.bf16.msra.mxu0 %v1074_v22  ;;  %v857_v6 = vcombine.high %v16_v5, %v16_v5  ;;  %v1121_v7 = vld [vmem:[%s1395_s1 + $0x1b8] sm:$0xff]   ;;  %v856_v8 = vcombine.low %v16_v5, %v16_v5  ;;  %v1126_v15 = vld [vmem:[%s1395_s1 + $0x210] sm:$0xff]   ;;  %v1129_v18 = vld [vmem:[%s1395_s1 + $0x228] sm:$0xff]  }
  0x19   :  { %966 = vmatpush3.bf16.msra.mxu1 %v1075_v23  ;;  %945 = vmatprep.subr.bf16.mxu0 %v1076_v24  ;;  %v17_v9 = vld [vmem:[%s1396_s0 + $0x18] sm:$0xff]  ;;  %v1130_v19 = vld [vmem:[%s1395_s1 + $0x230] sm:$0xff]   ;;  %v1132_v21 = vld [vmem:[%s1396_s0 + $0x20] ss:$0 sps:$4 sm:$0xff]  }
  0x1a   :  { %967 = vmatprep.subr.bf16.mxu1 %v1077_v25  ;;  %v858_v10 = vcombine.low %v17_v9, %v17_v9  ;;  %v859_v11 = vcombine.high %v17_v9, %v17_v9  ;;  %v1127_v16 = vld [vmem:[%s1395_s1 + $0x218] sm:$0xff]  }
  0x1b   :  { %v1131_v20 = vld [vmem:[%s1395_s1 + $0x238] sm:$0xff]  }
  0x1c   :  { %946 = vmatpush3.bf16.msra.mxu0 %v1078_v26 }
  0x1d   :  { %968 = vmatpush3.bf16.msra.mxu1 %v1079_v27  ;;  %947 = vmatprep.subr.bf16.mxu0 %v1080_v28 }
  0x1e   :  { %969 = vmatprep.subr.bf16.mxu1 %v1081_v29 }
  0x20   :  { %948 = vmatpush3.bf16.msra.mxu0 %v1082_v30 }
  0x21   :  { %970 = vmatpush3.bf16.msra.mxu1 %v1083_v31  ;;  %977 = vmatprep.subr.bf16.mxu0 %v1088_v38 }
  0x22   :  { %999 = vmatprep.subr.bf16.mxu1 %v1090_v40 }
  0x23   :  { %660 = vmatmul.mubr.bf16.vlgmr.msra.gmra.mrb[0].mxu0 %v852_v34 }
  0x24   :  { %700 = vmatmul.mubr.bf16.vlgmr.msra.gmra.mrb[0].mxu1 %v854_v36  ;;  %978 = vmatpush3.bf16.msra.mxu0 %v1089_v39 }
  0x25   :  { %1000 = vmatpush3.bf16.msra.mxu1 %v1091_v41  ;;  %979 = vmatprep.subr.bf16.mxu0 %v1092_v42 }
  0x26   :  { %1001 = vmatprep.subr.bf16.mxu1 %v1094_v44  ;;  %739 = vmatprep.mubr.bf16.mxu0 %v857_v6 }
  0x27   :  { %779 = vmatprep.mubr.bf16.mxu1 %v859_v11 }
  0x28   :  { %980 = vmatpush3.bf16.msra.mxu0 %v1093_v43 }
  0x29   :  { %1002 = vmatpush3.bf16.msra.mxu1 %v1095_v45  ;;  %981 = vmatprep.subr.bf16.mxu0 %v1096_v46 }
  0x2a   :  { %1003 = vmatprep.subr.bf16.mxu1 %v1098_v48 }
  0x2c   :  { %982 = vmatpush3.bf16.msra.mxu0 %v1097_v47 }
  0x2d   :  { %1004 = vmatpush3.bf16.msra.mxu1 %v1099_v49  ;;  %983 = vmatprep.subr.bf16.mxu0 %v1100_v50 }
  0x2e   :  { %1005 = vmatprep.subr.bf16.mxu1 %v1102_v52 }
  0x30   :  { %984 = vmatpush3.bf16.msra.mxu0 %v1101_v51 }
  0x31   :  { %1006 = vmatpush3.bf16.msra.mxu1 %v1103_v53  ;;  %985 = vmatprep.subr.bf16.mxu0 %v1104_v54 }
  0x32   :  { %1007 = vmatprep.subr.bf16.mxu1 %v1106_v56 }
  0x34   :  { %986 = vmatpush3.bf16.msra.mxu0 %v1105_v55 }
  0x35   :  { %1008 = vmatpush3.bf16.msra.mxu1 %v1107_v57  ;;  %987 = vmatprep.subr.bf16.mxu0 %v1108_v58 }
  0x36   :  { %1009 = vmatprep.subr.bf16.mxu1 %v1110_v60 }
  0x38   :  { %988 = vmatpush3.bf16.msra.mxu0 %v1109_v59 }
  0x39   :  { %1010 = vmatpush3.bf16.msra.mxu1 %v1111_v61  ;;  %989 = vmatprep.subr.bf16.mxu0 %v1112_v62 }
  0x3a   :  { %1011 = vmatprep.subr.bf16.mxu1 %v1114_v0 }
  0x3c   :  { %990 = vmatpush3.bf16.msra.mxu0 %v1113_v63 }
  0x3d   :  { %1012 = vmatpush3.bf16.msra.mxu1 %v1115_v1  ;;  %991 = vmatprep.subr.bf16.mxu0 %v1116_v2 }
  0x3e   :  { %1013 = vmatprep.subr.bf16.mxu1 %v1118_v4 }
  0x40   :  { %992 = vmatpush3.bf16.msra.mxu0 %v1117_v3 }
  0x41   :  { %1014 = vmatpush3.bf16.msra.mxu1 %v1121_v7  ;;  %1030 = vmatprep.subr.bf16.mxu0 %v1133_v13 }
  0x43   :  { %740 = vmatmul.mubr.bf16.vlgmr.msra.gmra.mrb[4].mxu0 %v856_v8 }
  0x44   :  { %1031 = vmatpush3.bf16.msra.mxu0 %v1124_v12  ;;  %780 = vmatmul.mubr.bf16.vlgmr.msra.gmra.mrb[4].mxu1 %v858_v10 }
  0x45   :  { %1032 = vmatprep.subr.bf16.mxu0 %v1133_v13  ;;  %1046 = vmatprep.mubr.msk.bf16.mxu0 %vm1134_vm0, %v1133_v13 }
  0x48   :  { %1033 = vmatpush3.bf16.msra.mxu0 %v1125_v14 }
  0x49   :  { %1034 = vmatprep.subr.bf16.mxu0 %v1133_v13 }
  0x4c   :  { %1035 = vmatpush3.bf16.msra.mxu0 %v1126_v15 }
  0x4d   :  { %1036 = vmatprep.subr.bf16.mxu0 %v1133_v13 }
  0x50   :  { %1037 = vmatpush3.bf16.msra.mxu0 %v1127_v16 }
  0x51   :  { %1038 = vmatprep.subr.bf16.mxu0 %v1133_v13 }
  0x54   :  { %1039 = vmatpush3.bf16.msra.mxu0 %v1128_v17 }
  0x55   :  { %1040 = vmatprep.subr.bf16.mxu0 %v1133_v13 }
  0x58   :  { %1041 = vmatpush3.bf16.msra.mxu0 %v1129_v18 }
  0x59   :  { %1042 = vmatprep.subr.bf16.mxu0 %v1133_v13 }
  0x5c   :  { %1043 = vmatpush3.bf16.msra.mxu0 %v1130_v19 }
  0x5d   :  { %1044 = vmatprep.subr.bf16.mxu0 %v1133_v13 }
  0x60   :  { %1045 = vmatpush3.bf16.msra.mxu0 %v1131_v20 }
  0x63   :  { %1047 = vmatmul.mubr.bf16.vlgmr.msra.gmra.mrb[8].mxu0 %v1132_v21 }
  0xf6   :  { %v949_v22 = vpop.f32.mrb[0].mxu0 }
  0xf7   :  { %v971_v23 = vpop.f32.mrb[0].mxu1  ;;  %v950_v24 = vpop.f32.mrb[1].mxu0 }
  0xf8   :  { %v972_v25 = vpop.f32.mrb[1].mxu1  ;;  %v951_v26 = vadd.f32 %v950_v24, %v949_v22  ;;  %v952_v28 = vpop.f32.mrb[2].mxu0 }
  0xf9   :  { %v973_v27 = vadd.f32 %v972_v25, %v971_v23  ;;  %v974_v29 = vpop.f32.mrb[2].mxu1  ;;  %v953_v30 = vpop.f32.mrb[3].mxu0 }
  0xfa   :  { %v975_v31 = vpop.f32.mrb[3].mxu1 }
  0xfb   :  { %v702_v32 = vadd.f32 %v973_v27, %v951_v26 }
 0x116   :  { %v993_v33 = vpop.f32.mrb[4].mxu0 }
 0x117   :  { %v994_v34 = vpop.f32.mrb[5].mxu0  ;;  %v1015_v35 = vpop.f32.mrb[4].mxu1 }
 0x118   :  { %v995_v36 = vadd.f32 %v994_v34, %v993_v33  ;;  %v996_v37 = vpop.f32.mrb[6].mxu0  ;;  %v1016_v38 = vpop.f32.mrb[5].mxu1 }
 0x119   :  { %v997_v39 = vpop.f32.mrb[7].mxu0  ;;  %v1017_v40 = vadd.f32 %v1016_v38, %v1015_v35  ;;  %v1018_v41 = vpop.f32.mrb[6].mxu1 }
 0x11a   :  { %v742_v42 = vadd.f32 %v995_v36, %v702_v32  ;;  %v1019_v43 = vpop.f32.mrb[7].mxu1 }
 0x11c   :  { %v782_v44 = vadd.f32 %v1017_v40, %v742_v42 }
 0x136   :  { %v821_v45 = vpop.f32.mrb[8].mxu0 }
 0x137   :  { %v822_v46 = vadd.f32 %v821_v45, %v782_v44  ;;  %v1048_v47 = vpop.f32.mrb[9].mxu0 }
 0x138   :  { %v824_v48 = vpop.f32.mrb[10].mxu0 }
 0x139   :  { %v827_v49 = vpack.c.bf16 %v822_v46, %v822_v46  ;;  %v829_v50 = vrot.slane %v822_v46, 4  ;;  %v836_v51 = vmul.f32 %v822_v46, %v822_v46  ;;  %v1049_v52 = vpop.f32.mrb[11].mxu0 }
 0x13b   :  { %828 = vst [vmem:[%s1397_s2] sm:$0xf] %v827_v49  ;;  %v830_v53 = vadd.f32 %v829_v50, %v822_v46  ;;  %v837_v54 = vrot.slane %v836_v51, 4 }
 0x13d   :  { %v831_v55 = vrot.slane %v830_v53, 2  ;;  %v838_v56 = vadd.f32 %v837_v54, %v836_v51 }
 0x13f   :  { %v832_v57 = vadd.f32 %v831_v55, %v830_v53  ;;  %v839_v58 = vrot.slane %v838_v56, 2 }
 0x141   :  { %v833_v59 = vrot.slane %v832_v57, 1  ;;  %v840_v60 = vadd.f32 %v839_v58, %v838_v56 }
 0x143   :  { %v834_v61 = vadd.f32 %v833_v59, %v832_v57  ;;  %v841_v62 = vrot.slane %v840_v60, 1 }
 0x145   :  { %835 = vst [vmem:[%s1398_s3] sm:$0x1] %v834_v61  ;;  %v842_v63 = vadd.f32 %v841_v62, %v840_v60 }
 0x147   :  { %843 = vst [vmem:[%s1398_s3 + $0x1] sm:$0x1] %v842_v63 }

</bundles_post_ra>
